<compile_context>
chip_gen: v7x
topology: tpu7x:2x2x1
jax: 0.10.0
libtpu: 0.0.40
codegen_flags: <defaults>
</compile_context>

<pallas_src>
import functools

import numpy as np

import jax
import jax.numpy as jnp
from jax.experimental import pallas as pl
from jax.experimental.pallas import tpu as pltpu

_CompilerParams = getattr(pltpu, "CompilerParams", None)
if _CompilerParams is None:  # older releases used a different name
    _CompilerParams = getattr(pltpu, "TPUCompilerParams")


# ------------------------------ fused kernel --------------------------------

def _net_kernel(x_ref, t1_ref, b1_ref, t2_ref, b2_ref,
                wf1_ref, bf1_ref, wf2_ref, bf2_ref, wf3_ref, bf3_ref,
                o_ref, acc1_ref, h1_ref, acc2_ref):
    """Whole Net forward for one batch tile of B images.

    x_ref  : (32, B, 128)  bf16  image rows; lane = w*4 + c (c padded 3->4)
    t1_ref : (5, 128, 512) bf16  conv1 block-Toeplitz weights (one per kernel row)
    b1_ref : (1, 256)      f32   conv1 bias broadcast over pooled-W groups
    t2_ref : (5, 256, 256) bf16  conv2 block-Toeplitz weights (K padded to 256)
    b2_ref : (1, 128)      f32
    wf1_ref: (5, 128, 128) bf16  fc1 weights per pooled row (column-permuted)
    wf2_ref, wf3_ref: (128, 128) bf16 ; bf1/bf2/bf3_ref: (1, 128) f32
    o_ref  : (B, 128)      f32   logits (columns >= 10 are zero padding)
    acc1_ref: (28*B, 512)  f32   conv1 accumulator, row = ho*B + b
    h1_ref : (14*B, 256)   bf16  pooled conv1 activations, row = ph*B + b,
                                 lane = pooled_w*16 + c (lanes 224..255 zero)
    acc2_ref: (10*B, 256)  f32   conv2 accumulator, row = ho2*B + b
    """
    f32 = jnp.float32
    bf16 = jnp.bfloat16
    B = o_ref.shape[0]

    # ---- conv1 (5x5, 3->10): 5 MXU passes, M = 28*B, K = 128, N = 512 -------
    # Tap i needs image rows i..i+27 (consecutive), so each RHS is pushed once.
    for i in range(5):
        lhs = x_ref[i:i + 28].reshape(28 * B, 128)          # rows = (ho, b)
        part = jnp.dot(lhs, t1_ref[i], preferred_element_type=f32)
        if i == 0:
            acc1_ref[...] = part
        else:
            acc1_ref[...] += part

    # ---- conv1 bias + ReLU + 2x2 max-pool (VPU, f32) -------------------------
    a1 = acc1_ref[...].reshape(14, 2 * B, 512)
    m1 = jnp.maximum(a1[:, :B, :], a1[:, B:, :])            # pool over H pairs
    p1 = jnp.maximum(m1[..., 0:256], m1[..., 256:512])      # pool over W pairs
    h1 = jnp.maximum(p1 + b1_ref[...], 0.0)                 # (14, B, 256)
    h1_ref[...] = h1.reshape(14 * B, 256).astype(bf16)

    # ---- conv2 (5x5, 10->16): 5 MXU passes, M = 10*B, K = 256, N = 256 -------
    for i in range(5):
        lhs = h1_ref[i * B:(i + 10) * B]                     # (10*B, 256)
        part = jnp.dot(lhs, t2_ref[i], preferred_element_type=f32)
        if i == 0:
            acc2_ref[...] = part
        else:
            acc2_ref[...] += part

    a2 = acc2_ref[...].reshape(5, 2 * B, 256)
    m2 = jnp.maximum(a2[:, :B, :], a2[:, B:, :])             # pool over H pairs
    p2 = jnp.maximum(m2[..., 0:128], m2[..., 128:256])       # pool over W pairs
    h2 = jnp.maximum(p2 + b2_ref[...], 0.0)                  # (5, B, 128) f32
    h2b = h2.astype(bf16)

    # ---- fc1 (400 -> 120) + ReLU ---------------------------------------------
    # TODO(synk): optionally collapse into a single (B,640)x(640,128) dot; the
    # fc layers are a small fraction of FLOPs so the 5-dot form is kept.
    a_fc1 = jnp.dot(h2b[0], wf1_ref[0], preferred_element_type=f32)
    for h in range(1, 5):
        a_fc1 = a_fc1 + jnp.dot(h2b[h], wf1_ref[h], preferred_element_type=f32)
    f1 = jnp.maximum(a_fc1 + bf1_ref[...], 0.0).astype(bf16)

    # ---- fc2 (120 -> 84) + ReLU ----------------------------------------------
    f2 = jnp.maximum(
        jnp.dot(f1, wf2_ref[...], preferred_element_type=f32) + bf2_ref[...],
        0.0).astype(bf16)

    # ---- fc3 (84 -> 10) -------------------------------------------------------
    o_ref[...] = (jnp.dot(f2, wf3_ref[...], preferred_element_type=f32)
                  + bf3_ref[...])


def _net_pallas_call(n_pad, B):
    n_steps = n_pad // B
    in_specs = [
        pl.BlockSpec((32, B, 128), lambda n: (0, n, 0)),      # x (batch tile)
        pl.BlockSpec((5, 128, 512), lambda n: (0, 0, 0)),     # t1
        pl.BlockSpec((1, 256), lambda n: (0, 0)),             # b1
        pl.BlockSpec((5, 256, 256), lambda n: (0, 0, 0)),     # t2
        pl.BlockSpec((1, 128), lambda n: (0, 0)),             # b2
        pl.BlockSpec((5, 128, 128), lambda n: (0, 0, 0)),     # wf1
        pl.BlockSpec((1, 128), lambda n: (0, 0)),             # bf1
        pl.BlockSpec((128, 128), lambda n: (0, 0)),           # wf2
        pl.BlockSpec((1, 128), lambda n: (0, 0)),             # bf2
        pl.BlockSpec((128, 128), lambda n: (0, 0)),           # wf3
        pl.BlockSpec((1, 128), lambda n: (0, 0)),             # bf3
    ]
    out_specs = pl.BlockSpec((B, 128), lambda n: (n, 0))

    flops = 2 * n_pad * (5 * 28 * 128 * 512      # conv1 matmuls
                         + 5 * 10 * 256 * 256    # conv2 matmuls
                         + 5 * 128 * 128         # fc1
                         + 2 * 128 * 128)        # fc2 + fc3
    weight_bytes = 2 * (5 * 128 * 512 + 5 * 256 * 256 + 5 * 128 * 128
                        + 2 * 128 * 128)
    bytes_accessed = (n_pad * (32 * 128 * 2 + 128 * 4)
                      + weight_bytes + 4 * (256 + 5 * 128))

    kwargs = {}
    if hasattr(pl, "CostEstimate"):
        kwargs["cost_estimate"] = pl.CostEstimate(
            flops=int(flops), transcendentals=0,
            bytes_accessed=int(bytes_accessed))

    return pl.pallas_call(
        _net_kernel,
        out_shape=jax.ShapeDtypeStruct((n_pad, 128), jnp.float32),
        grid=(n_steps,),
        in_specs=in_specs,
        out_specs=out_specs,
        scratch_shapes=[
            pltpu.VMEM((28 * B, 512), jnp.float32),   # conv1 accumulator
            pltpu.VMEM((14 * B, 256), jnp.bfloat16),  # pooled conv1 activations
            pltpu.VMEM((10 * B, 256), jnp.float32),   # conv2 accumulator
        ],
        # TODO(synk): on v7x use pltpu.CORE_PARALLEL to shard batch tiles over
        # both TensorCores; "parallel" is kept here as the portable choice.
        compiler_params=_CompilerParams(dimension_semantics=("parallel",)),
        **kwargs,
    )


# ---------------------------- parameter handling -----------------------------

def init_params(key):
    """Deterministic synthetic parameters with the shapes from Net.__init__."""
    ks = jax.random.split(key, 10)

    def u(k, shape, fan_in):
        bound = 1.0 / np.sqrt(fan_in)
        return jax.random.uniform(k, shape, jnp.float32, -bound, bound)

    return {
        "conv1_w": u(ks[0], (10, 3, 5, 5), 3 * 5 * 5),
        "conv1_b": u(ks[1], (10,), 3 * 5 * 5),
        "conv2_w": u(ks[2], (16, 10, 5, 5), 10 * 5 * 5),
        "conv2_b": u(ks[3], (16,), 10 * 5 * 5),
        "fc1_w":   u(ks[4], (120, 16 * 5 * 5), 16 * 5 * 5),
        "fc1_b":   u(ks[5], (120,), 16 * 5 * 5),
        "fc2_w":   u(ks[6], (84, 120), 120),
        "fc2_b":   u(ks[7], (84,), 120),
        "fc3_w":   u(ks[8], (10, 84), 84),
        "fc3_b":   u(ks[9], (10,), 84),
    }


def pack_params(p):
    """One-time repack of PyTorch-shaped weights into lane-dense, MXU-friendly
    layouts (bf16 Toeplitz conv weights, pre-transposed zero-padded fc weights)."""
    w1 = np.asarray(p["conv1_w"], np.float32)      # (10, 3, 5, 5)  OIHW
    b1 = np.asarray(p["conv1_b"], np.float32)
    w2 = np.asarray(p["conv2_w"], np.float32)      # (16, 10, 5, 5)
    b2 = np.asarray(p["conv2_b"], np.float32)
    fw1 = np.asarray(p["fc1_w"], np.float32)       # (120, 400)
    fb1 = np.asarray(p["fc1_b"], np.float32)
    fw2 = np.asarray(p["fc2_w"], np.float32)       # (84, 120)
    fb2 = np.asarray(p["fc2_b"], np.float32)
    fw3 = np.asarray(p["fc3_w"], np.float32)       # (10, 84)
    fb3 = np.asarray(p["fc3_b"], np.float32)

    # conv1 Toeplitz: row = w_in*4 + c_in (lane layout of a packed image row),
    # col = (wo % 2) * 256 + (wo // 2) * 16 + c_out.
    t1 = np.zeros((5, 128, 512), np.float32)
    for i in range(5):
        for j in range(5):
            blk = w1[:, :, i, j].T                 # (c_in=3, c_out=10)
            for wo in range(28):
                w_in = wo + j
                col = (wo % 2) * 256 + (wo // 2) * 16
                t1[i, w_in * 4:w_in * 4 + 3, col:col + 10] = blk
    b1l = np.zeros((1, 256), np.float32)           # lanes 224..255 stay zero
    for q in range(14):
        b1l[0, q * 16:q * 16 + 10] = b1

    # conv2 Toeplitz: input lane = w_in*16 + c_in (K padded 224 -> 256),
    # col = (wo % 2) * 128 + (wo // 2) * 16 + c_out.
    t2 = np.zeros((5, 256, 256), np.float32)
    for i in range(5):
        for j in range(5):
            blk = w2[:, :, i, j].T                 # (c_in=10, c_out=16)
            for wo in range(10):
                w_in = wo + j
                col = (wo % 2) * 128 + (wo // 2) * 16
                t2[i, w_in * 16:w_in * 16 + 10, col:col + 16] = blk
    b2l = np.zeros((1, 128), np.float32)
    for q in range(5):
        b2l[0, q * 16:q * 16 + 16] = b2

    # fc1: kernel lane (per pooled row h) = w*16 + c ; torch feature = c*25+h*5+w
    wf1 = np.zeros((5, 128, 128), np.float32)      # rows 80..127 stay zero
    for h in range(5):
        for w in range(5):
            for c in range(16):
                wf1[h, w * 16 + c, :120] = fw1[:, c * 25 + h * 5 + w]
    bf1 = np.zeros((1, 128), np.float32)
    bf1[0, :120] = fb1

    wf2 = np.zeros((128, 128), np.float32)
    wf2[:120, :84] = fw2.T
    bf2 = np.zeros((1, 128), np.float32)
    bf2[0, :84] = fb2

    wf3 = np.zeros((128, 128), np.float32)
    wf3[:84, :10] = fw3.T
    bf3 = np.zeros((1, 128), np.float32)
    bf3[0, :10] = fb3

    bdt = jnp.bfloat16
    return {
        "t1": jnp.asarray(t1, bdt), "b1": jnp.asarray(b1l),
        "t2": jnp.asarray(t2, bdt), "b2": jnp.asarray(b2l),
        "wf1": jnp.asarray(wf1, bdt), "bf1": jnp.asarray(bf1),
        "wf2": jnp.asarray(wf2, bdt), "bf2": jnp.asarray(bf2),
        "wf3": jnp.asarray(wf3, bdt), "bf3": jnp.asarray(bf3),
    }


# --------------------------------- forward ----------------------------------

def _round_up(x, m):
    return (x + m - 1) // m * m


@functools.partial(jax.jit, static_argnames=("batch_tile",))
def net_forward(x_nchw, packed, batch_tile=32):
    """x_nchw: (N, 3, 32, 32) float32 -> logits (N, 10) float32."""
    n, c, h, w = x_nchw.shape
    assert (c, h, w) == (3, 32, 32)
    # Batch tile must be a multiple of 8 so in-kernel (rows, B, 128) <-> (rows*B,
    # 128) reshapes are layout no-ops and stores are full (8,128) tiles.
    bt = batch_tile if n >= batch_tile else _round_up(n, 8)
    n_pad = _round_up(n, bt)

    # NCHW -> NHWC, pad channels 3->4, flatten (W, C) into 128 lanes, then put
    # the image-row axis first and the batch axis in the sublane position:
    # x_packed[row, b, w*4 + c].
    x = jnp.transpose(x_nchw, (0, 2, 3, 1))                      # (N, 32, 32, 3)
    x = jnp.pad(x, ((0, n_pad - n), (0, 0), (0, 0), (0, 1)))     # (Np, 32, 32, 4)
    x = x.reshape(n_pad, 32, 128)                                # lane = w*4 + c
    x = jnp.transpose(x, (1, 0, 2)).astype(jnp.bfloat16)         # (32, Np, 128)

    out = _net_pallas_call(n_pad, bt)(
        x, packed["t1"], packed["b1"], packed["t2"], packed["b2"],
        packed["wf1"], packed["bf1"], packed["wf2"], packed["bf2"],
        packed["wf3"], packed["bf3"])
    return out[:n, :10]


def net_reference(x, p):
    """Pure-JAX f32 reference of the original PyTorch forward pass."""
    hi = jax.lax.Precision.HIGHEST

    def conv(x, w, b):
        y = jax.lax.conv_general_dilated(
            x, w, window_strides=(1, 1), padding="VALID",
            dimension_numbers=("NCHW", "OIHW", "NCHW"), precision=hi)
        return jax.nn.relu(y + b[None, :, None, None])

    def pool(x):
        n, c, h, w = x.shape
        return x.reshape(n, c, h // 2, 2, w // 2, 2).max(axis=(3, 5))

    x = pool(conv(x, p["conv1_w"], p["conv1_b"]))
    x = pool(conv(x, p["conv2_w"], p["conv2_b"]))
    x = x.reshape(x.shape[0], 16 * 5 * 5)
    x = jax.nn.relu(jnp.dot(x, p["fc1_w"].T, precision=hi) + p["fc1_b"])
    x = jax.nn.relu(jnp.dot(x, p["fc2_w"].T, precision=hi) + p["fc2_b"])
    return jnp.dot(x, p["fc3_w"].T, precision=hi) + p["fc3_b"]


if __name__ == "__main__":
    key = jax.random.PRNGKey(0)
    k_param, k_x = jax.random.split(key)
    raw_params = init_params(k_param)
    packed = pack_params(raw_params)

    # Net's fc1 (16*5*5) implies a 3x32x32 input; batch = 2 (padded to one
    # 8-image tile inside the wrapper).
    x = jax.random.normal(k_x, (2, 3, 32, 32), dtype=jnp.float32)

    out = jax.block_until_ready(net_forward(x, packed))
    assert out.shape == (2, 10) and out.dtype == jnp.float32

    # Sanity check against a pure-JAX f32 reference (kernel uses bf16 MXU
    # operands, so allow a small absolute tolerance).
    ref = jax.block_until_ready(net_reference(x, raw_params))
    max_err = float(jnp.max(jnp.abs(out - ref)))
    assert max_err < 0.08, f"kernel deviates from reference: max|diff|={max_err}"

    print("KERNEL_OK")
</pallas_src>

<mosaic_0001>
module attributes {stable_mosaic.version = 11 : i64} {
  func.func @_net_kernel(%arg0: i32, %arg1: memref<32x8x128xbf16, #tpu.memory_space<vmem>>, %arg2: memref<5x128x512xbf16, #tpu.memory_space<vmem>>, %arg3: memref<1x256xf32, #tpu.memory_space<vmem>>, %arg4: memref<5x256x256xbf16, #tpu.memory_space<vmem>>, %arg5: memref<1x128xf32, #tpu.memory_space<vmem>>, %arg6: memref<5x128x128xbf16, #tpu.memory_space<vmem>>, %arg7: memref<1x128xf32, #tpu.memory_space<vmem>>, %arg8: memref<128x128xbf16, #tpu.memory_space<vmem>>, %arg9: memref<1x128xf32, #tpu.memory_space<vmem>>, %arg10: memref<128x128xbf16, #tpu.memory_space<vmem>>, %arg11: memref<1x128xf32, #tpu.memory_space<vmem>>, %arg12: memref<8x128xf32, #tpu.memory_space<vmem>>, %arg13: memref<224x512xf32, #tpu.memory_space<vmem>>, %arg14: memref<112x256xbf16, #tpu.memory_space<vmem>>, %arg15: memref<80x256xf32, #tpu.memory_space<vmem>>) attributes {dimension_semantics = [#tpu.dimension_semantics<parallel>], iteration_bounds = array<i64: 1>, scalar_prefetch = 0 : i64, scratch_operands = 3 : i64, tpu.core_type = #tpu.core_type<tc>, window_params = [{transform_indices = @transform_0, window_bounds = array<i64: 32, 8, 128>}, {pipeline_mode = #tpu.pipeline_mode<synchronous>, transform_indices = @transform_1, window_bounds = array<i64: 5, 128, 512>}, {pipeline_mode = #tpu.pipeline_mode<synchronous>, transform_indices = @transform_2, window_bounds = array<i64: 1, 256>}, {pipeline_mode = #tpu.pipeline_mode<synchronous>, transform_indices = @transform_3, window_bounds = array<i64: 5, 256, 256>}, {pipeline_mode = #tpu.pipeline_mode<synchronous>, transform_indices = @transform_4, window_bounds = array<i64: 1, 128>}, {pipeline_mode = #tpu.pipeline_mode<synchronous>, transform_indices = @transform_5, window_bounds = array<i64: 5, 128, 128>}, {pipeline_mode = #tpu.pipeline_mode<synchronous>, transform_indices = @transform_6, window_bounds = array<i64: 1, 128>}, {pipeline_mode = #tpu.pipeline_mode<synchronous>, transform_indices = @transform_7, window_bounds = array<i64: 128, 128>}, {pipeline_mode = #tpu.pipeline_mode<synchronous>, transform_indices = @transform_8, window_bounds = array<i64: 1, 128>}, {pipeline_mode = #tpu.pipeline_mode<synchronous>, transform_indices = @transform_9, window_bounds = array<i64: 128, 128>}, {pipeline_mode = #tpu.pipeline_mode<synchronous>, transform_indices = @transform_10, window_bounds = array<i64: 1, 128>}, {transform_indices = @transform_11, window_bounds = array<i64: 8, 128>}]} {
    %c0 = arith.constant 0 : index
    %c0_0 = arith.constant 0 : index
    %c0_1 = arith.constant 0 : index
    %0 = vector.load %arg1[%c0, %c0_0, %c0_1] : memref<32x8x128xbf16, #tpu.memory_space<vmem>>, vector<28x8x128xbf16>
    %1 = vector.shape_cast %0 : vector<28x8x128xbf16> to vector<224x128xbf16>
    %c0_2 = arith.constant 0 : index
    %c0_3 = arith.constant 0 : index
    %c0_4 = arith.constant 0 : index
    %2 = vector.load %arg2[%c0_2, %c0_3, %c0_4] : memref<5x128x512xbf16, #tpu.memory_space<vmem>>, vector<1x128x512xbf16>
    %3 = vector.shape_cast %2 : vector<1x128x512xbf16> to vector<128x512xbf16>
    %cst = arith.constant dense<0.000000e+00> : vector<224x512xf32>
    %4 = tpu.matmul %1, %3, %cst {dimension_numbers = #tpu.dot_dimension_numbers<[1], [0], [0], [1], [0, 0, 1, 1], [], []>} : vector<224x128xbf16>, vector<128x512xbf16>, vector<224x512xf32> -> vector<224x512xf32>
    %c0_5 = arith.constant 0 : index
    %c0_6 = arith.constant 0 : index
    %5 = vector.load %arg13[%c0_5, %c0_6] : memref<224x512xf32, #tpu.memory_space<vmem>>, vector<224x512xf32>
    tpu.vector_store %arg13[%c0_5, %c0_6], %4 {strides = array<i32>} : memref<224x512xf32, #tpu.memory_space<vmem>>, vector<224x512xf32>,
    %c1 = arith.constant 1 : index
    %c0_7 = arith.constant 0 : index
    %c0_8 = arith.constant 0 : index
    %6 = vector.load %arg1[%c1, %c0_7, %c0_8] : memref<32x8x128xbf16, #tpu.memory_space<vmem>>, vector<28x8x128xbf16>
    %7 = vector.shape_cast %6 : vector<28x8x128xbf16> to vector<224x128xbf16>
    %c1_9 = arith.constant 1 : index
    %c0_10 = arith.constant 0 : index
    %c0_11 = arith.constant 0 : index
    %8 = vector.load %arg2[%c1_9, %c0_10, %c0_11] : memref<5x128x512xbf16, #tpu.memory_space<vmem>>, vector<1x128x512xbf16>
    %9 = vector.shape_cast %8 : vector<1x128x512xbf16> to vector<128x512xbf16>
    %cst_12 = arith.constant dense<0.000000e+00> : vector<224x512xf32>
    %10 = tpu.matmul %7, %9, %cst_12 {dimension_numbers = #tpu.dot_dimension_numbers<[1], [0], [0], [1], [0, 0, 1, 1], [], []>} : vector<224x128xbf16>, vector<128x512xbf16>, vector<224x512xf32> -> vector<224x512xf32>
    %c0_13 = arith.constant 0 : index
    %c0_14 = arith.constant 0 : index
    %11 = vector.load %arg13[%c0_13, %c0_14] : memref<224x512xf32, #tpu.memory_space<vmem>>, vector<224x512xf32>
    %12 = arith.addf %11, %10 : vector<224x512xf32>
    %c0_15 = arith.constant 0 : index
    %c0_16 = arith.constant 0 : index
    %13 = vector.load %arg13[%c0_15, %c0_16] : memref<224x512xf32, #tpu.memory_space<vmem>>, vector<224x512xf32>
    tpu.vector_store %arg13[%c0_15, %c0_16], %12 {strides = array<i32>} : memref<224x512xf32, #tpu.memory_space<vmem>>, vector<224x512xf32>,
    %c2 = arith.constant 2 : index
    %c0_17 = arith.constant 0 : index
    %c0_18 = arith.constant 0 : index
    %14 = vector.load %arg1[%c2, %c0_17, %c0_18] : memref<32x8x128xbf16, #tpu.memory_space<vmem>>, vector<28x8x128xbf16>
    %15 = vector.shape_cast %14 : vector<28x8x128xbf16> to vector<224x128xbf16>
    %c2_19 = arith.constant 2 : index
    %c0_20 = arith.constant 0 : index
    %c0_21 = arith.constant 0 : index
    %16 = vector.load %arg2[%c2_19, %c0_20, %c0_21] : memref<5x128x512xbf16, #tpu.memory_space<vmem>>, vector<1x128x512xbf16>
    %17 = vector.shape_cast %16 : vector<1x128x512xbf16> to vector<128x512xbf16>
    %cst_22 = arith.constant dense<0.000000e+00> : vector<224x512xf32>
    %18 = tpu.matmul %15, %17, %cst_22 {dimension_numbers = #tpu.dot_dimension_numbers<[1], [0], [0], [1], [0, 0, 1, 1], [], []>} : vector<224x128xbf16>, vector<128x512xbf16>, vector<224x512xf32> -> vector<224x512xf32>
    %c0_23 = arith.constant 0 : index
    %c0_24 = arith.constant 0 : index
    %19 = vector.load %arg13[%c0_23, %c0_24] : memref<224x512xf32, #tpu.memory_space<vmem>>, vector<224x512xf32>
    %20 = arith.addf %19, %18 : vector<224x512xf32>
    %c0_25 = arith.constant 0 : index
    %c0_26 = arith.constant 0 : index
    %21 = vector.load %arg13[%c0_25, %c0_26] : memref<224x512xf32, #tpu.memory_space<vmem>>, vector<224x512xf32>
    tpu.vector_store %arg13[%c0_25, %c0_26], %20 {strides = array<i32>} : memref<224x512xf32, #tpu.memory_space<vmem>>, vector<224x512xf32>,
    %c3 = arith.constant 3 : index
    %c0_27 = arith.constant 0 : index
    %c0_28 = arith.constant 0 : index
    %22 = vector.load %arg1[%c3, %c0_27, %c0_28] : memref<32x8x128xbf16, #tpu.memory_space<vmem>>, vector<28x8x128xbf16>
    %23 = vector.shape_cast %22 : vector<28x8x128xbf16> to vector<224x128xbf16>
    %c3_29 = arith.constant 3 : index
    %c0_30 = arith.constant 0 : index
    %c0_31 = arith.constant 0 : index
    %24 = vector.load %arg2[%c3_29, %c0_30, %c0_31] : memref<5x128x512xbf16, #tpu.memory_space<vmem>>, vector<1x128x512xbf16>
    %25 = vector.shape_cast %24 : vector<1x128x512xbf16> to vector<128x512xbf16>
    %cst_32 = arith.constant dense<0.000000e+00> : vector<224x512xf32>
    %26 = tpu.matmul %23, %25, %cst_32 {dimension_numbers = #tpu.dot_dimension_numbers<[1], [0], [0], [1], [0, 0, 1, 1], [], []>} : vector<224x128xbf16>, vector<128x512xbf16>, vector<224x512xf32> -> vector<224x512xf32>
    %c0_33 = arith.constant 0 : index
    %c0_34 = arith.constant 0 : index
    %27 = vector.load %arg13[%c0_33, %c0_34] : memref<224x512xf32, #tpu.memory_space<vmem>>, vector<224x512xf32>
    %28 = arith.addf %27, %26 : vector<224x512xf32>
    %c0_35 = arith.constant 0 : index
    %c0_36 = arith.constant 0 : index
    %29 = vector.load %arg13[%c0_35, %c0_36] : memref<224x512xf32, #tpu.memory_space<vmem>>, vector<224x512xf32>
    tpu.vector_store %arg13[%c0_35, %c0_36], %28 {strides = array<i32>} : memref<224x512xf32, #tpu.memory_space<vmem>>, vector<224x512xf32>,
    %c4 = arith.constant 4 : index
    %c0_37 = arith.constant 0 : index
    %c0_38 = arith.constant 0 : index
    %30 = vector.load %arg1[%c4, %c0_37, %c0_38] : memref<32x8x128xbf16, #tpu.memory_space<vmem>>, vector<28x8x128xbf16>
    %31 = vector.shape_cast %30 : vector<28x8x128xbf16> to vector<224x128xbf16>
    %c4_39 = arith.constant 4 : index
    %c0_40 = arith.constant 0 : index
    %c0_41 = arith.constant 0 : index
    %32 = vector.load %arg2[%c4_39, %c0_40, %c0_41] : memref<5x128x512xbf16, #tpu.memory_space<vmem>>, vector<1x128x512xbf16>
    %33 = vector.shape_cast %32 : vector<1x128x512xbf16> to vector<128x512xbf16>
    %cst_42 = arith.constant dense<0.000000e+00> : vector<224x512xf32>
    %34 = tpu.matmul %31, %33, %cst_42 {dimension_numbers = #tpu.dot_dimension_numbers<[1], [0], [0], [1], [0, 0, 1, 1], [], []>} : vector<224x128xbf16>, vector<128x512xbf16>, vector<224x512xf32> -> vector<224x512xf32>
    %c0_43 = arith.constant 0 : index
    %c0_44 = arith.constant 0 : index
    %35 = vector.load %arg13[%c0_43, %c0_44] : memref<224x512xf32, #tpu.memory_space<vmem>>, vector<224x512xf32>
    %36 = arith.addf %35, %34 : vector<224x512xf32>
    %c0_45 = arith.constant 0 : index
    %c0_46 = arith.constant 0 : index
    %37 = vector.load %arg13[%c0_45, %c0_46] : memref<224x512xf32, #tpu.memory_space<vmem>>, vector<224x512xf32>
    tpu.vector_store %arg13[%c0_45, %c0_46], %36 {strides = array<i32>} : memref<224x512xf32, #tpu.memory_space<vmem>>, vector<224x512xf32>,
    %c0_47 = arith.constant 0 : index
    %c0_48 = arith.constant 0 : index
    %38 = vector.load %arg13[%c0_47, %c0_48] : memref<224x512xf32, #tpu.memory_space<vmem>>, vector<224x512xf32>
    %39 = vector.shape_cast %38 : vector<224x512xf32> to vector<14x16x512xf32>
    %40 = vector.extract_strided_slice %39 {offsets = [0, 0, 0], sizes = [14, 8, 512], strides = [1, 1, 1]} : vector<14x16x512xf32> to vector<14x8x512xf32>
    %41 = vector.extract_strided_slice %39 {offsets = [0, 8, 0], sizes = [14, 8, 512], strides = [1, 1, 1]} : vector<14x16x512xf32> to vector<14x8x512xf32>
    %42 = arith.maximumf %40, %41 : vector<14x8x512xf32>
    %43 = vector.extract_strided_slice %42 {offsets = [0, 0, 0], sizes = [14, 8, 256], strides = [1, 1, 1]} : vector<14x8x512xf32> to vector<14x8x256xf32>
    %44 = vector.extract_strided_slice %42 {offsets = [0, 0, 256], sizes = [14, 8, 256], strides = [1, 1, 1]} : vector<14x8x512xf32> to vector<14x8x256xf32>
    %45 = arith.maximumf %43, %44 : vector<14x8x256xf32>
    %c0_49 = arith.constant 0 : index
    %c0_50 = arith.constant 0 : index
    %46 = vector.load %arg3[%c0_49, %c0_50] : memref<1x256xf32, #tpu.memory_space<vmem>>, vector<1x256xf32>
    %47 = vector.shape_cast %46 : vector<1x256xf32> to vector<1x1x256xf32>
    %48 = vector.broadcast %47 : vector<1x1x256xf32> to vector<14x8x256xf32>
    %49 = arith.addf %45, %48 : vector<14x8x256xf32>
    %cst_51 = arith.constant 0.000000e+00 : f32
    %50 = vector.broadcast %cst_51 : f32 to vector<14x8x256xf32>
    %51 = arith.maximumf %49, %50 : vector<14x8x256xf32>
    %52 = vector.shape_cast %51 : vector<14x8x256xf32> to vector<112x256xf32>
    %53 = arith.truncf %52 : vector<112x256xf32> to vector<112x256xbf16>
    %c0_52 = arith.constant 0 : index
    %c0_53 = arith.constant 0 : index
    %54 = vector.load %arg14[%c0_52, %c0_53] : memref<112x256xbf16, #tpu.memory_space<vmem>>, vector<112x256xbf16>
    tpu.vector_store %arg14[%c0_52, %c0_53], %53 {strides = array<i32>} : memref<112x256xbf16, #tpu.memory_space<vmem>>, vector<112x256xbf16>,
    %c0_54 = arith.constant 0 : index
    %c0_55 = arith.constant 0 : index
    %55 = vector.load %arg14[%c0_54, %c0_55] : memref<112x256xbf16, #tpu.memory_space<vmem>>, vector<80x256xbf16>
    %c0_56 = arith.constant 0 : index
    %c0_57 = arith.constant 0 : index
    %c0_58 = arith.constant 0 : index
    %56 = vector.load %arg4[%c0_56, %c0_57, %c0_58] : memref<5x256x256xbf16, #tpu.memory_space<vmem>>, vector<1x256x256xbf16>
    %57 = vector.shape_cast %56 : vector<1x256x256xbf16> to vector<256x256xbf16>
    %cst_59 = arith.constant dense<0.000000e+00> : vector<80x256xf32>
    %58 = tpu.matmul %55, %57, %cst_59 {dimension_numbers = #tpu.dot_dimension_numbers<[1], [0], [0], [1], [0, 0, 1, 1], [], []>} : vector<80x256xbf16>, vector<256x256xbf16>, vector<80x256xf32> -> vector<80x256xf32>
    %c0_60 = arith.constant 0 : index
    %c0_61 = arith.constant 0 : index
    %59 = vector.load %arg15[%c0_60, %c0_61] : memref<80x256xf32, #tpu.memory_space<vmem>>, vector<80x256xf32>
    tpu.vector_store %arg15[%c0_60, %c0_61], %58 {strides = array<i32>} : memref<80x256xf32, #tpu.memory_space<vmem>>, vector<80x256xf32>,
    %c8 = arith.constant 8 : index
    %c0_62 = arith.constant 0 : index
    %60 = vector.load %arg14[%c8, %c0_62] : memref<112x256xbf16, #tpu.memory_space<vmem>>, vector<80x256xbf16>
    %c1_63 = arith.constant 1 : index
    %c0_64 = arith.constant 0 : index
    %c0_65 = arith.constant 0 : index
    %61 = vector.load %arg4[%c1_63, %c0_64, %c0_65] : memref<5x256x256xbf16, #tpu.memory_space<vmem>>, vector<1x256x256xbf16>
    %62 = vector.shape_cast %61 : vector<1x256x256xbf16> to vector<256x256xbf16>
    %cst_66 = arith.constant dense<0.000000e+00> : vector<80x256xf32>
    %63 = tpu.matmul %60, %62, %cst_66 {dimension_numbers = #tpu.dot_dimension_numbers<[1], [0], [0], [1], [0, 0, 1, 1], [], []>} : vector<80x256xbf16>, vector<256x256xbf16>, vector<80x256xf32> -> vector<80x256xf32>
    %c0_67 = arith.constant 0 : index
    %c0_68 = arith.constant 0 : index
    %64 = vector.load %arg15[%c0_67, %c0_68] : memref<80x256xf32, #tpu.memory_space<vmem>>, vector<80x256xf32>
    %65 = arith.addf %64, %63 : vector<80x256xf32>
    %c0_69 = arith.constant 0 : index
    %c0_70 = arith.constant 0 : index
    %66 = vector.load %arg15[%c0_69, %c0_70] : memref<80x256xf32, #tpu.memory_space<vmem>>, vector<80x256xf32>
    tpu.vector_store %arg15[%c0_69, %c0_70], %65 {strides = array<i32>} : memref<80x256xf32, #tpu.memory_space<vmem>>, vector<80x256xf32>,
    %c16 = arith.constant 16 : index
    %c0_71 = arith.constant 0 : index
    %67 = vector.load %arg14[%c16, %c0_71] : memref<112x256xbf16, #tpu.memory_space<vmem>>, vector<80x256xbf16>
    %c2_72 = arith.constant 2 : index
    %c0_73 = arith.constant 0 : index
    %c0_74 = arith.constant 0 : index
    %68 = vector.load %arg4[%c2_72, %c0_73, %c0_74] : memref<5x256x256xbf16, #tpu.memory_space<vmem>>, vector<1x256x256xbf16>
    %69 = vector.shape_cast %68 : vector<1x256x256xbf16> to vector<256x256xbf16>
    %cst_75 = arith.constant dense<0.000000e+00> : vector<80x256xf32>
    %70 = tpu.matmul %67, %69, %cst_75 {dimension_numbers = #tpu.dot_dimension_numbers<[1], [0], [0], [1], [0, 0, 1, 1], [], []>} : vector<80x256xbf16>, vector<256x256xbf16>, vector<80x256xf32> -> vector<80x256xf32>
    %c0_76 = arith.constant 0 : index
    %c0_77 = arith.constant 0 : index
    %71 = vector.load %arg15[%c0_76, %c0_77] : memref<80x256xf32, #tpu.memory_space<vmem>>, vector<80x256xf32>
    %72 = arith.addf %71, %70 : vector<80x256xf32>
    %c0_78 = arith.constant 0 : index
    %c0_79 = arith.constant 0 : index
    %73 = vector.load %arg15[%c0_78, %c0_79] : memref<80x256xf32, #tpu.memory_space<vmem>>, vector<80x256xf32>
    tpu.vector_store %arg15[%c0_78, %c0_79], %72 {strides = array<i32>} : memref<80x256xf32, #tpu.memory_space<vmem>>, vector<80x256xf32>,
    %c24 = arith.constant 24 : index
    %c0_80 = arith.constant 0 : index
    %74 = vector.load %arg14[%c24, %c0_80] : memref<112x256xbf16, #tpu.memory_space<vmem>>, vector<80x256xbf16>
    %c3_81 = arith.constant 3 : index
    %c0_82 = arith.constant 0 : index
    %c0_83 = arith.constant 0 : index
    %75 = vector.load %arg4[%c3_81, %c0_82, %c0_83] : memref<5x256x256xbf16, #tpu.memory_space<vmem>>, vector<1x256x256xbf16>
    %76 = vector.shape_cast %75 : vector<1x256x256xbf16> to vector<256x256xbf16>
    %cst_84 = arith.constant dense<0.000000e+00> : vector<80x256xf32>
    %77 = tpu.matmul %74, %76, %cst_84 {dimension_numbers = #tpu.dot_dimension_numbers<[1], [0], [0], [1], [0, 0, 1, 1], [], []>} : vector<80x256xbf16>, vector<256x256xbf16>, vector<80x256xf32> -> vector<80x256xf32>
    %c0_85 = arith.constant 0 : index
    %c0_86 = arith.constant 0 : index
    %78 = vector.load %arg15[%c0_85, %c0_86] : memref<80x256xf32, #tpu.memory_space<vmem>>, vector<80x256xf32>
    %79 = arith.addf %78, %77 : vector<80x256xf32>
    %c0_87 = arith.constant 0 : index
    %c0_88 = arith.constant 0 : index
    %80 = vector.load %arg15[%c0_87, %c0_88] : memref<80x256xf32, #tpu.memory_space<vmem>>, vector<80x256xf32>
    tpu.vector_store %arg15[%c0_87, %c0_88], %79 {strides = array<i32>} : memref<80x256xf32, #tpu.memory_space<vmem>>, vector<80x256xf32>,
    %c32 = arith.constant 32 : index
    %c0_89 = arith.constant 0 : index
    %81 = vector.load %arg14[%c32, %c0_89] : memref<112x256xbf16, #tpu.memory_space<vmem>>, vector<80x256xbf16>
    %c4_90 = arith.constant 4 : index
    %c0_91 = arith.constant 0 : index
    %c0_92 = arith.constant 0 : index
    %82 = vector.load %arg4[%c4_90, %c0_91, %c0_92] : memref<5x256x256xbf16, #tpu.memory_space<vmem>>, vector<1x256x256xbf16>
    %83 = vector.shape_cast %82 : vector<1x256x256xbf16> to vector<256x256xbf16>
    %cst_93 = arith.constant dense<0.000000e+00> : vector<80x256xf32>
    %84 = tpu.matmul %81, %83, %cst_93 {dimension_numbers = #tpu.dot_dimension_numbers<[1], [0], [0], [1], [0, 0, 1, 1], [], []>} : vector<80x256xbf16>, vector<256x256xbf16>, vector<80x256xf32> -> vector<80x256xf32>
    %c0_94 = arith.constant 0 : index
    %c0_95 = arith.constant 0 : index
    %85 = vector.load %arg15[%c0_94, %c0_95] : memref<80x256xf32, #tpu.memory_space<vmem>>, vector<80x256xf32>
    %86 = arith.addf %85, %84 : vector<80x256xf32>
    %c0_96 = arith.constant 0 : index
    %c0_97 = arith.constant 0 : index
    %87 = vector.load %arg15[%c0_96, %c0_97] : memref<80x256xf32, #tpu.memory_space<vmem>>, vector<80x256xf32>
    tpu.vector_store %arg15[%c0_96, %c0_97], %86 {strides = array<i32>} : memref<80x256xf32, #tpu.memory_space<vmem>>, vector<80x256xf32>,
    %c0_98 = arith.constant 0 : index
    %c0_99 = arith.constant 0 : index
    %88 = vector.load %arg15[%c0_98, %c0_99] : memref<80x256xf32, #tpu.memory_space<vmem>>, vector<80x256xf32>
    %89 = vector.shape_cast %88 : vector<80x256xf32> to vector<5x16x256xf32>
    %90 = vector.extract_strided_slice %89 {offsets = [0, 0, 0], sizes = [5, 8, 256], strides = [1, 1, 1]} : vector<5x16x256xf32> to vector<5x8x256xf32>
    %91 = vector.extract_strided_slice %89 {offsets = [0, 8, 0], sizes = [5, 8, 256], strides = [1, 1, 1]} : vector<5x16x256xf32> to vector<5x8x256xf32>
    %92 = arith.maximumf %90, %91 : vector<5x8x256xf32>
    %93 = vector.extract_strided_slice %92 {offsets = [0, 0, 0], sizes = [5, 8, 128], strides = [1, 1, 1]} : vector<5x8x256xf32> to vector<5x8x128xf32>
    %94 = vector.extract_strided_slice %92 {offsets = [0, 0, 128], sizes = [5, 8, 128], strides = [1, 1, 1]} : vector<5x8x256xf32> to vector<5x8x128xf32>
    %95 = arith.maximumf %93, %94 : vector<5x8x128xf32>
    %c0_100 = arith.constant 0 : index
    %c0_101 = arith.constant 0 : index
    %96 = vector.load %arg5[%c0_100, %c0_101] : memref<1x128xf32, #tpu.memory_space<vmem>>, vector<1x128xf32>
    %97 = vector.shape_cast %96 : vector<1x128xf32> to vector<1x1x128xf32>
    %98 = vector.broadcast %97 : vector<1x1x128xf32> to vector<5x8x128xf32>
    %99 = arith.addf %95, %98 : vector<5x8x128xf32>
    %cst_102 = arith.constant 0.000000e+00 : f32
    %100 = vector.broadcast %cst_102 : f32 to vector<5x8x128xf32>
    %101 = arith.maximumf %99, %100 : vector<5x8x128xf32>
    %102 = arith.truncf %101 : vector<5x8x128xf32> to vector<5x8x128xbf16>
    %103 = vector.extract_strided_slice %102 {offsets = [0, 0, 0], sizes = [1, 8, 128], strides = [1, 1, 1]} : vector<5x8x128xbf16> to vector<1x8x128xbf16>
    %104 = vector.shape_cast %103 : vector<1x8x128xbf16> to vector<8x128xbf16>
    %c0_103 = arith.constant 0 : index
    %c0_104 = arith.constant 0 : index
    %c0_105 = arith.constant 0 : index
    %105 = vector.load %arg6[%c0_103, %c0_104, %c0_105] : memref<5x128x128xbf16, #tpu.memory_space<vmem>>, vector<1x128x128xbf16>
    %106 = vector.shape_cast %105 : vector<1x128x128xbf16> to vector<128x128xbf16>
    %cst_106 = arith.constant dense<0.000000e+00> : vector<8x128xf32>
    %107 = tpu.matmul %104, %106, %cst_106 {dimension_numbers = #tpu.dot_dimension_numbers<[1], [0], [0], [1], [0, 0, 1, 1], [], []>} : vector<8x128xbf16>, vector<128x128xbf16>, vector<8x128xf32> -> vector<8x128xf32>
    %108 = vector.extract_strided_slice %102 {offsets = [1, 0, 0], sizes = [1, 8, 128], strides = [1, 1, 1]} : vector<5x8x128xbf16> to vector<1x8x128xbf16>
    %109 = vector.shape_cast %108 : vector<1x8x128xbf16> to vector<8x128xbf16>
    %c1_107 = arith.constant 1 : index
    %c0_108 = arith.constant 0 : index
    %c0_109 = arith.constant 0 : index
    %110 = vector.load %arg6[%c1_107, %c0_108, %c0_109] : memref<5x128x128xbf16, #tpu.memory_space<vmem>>, vector<1x128x128xbf16>
    %111 = vector.shape_cast %110 : vector<1x128x128xbf16> to vector<128x128xbf16>
    %cst_110 = arith.constant dense<0.000000e+00> : vector<8x128xf32>
    %112 = tpu.matmul %109, %111, %cst_110 {dimension_numbers = #tpu.dot_dimension_numbers<[1], [0], [0], [1], [0, 0, 1, 1], [], []>} : vector<8x128xbf16>, vector<128x128xbf16>, vector<8x128xf32> -> vector<8x128xf32>
    %113 = arith.addf %107, %112 : vector<8x128xf32>
    %114 = vector.extract_strided_slice %102 {offsets = [2, 0, 0], sizes = [1, 8, 128], strides = [1, 1, 1]} : vector<5x8x128xbf16> to vector<1x8x128xbf16>
    %115 = vector.shape_cast %114 : vector<1x8x128xbf16> to vector<8x128xbf16>
    %c2_111 = arith.constant 2 : index
    %c0_112 = arith.constant 0 : index
    %c0_113 = arith.constant 0 : index
    %116 = vector.load %arg6[%c2_111, %c0_112, %c0_113] : memref<5x128x128xbf16, #tpu.memory_space<vmem>>, vector<1x128x128xbf16>
    %117 = vector.shape_cast %116 : vector<1x128x128xbf16> to vector<128x128xbf16>
    %cst_114 = arith.constant dense<0.000000e+00> : vector<8x128xf32>
    %118 = tpu.matmul %115, %117, %cst_114 {dimension_numbers = #tpu.dot_dimension_numbers<[1], [0], [0], [1], [0, 0, 1, 1], [], []>} : vector<8x128xbf16>, vector<128x128xbf16>, vector<8x128xf32> -> vector<8x128xf32>
    %119 = arith.addf %113, %118 : vector<8x128xf32>
    %120 = vector.extract_strided_slice %102 {offsets = [3, 0, 0], sizes = [1, 8, 128], strides = [1, 1, 1]} : vector<5x8x128xbf16> to vector<1x8x128xbf16>
    %121 = vector.shape_cast %120 : vector<1x8x128xbf16> to vector<8x128xbf16>
    %c3_115 = arith.constant 3 : index
    %c0_116 = arith.constant 0 : index
    %c0_117 = arith.constant 0 : index
    %122 = vector.load %arg6[%c3_115, %c0_116, %c0_117] : memref<5x128x128xbf16, #tpu.memory_space<vmem>>, vector<1x128x128xbf16>
    %123 = vector.shape_cast %122 : vector<1x128x128xbf16> to vector<128x128xbf16>
    %cst_118 = arith.constant dense<0.000000e+00> : vector<8x128xf32>
    %124 = tpu.matmul %121, %123, %cst_118 {dimension_numbers = #tpu.dot_dimension_numbers<[1], [0], [0], [1], [0, 0, 1, 1], [], []>} : vector<8x128xbf16>, vector<128x128xbf16>, vector<8x128xf32> -> vector<8x128xf32>
    %125 = arith.addf %119, %124 : vector<8x128xf32>
    %126 = vector.extract_strided_slice %102 {offsets = [4, 0, 0], sizes = [1, 8, 128], strides = [1, 1, 1]} : vector<5x8x128xbf16> to vector<1x8x128xbf16>
    %127 = vector.shape_cast %126 : vector<1x8x128xbf16> to vector<8x128xbf16>
    %c4_119 = arith.constant 4 : index
    %c0_120 = arith.constant 0 : index
    %c0_121 = arith.constant 0 : index
    %128 = vector.load %arg6[%c4_119, %c0_120, %c0_121] : memref<5x128x128xbf16, #tpu.memory_space<vmem>>, vector<1x128x128xbf16>
    %129 = vector.shape_cast %128 : vector<1x128x128xbf16> to vector<128x128xbf16>
    %cst_122 = arith.constant dense<0.000000e+00> : vector<8x128xf32>
    %130 = tpu.matmul %127, %129, %cst_122 {dimension_numbers = #tpu.dot_dimension_numbers<[1], [0], [0], [1], [0, 0, 1, 1], [], []>} : vector<8x128xbf16>, vector<128x128xbf16>, vector<8x128xf32> -> vector<8x128xf32>
    %131 = arith.addf %125, %130 : vector<8x128xf32>
    %c0_123 = arith.constant 0 : index
    %c0_124 = arith.constant 0 : index
    %132 = vector.load %arg7[%c0_123, %c0_124] : memref<1x128xf32, #tpu.memory_space<vmem>>, vector<1x128xf32>
    %133 = vector.broadcast %132 : vector<1x128xf32> to vector<8x128xf32>
    %134 = arith.addf %131, %133 : vector<8x128xf32>
    %cst_125 = arith.constant 0.000000e+00 : f32
    %135 = vector.broadcast %cst_125 : f32 to vector<8x128xf32>
    %136 = arith.maximumf %134, %135 : vector<8x128xf32>
    %137 = arith.truncf %136 : vector<8x128xf32> to vector<8x128xbf16>
    %c0_126 = arith.constant 0 : index
    %c0_127 = arith.constant 0 : index
    %138 = vector.load %arg8[%c0_126, %c0_127] : memref<128x128xbf16, #tpu.memory_space<vmem>>, vector<128x128xbf16>
    %cst_128 = arith.constant dense<0.000000e+00> : vector<8x128xf32>
    %139 = tpu.matmul %137, %138, %cst_128 {dimension_numbers = #tpu.dot_dimension_numbers<[1], [0], [0], [1], [0, 0, 1, 1], [], []>} : vector<8x128xbf16>, vector<128x128xbf16>, vector<8x128xf32> -> vector<8x128xf32>
    %c0_129 = arith.constant 0 : index
    %c0_130 = arith.constant 0 : index
    %140 = vector.load %arg9[%c0_129, %c0_130] : memref<1x128xf32, #tpu.memory_space<vmem>>, vector<1x128xf32>
    %141 = vector.broadcast %140 : vector<1x128xf32> to vector<8x128xf32>
    %142 = arith.addf %139, %141 : vector<8x128xf32>
    %cst_131 = arith.constant 0.000000e+00 : f32
    %143 = vector.broadcast %cst_131 : f32 to vector<8x128xf32>
    %144 = arith.maximumf %142, %143 : vector<8x128xf32>
    %145 = arith.truncf %144 : vector<8x128xf32> to vector<8x128xbf16>
    %c0_132 = arith.constant 0 : index
    %c0_133 = arith.constant 0 : index
    %146 = vector.load %arg10[%c0_132, %c0_133] : memref<128x128xbf16, #tpu.memory_space<vmem>>, vector<128x128xbf16>
    %cst_134 = arith.constant dense<0.000000e+00> : vector<8x128xf32>
    %147 = tpu.matmul %145, %146, %cst_134 {dimension_numbers = #tpu.dot_dimension_numbers<[1], [0], [0], [1], [0, 0, 1, 1], [], []>} : vector<8x128xbf16>, vector<128x128xbf16>, vector<8x128xf32> -> vector<8x128xf32>
    %c0_135 = arith.constant 0 : index
    %c0_136 = arith.constant 0 : index
    %148 = vector.load %arg11[%c0_135, %c0_136] : memref<1x128xf32, #tpu.memory_space<vmem>>, vector<1x128xf32>
    %149 = vector.broadcast %148 : vector<1x128xf32> to vector<8x128xf32>
    %150 = arith.addf %147, %149 : vector<8x128xf32>
    %c0_137 = arith.constant 0 : index
    %c0_138 = arith.constant 0 : index
    %151 = vector.load %arg12[%c0_137, %c0_138] : memref<8x128xf32, #tpu.memory_space<vmem>>, vector<8x128xf32>
    tpu.vector_store %arg12[%c0_137, %c0_138], %150 {strides = array<i32>} : memref<8x128xf32, #tpu.memory_space<vmem>>, vector<8x128xf32>,
    return
  }
  func.func @transform_0(%arg0: i32) -> (i32, i32, i32) {
    %c0_i32 = arith.constant 0 : i32
    %c0_i32_0 = arith.constant 0 : i32
    %c0_i32_1 = arith.constant 0 : i32
    return %c0_i32, %arg0, %c0_i32_0 : i32, i32, i32
  }
  func.func @transform_1(%arg0: i32) -> (i32, i32, i32) {
    %c0_i32 = arith.constant 0 : i32
    %c0_i32_0 = arith.constant 0 : i32
    %c0_i32_1 = arith.constant 0 : i32
    %c0_i32_2 = arith.constant 0 : i32
    return %c0_i32, %c0_i32_0, %c0_i32_1 : i32, i32, i32
  }
  func.func @transform_2(%arg0: i32) -> (i32, i32) {
    %c0_i32 = arith.constant 0 : i32
    %c0_i32_0 = arith.constant 0 : i32
    %c0_i32_1 = arith.constant 0 : i32
    return %c0_i32, %c0_i32_0 : i32, i32
  }
  func.func @transform_3(%arg0: i32) -> (i32, i32, i32) {
    %c0_i32 = arith.constant 0 : i32
    %c0_i32_0 = arith.constant 0 : i32
    %c0_i32_1 = arith.constant 0 : i32
    %c0_i32_2 = arith.constant 0 : i32
    return %c0_i32, %c0_i32_0, %c0_i32_1 : i32, i32, i32
  }
  func.func @transform_4(%arg0: i32) -> (i32, i32) {
    %c0_i32 = arith.constant 0 : i32
    %c0_i32_0 = arith.constant 0 : i32
    %c0_i32_1 = arith.constant 0 : i32
    return %c0_i32, %c0_i32_0 : i32, i32
  }
  func.func @transform_5(%arg0: i32) -> (i32, i32, i32) {
    %c0_i32 = arith.constant 0 : i32
    %c0_i32_0 = arith.constant 0 : i32
    %c0_i32_1 = arith.constant 0 : i32
    %c0_i32_2 = arith.constant 0 : i32
    return %c0_i32, %c0_i32_0, %c0_i32_1 : i32, i32, i32
  }
  func.func @transform_6(%arg0: i32) -> (i32, i32) {
    %c0_i32 = arith.constant 0 : i32
    %c0_i32_0 = arith.constant 0 : i32
    %c0_i32_1 = arith.constant 0 : i32
    return %c0_i32, %c0_i32_0 : i32, i32
  }
  func.func @transform_7(%arg0: i32) -> (i32, i32) {
    %c0_i32 = arith.constant 0 : i32
    %c0_i32_0 = arith.constant 0 : i32
    %c0_i32_1 = arith.constant 0 : i32
    return %c0_i32, %c0_i32_0 : i32, i32
  }
  func.func @transform_8(%arg0: i32) -> (i32, i32) {
    %c0_i32 = arith.constant 0 : i32
    %c0_i32_0 = arith.constant 0 : i32
    %c0_i32_1 = arith.constant 0 : i32
    return %c0_i32, %c0_i32_0 : i32, i32
  }
  func.func @transform_9(%arg0: i32) -> (i32, i32) {
    %c0_i32 = arith.constant 0 : i32
    %c0_i32_0 = arith.constant 0 : i32
    %c0_i32_1 = arith.constant 0 : i32
    return %c0_i32, %c0_i32_0 : i32, i32
  }
  func.func @transform_10(%arg0: i32) -> (i32, i32) {
    %c0_i32 = arith.constant 0 : i32
    %c0_i32_0 = arith.constant 0 : i32
    %c0_i32_1 = arith.constant 0 : i32
    return %c0_i32, %c0_i32_0 : i32, i32
  }
  func.func @transform_11(%arg0: i32) -> (i32, i32) {
    %c0_i32 = arith.constant 0 : i32
    %c0_i32_0 = arith.constant 0 : i32
    return %arg0, %c0_i32 : i32, i32
  }
}

</mosaic_0001>

<bundles_post_ra>
// kernel: net_forward.1
= control target key start
LH: loop header
LB: loop body
LE: loop exit
PB: predicated region body
PF: predicated region fallthrough
CT: control target
= control target key end

     0   :  { %16 = vsyncpa [#allocation6], 0  ;;  %s9786_s17 = smov [#allocation5]   ;;  %s11154_s0 = inlined_call_operand.vmem [shape: bf16[32,8,128], index: 0, kind: input, shape index: {}]   ;;  %s11155_s1 = inlined_call_operand.vmem [shape: bf16[5,128,512], index: 1, kind: input, shape index: {}]   ;;  %s11156_s2 = inlined_call_operand.vmem [shape: f32[1,256], index: 2, kind: input, shape index: {}]   ;;  %s11157_s3 = inlined_call_operand.hbm [shape: bf16[5,256,256], index: 3, kind: input, shape index: {}]   ;;  %s11158_s4 = inlined_call_operand.vmem [shape: f32[1,128], index: 4, kind: input, shape index: {}]   ;;  %s11159_s5 = inlined_call_operand.vmem [shape: bf16[5,128,128], index: 5, kind: input, shape index: {}]   ;;  %s11160_s6 = inlined_call_operand.vmem [shape: f32[1,128], index: 6, kind: input, shape index: {}]   ;;  %s11161_s7 = inlined_call_operand.vmem [shape: bf16[128,128], index: 7, kind: input, shape index: {}]   ;;  %s11162_s8 = inlined_call_operand.vmem [shape: f32[1,128], index: 8, kind: input, shape index: {}]   ;;  %s11163_s9 = inlined_call_operand.vmem [shape: bf16[128,128], index: 9, kind: input, shape index: {}]   ;;  %s11164_s10 = inlined_call_operand.vmem [shape: f32[1,128], index: 10, kind: input, shape index: {}]   ;;  %s11165_s11 = inlined_call_operand.vmem [shape: f32[8,128], index: 11, kind: output, shape index: {}]  }
   0x1   :  { %s28_s18 = sshll.u32 %s9786_s17, 4  ;;  %s9762_s21 = scalar_lea.hbm %s11157_s3, 20480  ;;  %s29_s18 = int_to_ptr.vmem [resolvable:$true] %s28_s18 }
   0x2   :  { %p9763_p0 = scmp.ne.s32.totalorder %s11157_s3, %s9762_s21  ;;  %p9766_p1 = scmp.lt.u32.totalorder %s9762_s21, %s11157_s3 }
   0x4   :  { %p9768_p2 = pnand %p9766_p1, %p9763_p0 }
   0x6   :  { %9771 = shalt.err (!%p9768_p2)
}
   0x7   :  { %s9772_s26 = scalar_lea.vmem %s29_s18, 20480  ;;  %p9777_p4 = scmp.lt.s32.totalorder %s29_s18, %s29_s18 }
   0x8   :  { %p9773_p3 = scmp.ne.s32.totalorder %s29_s18, %s9772_s26  ;;  %p9778_p5 = scmp.lt.s32.totalorder %s9772_s26, %s9772_s26 }
   0xa   :  { %p9779_p6 = por %p9778_p5, %p9777_p4 }
   0xc   :  { %p9780_p7 = pnand %p9779_p6, %p9773_p3 }
   0xe   :  { %9783 = shalt.err (!%p9780_p7)
}
   0xf   :  { %s9787_s27 = smov 128   ;;  %s9788_s28 = smov 8  }
  0x10   :  { %34 = dma.hbm_to_vmem [thread:$0]  %s11157_s3, 20480, %s29_s18, [#allocation6], %s9787_s27, %s9787_s27, %s9788_s28  }
  0x11   :  { %9784 = dma.done.wait [#allocation6], 20480  }
  0x12   :  { %9785 = vsyncadd [#allocation6], 4294946816  ;;  %v9789_v0 = vmov 0   ;;  %v9156_v1 = vld [vmem:[%s11155_s1 + $0x4] ss:$16 sps:$4 sm:$0xff]   ;;  %v9211_v44 = vld [vmem:[%s11154_s0 + $0x8] sm:$0xff]  }
  0x13   :  { %389 = vmatprep.mubr.bf16.mxu0 %v9789_v0  ;;  %562 = vmatprep.mubr.bf16.mxu1 %v9789_v0  ;;  %v9158_v2 = vld [vmem:[%s11155_s1 + $0xc] ss:$16 sps:$4 sm:$0xff]   ;;  %v9160_v3 = vld [vmem:[%s11155_s1] ss:$16 sps:$4 sm:$0xff]   ;;  %v9161_v4 = vld [vmem:[%s11155_s1 + $0x8] ss:$16 sps:$4 sm:$0xff]  }
  0x14   :  { %357 = vmatprep.subr.bf16.mxu0 %v9156_v1  ;;  %530 = vmatprep.subr.bf16.mxu1 %v9158_v2  ;;  %v9162_v5 = vld [vmem:[%s11155_s1 + $0x24] ss:$16 sps:$4 sm:$0xff]   ;;  %v9164_v6 = vld [vmem:[%s11155_s1 + $0x2c] ss:$16 sps:$4 sm:$0xff]   ;;  %v9166_v7 = vld [vmem:[%s11155_s1 + $0x20] ss:$16 sps:$4 sm:$0xff]  }
  0x15   :  { %358 = vmatpush1.bf16.msra.mxu0 %v9160_v3  ;;  %531 = vmatpush1.bf16.msra.mxu1 %v9161_v4  ;;  %v9167_v8 = vld [vmem:[%s11155_s1 + $0x28] ss:$16 sps:$4 sm:$0xff]   ;;  %v9168_v9 = vld [vmem:[%s11155_s1 + $0x44] ss:$16 sps:$4 sm:$0xff]   ;;  %v9170_v10 = vld [vmem:[%s11155_s1 + $0x4c] ss:$16 sps:$4 sm:$0xff]  }
  0x16   :  { %359 = vmatprep.subr.bf16.mxu0 %v9162_v5  ;;  %532 = vmatprep.subr.bf16.mxu1 %v9164_v6  ;;  %v9172_v11 = vld [vmem:[%s11155_s1 + $0x40] ss:$16 sps:$4 sm:$0xff]   ;;  %v9173_v12 = vld [vmem:[%s11155_s1 + $0x48] ss:$16 sps:$4 sm:$0xff]   ;;  %v9174_v13 = vld [vmem:[%s11155_s1 + $0x64] ss:$16 sps:$4 sm:$0xff]  }
  0x17   :  { %v9176_v14 = vld [vmem:[%s11155_s1 + $0x6c] ss:$16 sps:$4 sm:$0xff]   ;;  %v9178_v15 = vld [vmem:[%s11155_s1 + $0x60] ss:$16 sps:$4 sm:$0xff]   ;;  %v9179_v16 = vld [vmem:[%s11155_s1 + $0x68] ss:$16 sps:$4 sm:$0xff]  }
  0x18   :  { %v9180_v17 = vld [vmem:[%s11155_s1 + $0x84] ss:$16 sps:$4 sm:$0xff]   ;;  %v9182_v18 = vld [vmem:[%s11155_s1 + $0x8c] ss:$16 sps:$4 sm:$0xff]   ;;  %v9184_v19 = vld [vmem:[%s11155_s1 + $0x80] ss:$16 sps:$4 sm:$0xff]  }
  0x19   :  { %360 = vmatpush1.bf16.msra.mxu0 %v9166_v7  ;;  %533 = vmatpush1.bf16.msra.mxu1 %v9167_v8  ;;  %v9185_v20 = vld [vmem:[%s11155_s1 + $0x88] ss:$16 sps:$4 sm:$0xff]   ;;  %v9186_v21 = vld [vmem:[%s11155_s1 + $0xa4] ss:$16 sps:$4 sm:$0xff]   ;;  %v9188_v22 = vld [vmem:[%s11155_s1 + $0xac] ss:$16 sps:$4 sm:$0xff]  }
  0x1a   :  { %361 = vmatprep.subr.bf16.mxu0 %v9168_v9  ;;  %534 = vmatprep.subr.bf16.mxu1 %v9170_v10  ;;  %v9190_v23 = vld [vmem:[%s11155_s1 + $0xa0] ss:$16 sps:$4 sm:$0xff]   ;;  %v9191_v24 = vld [vmem:[%s11155_s1 + $0xa8] ss:$16 sps:$4 sm:$0xff]   ;;  %v9192_v25 = vld [vmem:[%s11155_s1 + $0xc4] ss:$16 sps:$4 sm:$0xff]  }
  0x1b   :  { %v9194_v26 = vld [vmem:[%s11155_s1 + $0xcc] ss:$16 sps:$4 sm:$0xff]   ;;  %v9196_v27 = vld [vmem:[%s11155_s1 + $0xc0] ss:$16 sps:$4 sm:$0xff]   ;;  %v9197_v28 = vld [vmem:[%s11155_s1 + $0xc8] ss:$16 sps:$4 sm:$0xff]  }
  0x1c   :  { %v9198_v29 = vld [vmem:[%s11155_s1 + $0xe4] ss:$16 sps:$4 sm:$0xff]   ;;  %v9200_v30 = vld [vmem:[%s11155_s1 + $0xec] ss:$16 sps:$4 sm:$0xff]   ;;  %v9202_v31 = vld [vmem:[%s11155_s1 + $0xe0] ss:$16 sps:$4 sm:$0xff]  }
  0x1d   :  { %362 = vmatpush1.bf16.msra.mxu0 %v9172_v11  ;;  %535 = vmatpush1.bf16.msra.mxu1 %v9173_v12  ;;  %v9203_v32 = vld [vmem:[%s11155_s1 + $0xe8] ss:$16 sps:$4 sm:$0xff]   ;;  %v9207_v33 = vld [vmem:[%s11155_s1 + $0x104] ss:$16 sps:$4 sm:$0xff]   ;;  %v9210_v34 = vld [vmem:[%s11155_s1 + $0x10c] ss:$16 sps:$4 sm:$0xff]  }
  0x1e   :  { %363 = vmatprep.subr.bf16.mxu0 %v9174_v13  ;;  %536 = vmatprep.subr.bf16.mxu1 %v9176_v14  ;;  %v9204_v35 = vld [vmem:[%s11154_s0] sm:$0xff]   ;;  %v9208_v37 = vld [vmem:[%s11155_s1 + $0x108] ss:$16 sps:$4 sm:$0xff]   ;;  %v9217_v39 = vld [vmem:[%s11155_s1 + $0x12c] ss:$16 sps:$4 sm:$0xff]   ;;  %vm5421_vm0 = vcmask 1043456  }
  0x1f   :  { %v9205_v36 = vld [vmem:[%s11155_s1 + $0x100] ss:$16 sps:$4 sm:$0xff]   ;;  %v9214_v38 = vld [vmem:[%s11155_s1 + $0x124] ss:$16 sps:$4 sm:$0xff]   ;;  %v9215_v41 = vld [vmem:[%s11155_s1 + $0x128] ss:$16 sps:$4 sm:$0xff]  }
  0x20   :  { %v9212_v40 = vld [vmem:[%s11155_s1 + $0x120] ss:$16 sps:$4 sm:$0xff]   ;;  %v9222_v42 = vld [vmem:[%s11155_s1 + $0x144] ss:$16 sps:$4 sm:$0xff]   ;;  %v9225_v43 = vld [vmem:[%s11155_s1 + $0x14c] ss:$16 sps:$4 sm:$0xff]  }
  0x21   :  { %364 = vmatpush1.bf16.msra.mxu0 %v9178_v15  ;;  %537 = vmatpush1.bf16.msra.mxu1 %v9179_v16  ;;  %v9220_v45 = vld [vmem:[%s11155_s1 + $0x140] ss:$16 sps:$4 sm:$0xff]   ;;  %v9223_v46 = vld [vmem:[%s11155_s1 + $0x148] ss:$16 sps:$4 sm:$0xff]   ;;  %v9230_v47 = vld [vmem:[%s11155_s1 + $0x164] ss:$16 sps:$4 sm:$0xff]  }
  0x22   :  { %365 = vmatprep.subr.bf16.mxu0 %v9180_v17  ;;  %538 = vmatprep.subr.bf16.mxu1 %v9182_v18  ;;  %v9233_v48 = vld [vmem:[%s11155_s1 + $0x16c] ss:$16 sps:$4 sm:$0xff]   ;;  %v9228_v49 = vld [vmem:[%s11155_s1 + $0x160] ss:$16 sps:$4 sm:$0xff]   ;;  %v9231_v50 = vld [vmem:[%s11155_s1 + $0x168] ss:$16 sps:$4 sm:$0xff]  }
  0x23   :  { %v9238_v51 = vld [vmem:[%s11155_s1 + $0x184] ss:$16 sps:$4 sm:$0xff]   ;;  %v9241_v52 = vld [vmem:[%s11155_s1 + $0x18c] ss:$16 sps:$4 sm:$0xff]   ;;  %v9236_v54 = vld [vmem:[%s11155_s1 + $0x180] ss:$16 sps:$4 sm:$0xff]  }
  0x24   :  { %v9218_v53 = vld [vmem:[%s11154_s0 + $0x10] sm:$0xff]   ;;  %v9239_v55 = vld [vmem:[%s11155_s1 + $0x188] ss:$16 sps:$4 sm:$0xff]   ;;  %v9248_v57 = vld [vmem:[%s11155_s1 + $0x1ac] ss:$16 sps:$4 sm:$0xff]   ;;  %vm9791_vm1 = vmmov 0  }
  0x25   :  { %366 = vmatpush1.bf16.msra.mxu0 %v9184_v19  ;;  %539 = vmatpush1.bf16.msra.mxu1 %v9185_v20  ;;  %v9245_v56 = vld [vmem:[%s11155_s1 + $0x1a4] ss:$16 sps:$4 sm:$0xff]   ;;  %v9243_v58 = vld [vmem:[%s11155_s1 + $0x1a0] ss:$16 sps:$4 sm:$0xff]   ;;  %v9246_v59 = vld [vmem:[%s11155_s1 + $0x1a8] ss:$16 sps:$4 sm:$0xff]  }
  0x26   :  { %367 = vmatprep.subr.bf16.mxu0 %v9186_v21  ;;  %540 = vmatprep.subr.bf16.mxu1 %v9188_v22  ;;  %v9253_v60 = vld [vmem:[%s11155_s1 + $0x1c4] ss:$16 sps:$4 sm:$0xff]   ;;  %v9256_v61 = vld [vmem:[%s11155_s1 + $0x1cc] ss:$16 sps:$4 sm:$0xff]   ;;  %v9251_v63 = vld [vmem:[%s11155_s1 + $0x1c0] ss:$16 sps:$4 sm:$0xff]  }
  0x27   :  { %v9219_v62 = vld [vmem:[%s11154_s0 + $0x18] sm:$0xff]   ;;  %v9261_v2 = vld [vmem:[%s11155_s1 + $0x1e4] ss:$16 sps:$4 sm:$0xff]   ;;  %v9259_v4 = vld [vmem:[%s11155_s1 + $0x1e0] ss:$16 sps:$4 sm:$0xff]  }
  0x28   :  { %v9254_v1 = vld [vmem:[%s11155_s1 + $0x1c8] ss:$16 sps:$4 sm:$0xff]   ;;  %v9264_v3 = vld [vmem:[%s11155_s1 + $0x1ec] ss:$16 sps:$4 sm:$0xff]   ;;  %v9269_v6 = vld [vmem:[%s11155_s1 + $0x204] ss:$16 sps:$4 sm:$0xff]  }
  0x29   :  { %368 = vmatpush1.bf16.msra.mxu0 %v9190_v23  ;;  %541 = vmatpush1.bf16.msra.mxu1 %v9191_v24  ;;  %v9262_v5 = vld [vmem:[%s11155_s1 + $0x1e8] ss:$16 sps:$4 sm:$0xff]   ;;  %v9272_v7 = vld [vmem:[%s11155_s1 + $0x20c] ss:$16 sps:$4 sm:$0xff]   ;;  %v9226_v8 = vld [vmem:[%s11154_s0 + $0x20] sm:$0xff]  }
  0x2a   :  { %369 = vmatprep.subr.bf16.mxu0 %v9192_v25  ;;  %542 = vmatprep.subr.bf16.mxu1 %v9194_v26  ;;  %v9227_v9 = vld [vmem:[%s11154_s0 + $0x28] sm:$0xff]   ;;  %v9234_v10 = vld [vmem:[%s11154_s0 + $0x30] sm:$0xff]   ;;  %v9235_v11 = vld [vmem:[%s11154_s0 + $0x38] sm:$0xff]  }
  0x2b   :  { %v9242_v12 = vld [vmem:[%s11154_s0 + $0x40] sm:$0xff]   ;;  %v9249_v13 = vld [vmem:[%s11154_s0 + $0x48] sm:$0xff]   ;;  %v9250_v14 = vld [vmem:[%s11154_s0 + $0x50] sm:$0xff]  }
  0x2c   :  { %v9257_v15 = vld [vmem:[%s11154_s0 + $0x58] sm:$0xff]   ;;  %v9258_v16 = vld [vmem:[%s11154_s0 + $0x60] sm:$0xff]   ;;  %v9265_v17 = vld [vmem:[%s11154_s0 + $0x68] sm:$0xff]  }
  0x2d   :  { %370 = vmatpush1.bf16.msra.mxu0 %v9196_v27  ;;  %543 = vmatpush1.bf16.msra.mxu1 %v9197_v28  ;;  %v9266_v18 = vld [vmem:[%s11154_s0 + $0x4] sm:$0xff]   ;;  %v9267_v19 = vld [vmem:[%s11155_s1 + $0x200] ss:$16 sps:$4 sm:$0xff]   ;;  %v9279_v22 = vld [vmem:[%s11155_s1 + $0x22c] ss:$16 sps:$4 sm:$0xff]  }
  0x2e   :  { %371 = vmatprep.subr.bf16.mxu0 %v9198_v29  ;;  %544 = vmatprep.subr.bf16.mxu1 %v9200_v30  ;;  %v9270_v20 = vld [vmem:[%s11155_s1 + $0x208] ss:$16 sps:$4 sm:$0xff]   ;;  %v9276_v21 = vld [vmem:[%s11155_s1 + $0x224] ss:$16 sps:$4 sm:$0xff]   ;;  %v9274_v23 = vld [vmem:[%s11155_s1 + $0x220] ss:$16 sps:$4 sm:$0xff]  }
  0x2f   :  { %v9277_v24 = vld [vmem:[%s11155_s1 + $0x228] ss:$16 sps:$4 sm:$0xff]   ;;  %v9284_v25 = vld [vmem:[%s11155_s1 + $0x244] ss:$16 sps:$4 sm:$0xff]   ;;  %v9287_v26 = vld [vmem:[%s11155_s1 + $0x24c] ss:$16 sps:$4 sm:$0xff]  }
  0x30   :  { %v9273_v27 = vld [vmem:[%s11154_s0 + $0xc] sm:$0xff]   ;;  %v9285_v29 = vld [vmem:[%s11155_s1 + $0x248] ss:$16 sps:$4 sm:$0xff]   ;;  %v9292_v30 = vld [vmem:[%s11155_s1 + $0x264] ss:$16 sps:$4 sm:$0xff]  }
  0x31   :  { %372 = vmatpush1.bf16.msra.mxu0 %v9202_v31  ;;  %545 = vmatpush1.bf16.msra.mxu1 %v9203_v32  ;;  %v9282_v28 = vld [vmem:[%s11155_s1 + $0x240] ss:$16 sps:$4 sm:$0xff]   ;;  %v9295_v31 = vld [vmem:[%s11155_s1 + $0x26c] ss:$16 sps:$4 sm:$0xff]  }
  0x32   :  { %1121 = vmatprep.subr.bf16.mxu0 %v9207_v33  ;;  %1294 = vmatprep.subr.bf16.mxu1 %v9210_v34  ;;  %v9290_v32 = vld [vmem:[%s11155_s1 + $0x260] ss:$16 sps:$4 sm:$0xff]   ;;  %v9293_v33 = vld [vmem:[%s11155_s1 + $0x268] ss:$16 sps:$4 sm:$0xff]   ;;  %v9300_v34 = vld [vmem:[%s11155_s1 + $0x284] ss:$16 sps:$4 sm:$0xff]  }
  0x34   :  { %390 = vmatmul.mubr.bf16.vlgmr.msra.gmra.mrb[0].mxu0 %v9204_v35  ;;  %563 = vmatmul.mubr.bf16.vlgmr.msra.gmra.mrb[0].mxu1 %v9204_v35  ;;  %v9303_v35 = vld [vmem:[%s11155_s1 + $0x28c] ss:$16 sps:$4 sm:$0xff]  }
  0x35   :  { %1122 = vmatpush1.bf16.msra.mxu0 %v9205_v36  ;;  %1295 = vmatpush1.bf16.msra.mxu1 %v9208_v37  ;;  %v9280_v36 = vld [vmem:[%s11154_s0 + $0x14] sm:$0xff]   ;;  %v9298_v37 = vld [vmem:[%s11155_s1 + $0x280] ss:$16 sps:$4 sm:$0xff]  }
  0x36   :  { %399 = vmatprep.mubr.bf16.mxu0 %v9789_v0  ;;  %572 = vmatprep.mubr.bf16.mxu1 %v9789_v0 }
  0x37   :  { %1123 = vmatprep.subr.bf16.mxu0 %v9214_v38  ;;  %1296 = vmatprep.subr.bf16.mxu1 %v9217_v39  ;;  %v9301_v38 = vld [vmem:[%s11155_s1 + $0x288] ss:$16 sps:$4 sm:$0xff]   ;;  %v9307_v39 = vld [vmem:[%s11155_s1 + $0x2a4] ss:$16 sps:$4 sm:$0xff]  }
  0x39   :  { %1124 = vmatpush1.bf16.msra.mxu0 %v9212_v40  ;;  %1297 = vmatpush1.bf16.msra.mxu1 %v9215_v41  ;;  %v9310_v40 = vld [vmem:[%s11155_s1 + $0x2ac] ss:$16 sps:$4 sm:$0xff]   ;;  %v9305_v41 = vld [vmem:[%s11155_s1 + $0x2a0] ss:$16 sps:$4 sm:$0xff]  }
  0x3a   :  { %1125 = vmatprep.subr.bf16.mxu0 %v9222_v42  ;;  %1298 = vmatprep.subr.bf16.mxu1 %v9225_v43  ;;  %v9308_v42 = vld [vmem:[%s11155_s1 + $0x2a8] ss:$16 sps:$4 sm:$0xff]   ;;  %v9315_v43 = vld [vmem:[%s11155_s1 + $0x2c4] ss:$16 sps:$4 sm:$0xff]  }
  0x3c   :  { %400 = vmatmul.mubr.bf16.gmra.mrb[4].mxu0 %v9211_v44  ;;  %573 = vmatmul.mubr.bf16.gmra.mrb[4].mxu1 %v9211_v44  ;;  %v9318_v44 = vld [vmem:[%s11155_s1 + $0x2cc] ss:$16 sps:$4 sm:$0xff]  }
  0x3d   :  { %409 = vmatprep.mubr.bf16.mxu0 %v9789_v0  ;;  %582 = vmatprep.mubr.bf16.mxu1 %v9789_v0 }
  0x3e   :  { %1126 = vmatpush1.bf16.msra.mxu0 %v9220_v45  ;;  %1299 = vmatpush1.bf16.msra.mxu1 %v9223_v46  ;;  %v9281_v45 = vld [vmem:[%s11154_s0 + $0x1c] sm:$0xff]  }
  0x3f   :  { %1127 = vmatprep.subr.bf16.mxu0 %v9230_v47  ;;  %1300 = vmatprep.subr.bf16.mxu1 %v9233_v48  ;;  %v9313_v46 = vld [vmem:[%s11155_s1 + $0x2c0] ss:$16 sps:$4 sm:$0xff]   ;;  %v9316_v47 = vld [vmem:[%s11155_s1 + $0x2c8] ss:$16 sps:$4 sm:$0xff]   ;;  %v9323_v48 = vld [vmem:[%s11155_s1 + $0x2e4] ss:$16 sps:$4 sm:$0xff]  }
  0x42   :  { %1128 = vmatpush1.bf16.msra.mxu0 %v9228_v49  ;;  %1301 = vmatpush1.bf16.msra.mxu1 %v9231_v50  ;;  %v9326_v49 = vld [vmem:[%s11155_s1 + $0x2ec] ss:$16 sps:$4 sm:$0xff]   ;;  %v9321_v50 = vld [vmem:[%s11155_s1 + $0x2e0] ss:$16 sps:$4 sm:$0xff]  }
  0x43   :  { %1129 = vmatprep.subr.bf16.mxu0 %v9238_v51  ;;  %1302 = vmatprep.subr.bf16.mxu1 %v9241_v52  ;;  %v9324_v51 = vld [vmem:[%s11155_s1 + $0x2e8] ss:$16 sps:$4 sm:$0xff]   ;;  %v9331_v52 = vld [vmem:[%s11155_s1 + $0x304] ss:$16 sps:$4 sm:$0xff]  }
  0x44   :  { %410 = vmatmul.mubr.bf16.gmra.mrb[8].mxu0 %v9218_v53  ;;  %583 = vmatmul.mubr.bf16.gmra.mrb[8].mxu1 %v9218_v53  ;;  %v9334_v53 = vld [vmem:[%s11155_s1 + $0x30c] ss:$16 sps:$4 sm:$0xff]  }
  0x45   :  { %419 = vmatprep.mubr.bf16.mxu0 %v9789_v0  ;;  %592 = vmatprep.mubr.bf16.mxu1 %v9789_v0 }
  0x46   :  { %1130 = vmatpush1.bf16.msra.mxu0 %v9236_v54  ;;  %1303 = vmatpush1.bf16.msra.mxu1 %v9239_v55  ;;  %v9288_v54 = vld [vmem:[%s11154_s0 + $0x24] sm:$0xff]   ;;  %v9289_v55 = vld [vmem:[%s11154_s0 + $0x2c] sm:$0xff]  }
  0x47   :  { %1131 = vmatprep.subr.bf16.mxu0 %v9245_v56  ;;  %1304 = vmatprep.subr.bf16.mxu1 %v9248_v57  ;;  %v9296_v56 = vld [vmem:[%s11154_s0 + $0x34] sm:$0xff]   ;;  %v9297_v57 = vld [vmem:[%s11154_s0 + $0x3c] sm:$0xff]  }
  0x4a   :  { %1132 = vmatpush1.bf16.msra.mxu0 %v9243_v58  ;;  %1305 = vmatpush1.bf16.msra.mxu1 %v9246_v59  ;;  %v9304_v58 = vld [vmem:[%s11154_s0 + $0x44] sm:$0xff]   ;;  %v9311_v59 = vld [vmem:[%s11154_s0 + $0x4c] sm:$0xff]  }
  0x4b   :  { %1133 = vmatprep.subr.bf16.mxu0 %v9253_v60  ;;  %1306 = vmatprep.subr.bf16.mxu1 %v9256_v61  ;;  %v9312_v60 = vld [vmem:[%s11154_s0 + $0x54] sm:$0xff]   ;;  %v9319_v61 = vld [vmem:[%s11154_s0 + $0x5c] sm:$0xff]  }
  0x4c   :  { %420 = vmatmul.mubr.bf16.gmra.mrb[12].mxu0 %v9219_v62  ;;  %593 = vmatmul.mubr.bf16.gmra.mrb[12].mxu1 %v9219_v62  ;;  %v9320_v62 = vld [vmem:[%s11154_s0 + $0x64] sm:$0xff]  }
  0x4d   :  { %429 = vmatprep.mubr.bf16.mxu0 %v9789_v0  ;;  %602 = vmatprep.mubr.bf16.mxu1 %v9789_v0 }
  0x4e   :  { %1134 = vmatpush1.bf16.msra.mxu0 %v9251_v63  ;;  %1307 = vmatpush1.bf16.msra.mxu1 %v9254_v1  ;;  %v9327_v63 = vld [vmem:[%s11154_s0 + $0x6c] sm:$0xff]  }
  0x4f   :  { %1135 = vmatprep.subr.bf16.mxu0 %v9261_v2  ;;  %1308 = vmatprep.subr.bf16.mxu1 %v9264_v3  ;;  %v9328_v1 = vld [vmem:[%s11154_s0 + $0x8] sm:$0xff]   ;;  %v9329_v2 = vld [vmem:[%s11155_s1 + $0x300] ss:$16 sps:$4 sm:$0xff]  }
  0x50   :  { %v9332_v3 = vld [vmem:[%s11155_s1 + $0x308] ss:$16 sps:$4 sm:$0xff]  }
  0x52   :  { %1136 = vmatpush1.bf16.msra.mxu0 %v9259_v4  ;;  %1309 = vmatpush1.bf16.msra.mxu1 %v9262_v5  ;;  %v9338_v4 = vld [vmem:[%s11155_s1 + $0x324] ss:$16 sps:$4 sm:$0xff]   ;;  %v9341_v5 = vld [vmem:[%s11155_s1 + $0x32c] ss:$16 sps:$4 sm:$0xff]  }
  0x53   :  { %2109 = vmatprep.subr.bf16.mxu0 %v9269_v6  ;;  %2282 = vmatprep.subr.bf16.mxu1 %v9272_v7  ;;  %v9336_v6 = vld [vmem:[%s11155_s1 + $0x320] ss:$16 sps:$4 sm:$0xff]   ;;  %v9339_v7 = vld [vmem:[%s11155_s1 + $0x328] ss:$16 sps:$4 sm:$0xff]  }
  0x54   :  { %430 = vmatmul.mubr.bf16.gmra.mrb[16].mxu0 %v9226_v8  ;;  %603 = vmatmul.mubr.bf16.gmra.mrb[16].mxu1 %v9226_v8  ;;  %v9346_v8 = vld [vmem:[%s11155_s1 + $0x344] ss:$16 sps:$4 sm:$0xff]  }
  0x55   :  { %439 = vmatprep.mubr.bf16.mxu0 %v9789_v0  ;;  %612 = vmatprep.mubr.bf16.mxu1 %v9789_v0 }
  0x5c   :  { %440 = vmatmul.mubr.bf16.gmra.mrb[20].mxu0 %v9227_v9  ;;  %613 = vmatmul.mubr.bf16.gmra.mrb[20].mxu1 %v9227_v9  ;;  %v9349_v9 = vld [vmem:[%s11155_s1 + $0x34c] ss:$16 sps:$4 sm:$0xff]  }
  0x5d   :  { %449 = vmatprep.mubr.bf16.mxu0 %v9789_v0  ;;  %622 = vmatprep.mubr.bf16.mxu1 %v9789_v0 }
  0x64   :  { %450 = vmatmul.mubr.bf16.gmra.mrb[24].mxu0 %v9234_v10  ;;  %623 = vmatmul.mubr.bf16.gmra.mrb[24].mxu1 %v9234_v10  ;;  %v9335_v10 = vld [vmem:[%s11154_s0 + $0x10] sm:$0xff]  }
  0x65   :  { %459 = vmatprep.mubr.bf16.mxu0 %v9789_v0  ;;  %632 = vmatprep.mubr.bf16.mxu1 %v9789_v0 }
  0x6c   :  { %460 = vmatmul.mubr.bf16.gmra.mrb[28].mxu0 %v9235_v11  ;;  %633 = vmatmul.mubr.bf16.gmra.mrb[28].mxu1 %v9235_v11  ;;  %v9344_v11 = vld [vmem:[%s11155_s1 + $0x340] ss:$16 sps:$4 sm:$0xff]  }
  0x6d   :  { %469 = vmatprep.mubr.bf16.mxu0 %v9789_v0  ;;  %642 = vmatprep.mubr.bf16.mxu1 %v9789_v0 }
  0x74   :  { %470 = vmatmul.mubr.bf16.gmra.mrb[32].mxu0 %v9242_v12  ;;  %643 = vmatmul.mubr.bf16.gmra.mrb[32].mxu1 %v9242_v12  ;;  %v9347_v12 = vld [vmem:[%s11155_s1 + $0x348] ss:$16 sps:$4 sm:$0xff]  }
  0x75   :  { %479 = vmatprep.mubr.bf16.mxu0 %v9789_v0  ;;  %652 = vmatprep.mubr.bf16.mxu1 %v9789_v0 }
  0x7c   :  { %480 = vmatmul.mubr.bf16.gmra.mrb[36].mxu0 %v9249_v13  ;;  %653 = vmatmul.mubr.bf16.gmra.mrb[36].mxu1 %v9249_v13  ;;  %v9354_v13 = vld [vmem:[%s11155_s1 + $0x364] ss:$16 sps:$4 sm:$0xff]  }
  0x7d   :  { %489 = vmatprep.mubr.bf16.mxu0 %v9789_v0  ;;  %662 = vmatprep.mubr.bf16.mxu1 %v9789_v0 }
  0x84   :  { %490 = vmatmul.mubr.bf16.gmra.mrb[40].mxu0 %v9250_v14  ;;  %663 = vmatmul.mubr.bf16.gmra.mrb[40].mxu1 %v9250_v14  ;;  %v9357_v14 = vld [vmem:[%s11155_s1 + $0x36c] ss:$16 sps:$4 sm:$0xff]  }
  0x85   :  { %499 = vmatprep.mubr.bf16.mxu0 %v9789_v0  ;;  %672 = vmatprep.mubr.bf16.mxu1 %v9789_v0 }
  0x8c   :  { %500 = vmatmul.mubr.bf16.gmra.mrb[44].mxu0 %v9257_v15  ;;  %673 = vmatmul.mubr.bf16.gmra.mrb[44].mxu1 %v9257_v15  ;;  %v9352_v15 = vld [vmem:[%s11155_s1 + $0x360] ss:$16 sps:$4 sm:$0xff]  }
  0x8d   :  { %509 = vmatprep.mubr.bf16.mxu0 %v9789_v0  ;;  %682 = vmatprep.mubr.bf16.mxu1 %v9789_v0 }
  0x94   :  { %510 = vmatmul.mubr.bf16.gmra.mrb[48].mxu0 %v9258_v16  ;;  %683 = vmatmul.mubr.bf16.gmra.mrb[48].mxu1 %v9258_v16  ;;  %v9355_v16 = vld [vmem:[%s11155_s1 + $0x368] ss:$16 sps:$4 sm:$0xff]  }
  0x95   :  { %519 = vmatprep.mubr.bf16.mxu0 %v9789_v0  ;;  %692 = vmatprep.mubr.bf16.mxu1 %v9789_v0 }
  0x9c   :  { %520 = vmatmul.mubr.bf16.gmra.mrb[52].mxu0 %v9265_v17  ;;  %693 = vmatmul.mubr.bf16.gmra.mrb[52].mxu1 %v9265_v17  ;;  %v9362_v17 = vld [vmem:[%s11155_s1 + $0x384] ss:$16 sps:$4 sm:$0xff]  }
  0x9d   :  { %1153 = vmatprep.mubr.bf16.mxu0 %v9789_v0  ;;  %1326 = vmatprep.mubr.bf16.mxu1 %v9789_v0 }
  0xa4   :  { %1154 = vmatmul.mubr.bf16.vlgmr.msra.gmra.mrb[0].mxu0 %v9266_v18  ;;  %1327 = vmatmul.mubr.bf16.vlgmr.msra.gmra.mrb[0].mxu1 %v9266_v18  ;;  %v9365_v18 = vld [vmem:[%s11155_s1 + $0x38c] ss:$16 sps:$4 sm:$0xff]  }
  0xa5   :  { %2110 = vmatpush1.bf16.msra.mxu0 %v9267_v19  ;;  %2283 = vmatpush1.bf16.msra.mxu1 %v9270_v20  ;;  %v9342_v19 = vld [vmem:[%s11154_s0 + $0x18] sm:$0xff]   ;;  %v9360_v20 = vld [vmem:[%s11155_s1 + $0x380] ss:$16 sps:$4 sm:$0xff]  }
  0xa6   :  { %1163 = vmatprep.mubr.bf16.mxu0 %v9789_v0  ;;  %1336 = vmatprep.mubr.bf16.mxu1 %v9789_v0 }
  0xa7   :  { %2111 = vmatprep.subr.bf16.mxu0 %v9276_v21  ;;  %2284 = vmatprep.subr.bf16.mxu1 %v9279_v22  ;;  %v9363_v21 = vld [vmem:[%s11155_s1 + $0x388] ss:$16 sps:$4 sm:$0xff]   ;;  %v9369_v22 = vld [vmem:[%s11155_s1 + $0x3a4] ss:$16 sps:$4 sm:$0xff]  }
  0xa9   :  { %2112 = vmatpush1.bf16.msra.mxu0 %v9274_v23  ;;  %2285 = vmatpush1.bf16.msra.mxu1 %v9277_v24  ;;  %v9372_v23 = vld [vmem:[%s11155_s1 + $0x3ac] ss:$16 sps:$4 sm:$0xff]   ;;  %v9367_v24 = vld [vmem:[%s11155_s1 + $0x3a0] ss:$16 sps:$4 sm:$0xff]  }
  0xaa   :  { %2113 = vmatprep.subr.bf16.mxu0 %v9284_v25  ;;  %2286 = vmatprep.subr.bf16.mxu1 %v9287_v26  ;;  %v9370_v25 = vld [vmem:[%s11155_s1 + $0x3a8] ss:$16 sps:$4 sm:$0xff]   ;;  %v9377_v26 = vld [vmem:[%s11155_s1 + $0x3c4] ss:$16 sps:$4 sm:$0xff]  }
  0xac   :  { %1164 = vmatmul.mubr.bf16.gmra.mrb[4].mxu0 %v9273_v27  ;;  %1337 = vmatmul.mubr.bf16.gmra.mrb[4].mxu1 %v9273_v27  ;;  %v9380_v27 = vld [vmem:[%s11155_s1 + $0x3cc] ss:$16 sps:$4 sm:$0xff]  }
  0xad   :  { %1173 = vmatprep.mubr.bf16.mxu0 %v9789_v0  ;;  %1346 = vmatprep.mubr.bf16.mxu1 %v9789_v0 }
  0xae   :  { %2114 = vmatpush1.bf16.msra.mxu0 %v9282_v28  ;;  %2287 = vmatpush1.bf16.msra.mxu1 %v9285_v29  ;;  %v9343_v28 = vld [vmem:[%s11154_s0 + $0x20] sm:$0xff]  }
  0xaf   :  { %2115 = vmatprep.subr.bf16.mxu0 %v9292_v30  ;;  %2288 = vmatprep.subr.bf16.mxu1 %v9295_v31  ;;  %v9375_v29 = vld [vmem:[%s11155_s1 + $0x3c0] ss:$16 sps:$4 sm:$0xff]   ;;  %v9378_v30 = vld [vmem:[%s11155_s1 + $0x3c8] ss:$16 sps:$4 sm:$0xff]   ;;  %v9385_v31 = vld [vmem:[%s11155_s1 + $0x3e4] ss:$16 sps:$4 sm:$0xff]  }
  0xb2   :  { %2116 = vmatpush1.bf16.msra.mxu0 %v9290_v32  ;;  %2289 = vmatpush1.bf16.msra.mxu1 %v9293_v33  ;;  %v9388_v32 = vld [vmem:[%s11155_s1 + $0x3ec] ss:$16 sps:$4 sm:$0xff]   ;;  %v9383_v33 = vld [vmem:[%s11155_s1 + $0x3e0] ss:$16 sps:$4 sm:$0xff]  }
  0xb3   :  { %2117 = vmatprep.subr.bf16.mxu0 %v9300_v34  ;;  %2290 = vmatprep.subr.bf16.mxu1 %v9303_v35  ;;  %v9386_v34 = vld [vmem:[%s11155_s1 + $0x3e8] ss:$16 sps:$4 sm:$0xff]   ;;  %v9393_v35 = vld [vmem:[%s11155_s1 + $0x404] ss:$16 sps:$4 sm:$0xff]  }
  0xb4   :  { %1174 = vmatmul.mubr.bf16.gmra.mrb[8].mxu0 %v9280_v36  ;;  %1347 = vmatmul.mubr.bf16.gmra.mrb[8].mxu1 %v9280_v36  ;;  %v9396_v36 = vld [vmem:[%s11155_s1 + $0x40c] ss:$16 sps:$4 sm:$0xff]  }
  0xb5   :  { %1183 = vmatprep.mubr.bf16.mxu0 %v9789_v0  ;;  %1356 = vmatprep.mubr.bf16.mxu1 %v9789_v0 }
  0xb6   :  { %2118 = vmatpush1.bf16.msra.mxu0 %v9298_v37  ;;  %2291 = vmatpush1.bf16.msra.mxu1 %v9301_v38  ;;  %v9350_v37 = vld [vmem:[%s11154_s0 + $0x28] sm:$0xff]   ;;  %v9351_v38 = vld [vmem:[%s11154_s0 + $0x30] sm:$0xff]  }
  0xb7   :  { %2119 = vmatprep.subr.bf16.mxu0 %v9307_v39  ;;  %2292 = vmatprep.subr.bf16.mxu1 %v9310_v40  ;;  %v9358_v39 = vld [vmem:[%s11154_s0 + $0x38] sm:$0xff]   ;;  %v9359_v40 = vld [vmem:[%s11154_s0 + $0x40] sm:$0xff]  }
  0xba   :  { %2120 = vmatpush1.bf16.msra.mxu0 %v9305_v41  ;;  %2293 = vmatpush1.bf16.msra.mxu1 %v9308_v42  ;;  %v9366_v41 = vld [vmem:[%s11154_s0 + $0x48] sm:$0xff]   ;;  %v9373_v42 = vld [vmem:[%s11154_s0 + $0x50] sm:$0xff]  }
  0xbb   :  { %2121 = vmatprep.subr.bf16.mxu0 %v9315_v43  ;;  %2294 = vmatprep.subr.bf16.mxu1 %v9318_v44  ;;  %v9374_v43 = vld [vmem:[%s11154_s0 + $0x58] sm:$0xff]   ;;  %v9381_v44 = vld [vmem:[%s11154_s0 + $0x60] sm:$0xff]  }
  0xbc   :  { %1184 = vmatmul.mubr.bf16.gmra.mrb[12].mxu0 %v9281_v45  ;;  %1357 = vmatmul.mubr.bf16.gmra.mrb[12].mxu1 %v9281_v45  ;;  %v9382_v45 = vld [vmem:[%s11154_s0 + $0x68] sm:$0xff]  }
  0xbd   :  { %1193 = vmatprep.mubr.bf16.mxu0 %v9789_v0  ;;  %1366 = vmatprep.mubr.bf16.mxu1 %v9789_v0 }
  0xbe   :  { %2122 = vmatpush1.bf16.msra.mxu0 %v9313_v46  ;;  %2295 = vmatpush1.bf16.msra.mxu1 %v9316_v47  ;;  %v9389_v46 = vld [vmem:[%s11154_s0 + $0x70] sm:$0xff]  }
  0xbf   :  { %2123 = vmatprep.subr.bf16.mxu0 %v9323_v48  ;;  %2296 = vmatprep.subr.bf16.mxu1 %v9326_v49  ;;  %v9390_v47 = vld [vmem:[%s11154_s0 + $0xc] sm:$0xff]   ;;  %v9394_v49 = vld [vmem:[%s11155_s1 + $0x408] ss:$16 sps:$4 sm:$0xff]  }
  0xc0   :  { %v9391_v48 = vld [vmem:[%s11155_s1 + $0x400] ss:$16 sps:$4 sm:$0xff]  }
  0xc2   :  { %2124 = vmatpush1.bf16.msra.mxu0 %v9321_v50  ;;  %2297 = vmatpush1.bf16.msra.mxu1 %v9324_v51  ;;  %v9400_v50 = vld [vmem:[%s11155_s1 + $0x424] ss:$16 sps:$4 sm:$0xff]   ;;  %v9403_v51 = vld [vmem:[%s11155_s1 + $0x42c] ss:$16 sps:$4 sm:$0xff]  }
  0xc3   :  { %3097 = vmatprep.subr.bf16.mxu0 %v9331_v52  ;;  %3270 = vmatprep.subr.bf16.mxu1 %v9334_v53  ;;  %v9398_v52 = vld [vmem:[%s11155_s1 + $0x420] ss:$16 sps:$4 sm:$0xff]   ;;  %v9401_v53 = vld [vmem:[%s11155_s1 + $0x428] ss:$16 sps:$4 sm:$0xff]  }
  0xc4   :  { %1194 = vmatmul.mubr.bf16.gmra.mrb[16].mxu0 %v9288_v54  ;;  %1367 = vmatmul.mubr.bf16.gmra.mrb[16].mxu1 %v9288_v54  ;;  %v9408_v54 = vld [vmem:[%s11155_s1 + $0x444] ss:$16 sps:$4 sm:$0xff]  }
  0xc5   :  { %1203 = vmatprep.mubr.bf16.mxu0 %v9789_v0  ;;  %1376 = vmatprep.mubr.bf16.mxu1 %v9789_v0 }
  0xcc   :  { %1204 = vmatmul.mubr.bf16.gmra.mrb[20].mxu0 %v9289_v55  ;;  %1377 = vmatmul.mubr.bf16.gmra.mrb[20].mxu1 %v9289_v55  ;;  %v9411_v55 = vld [vmem:[%s11155_s1 + $0x44c] ss:$16 sps:$4 sm:$0xff]  }
  0xcd   :  { %1213 = vmatprep.mubr.bf16.mxu0 %v9789_v0  ;;  %1386 = vmatprep.mubr.bf16.mxu1 %v9789_v0 }
  0xd4   :  { %1214 = vmatmul.mubr.bf16.gmra.mrb[24].mxu0 %v9296_v56  ;;  %1387 = vmatmul.mubr.bf16.gmra.mrb[24].mxu1 %v9296_v56  ;;  %v9397_v56 = vld [vmem:[%s11154_s0 + $0x14] sm:$0xff]  }
  0xd5   :  { %1223 = vmatprep.mubr.bf16.mxu0 %v9789_v0  ;;  %1396 = vmatprep.mubr.bf16.mxu1 %v9789_v0 }
  0xdc   :  { %1224 = vmatmul.mubr.bf16.gmra.mrb[28].mxu0 %v9297_v57  ;;  %1397 = vmatmul.mubr.bf16.gmra.mrb[28].mxu1 %v9297_v57  ;;  %v9406_v57 = vld [vmem:[%s11155_s1 + $0x440] ss:$16 sps:$4 sm:$0xff]  }
  0xdd   :  { %1233 = vmatprep.mubr.bf16.mxu0 %v9789_v0  ;;  %1406 = vmatprep.mubr.bf16.mxu1 %v9789_v0 }
  0xe4   :  { %1234 = vmatmul.mubr.bf16.gmra.mrb[32].mxu0 %v9304_v58  ;;  %1407 = vmatmul.mubr.bf16.gmra.mrb[32].mxu1 %v9304_v58  ;;  %v9409_v58 = vld [vmem:[%s11155_s1 + $0x448] ss:$16 sps:$4 sm:$0xff]  }
  0xe5   :  { %1243 = vmatprep.mubr.bf16.mxu0 %v9789_v0  ;;  %1416 = vmatprep.mubr.bf16.mxu1 %v9789_v0 }
  0xec   :  { %1244 = vmatmul.mubr.bf16.gmra.mrb[36].mxu0 %v9311_v59  ;;  %1417 = vmatmul.mubr.bf16.gmra.mrb[36].mxu1 %v9311_v59  ;;  %v9416_v59 = vld [vmem:[%s11155_s1 + $0x464] ss:$16 sps:$4 sm:$0xff]  }
  0xed   :  { %1253 = vmatprep.mubr.bf16.mxu0 %v9789_v0  ;;  %1426 = vmatprep.mubr.bf16.mxu1 %v9789_v0 }
  0xf4   :  { %1254 = vmatmul.mubr.bf16.gmra.mrb[40].mxu0 %v9312_v60  ;;  %1427 = vmatmul.mubr.bf16.gmra.mrb[40].mxu1 %v9312_v60  ;;  %v9419_v60 = vld [vmem:[%s11155_s1 + $0x46c] ss:$16 sps:$4 sm:$0xff]  }
  0xf5   :  { %1263 = vmatprep.mubr.bf16.mxu0 %v9789_v0  ;;  %1436 = vmatprep.mubr.bf16.mxu1 %v9789_v0 }
  0xfc   :  { %1264 = vmatmul.mubr.bf16.gmra.mrb[44].mxu0 %v9319_v61  ;;  %1437 = vmatmul.mubr.bf16.gmra.mrb[44].mxu1 %v9319_v61  ;;  %v9414_v61 = vld [vmem:[%s11155_s1 + $0x460] ss:$16 sps:$4 sm:$0xff]  }
  0xfd   :  { %1273 = vmatprep.mubr.bf16.mxu0 %v9789_v0  ;;  %1446 = vmatprep.mubr.bf16.mxu1 %v9789_v0 }
 0x104   :  { %1274 = vmatmul.mubr.bf16.gmra.mrb[48].mxu0 %v9320_v62  ;;  %1447 = vmatmul.mubr.bf16.gmra.mrb[48].mxu1 %v9320_v62  ;;  %v9417_v62 = vld [vmem:[%s11155_s1 + $0x468] ss:$16 sps:$4 sm:$0xff]  }
 0x105   :  { %1283 = vmatprep.mubr.bf16.mxu0 %v9789_v0  ;;  %1456 = vmatprep.mubr.bf16.mxu1 %v9789_v0 }
 0x10c   :  { %1284 = vmatmul.mubr.bf16.gmra.mrb[52].mxu0 %v9327_v63  ;;  %1457 = vmatmul.mubr.bf16.gmra.mrb[52].mxu1 %v9327_v63  ;;  %v9424_v63 = vld [vmem:[%s11155_s1 + $0x484] ss:$16 sps:$4 sm:$0xff]  }
 0x10d   :  { %2141 = vmatprep.mubr.bf16.mxu0 %v9789_v0  ;;  %2314 = vmatprep.mubr.bf16.mxu1 %v9789_v0 }
 0x114   :  { %2142 = vmatmul.mubr.bf16.vlgmr.msra.gmra.mrb[0].mxu0 %v9328_v1  ;;  %2315 = vmatmul.mubr.bf16.vlgmr.msra.gmra.mrb[0].mxu1 %v9328_v1  ;;  %v9427_v1 = vld [vmem:[%s11155_s1 + $0x48c] ss:$16 sps:$4 sm:$0xff]  }
 0x115   :  { %3098 = vmatpush1.bf16.msra.mxu0 %v9329_v2  ;;  %3271 = vmatpush1.bf16.msra.mxu1 %v9332_v3  ;;  %v9404_v2 = vld [vmem:[%s11154_s0 + $0x1c] sm:$0xff]  }
 0x116   :  { %2151 = vmatprep.mubr.bf16.mxu0 %v9789_v0  ;;  %2324 = vmatprep.mubr.bf16.mxu1 %v9789_v0  ;;  %v9422_v3 = vld [vmem:[%s11155_s1 + $0x480] ss:$16 sps:$4 sm:$0xff]  }
 0x117   :  { %3099 = vmatprep.subr.bf16.mxu0 %v9338_v4  ;;  %3272 = vmatprep.subr.bf16.mxu1 %v9341_v5  ;;  %v9425_v4 = vld [vmem:[%s11155_s1 + $0x488] ss:$16 sps:$4 sm:$0xff]   ;;  %v9431_v5 = vld [vmem:[%s11155_s1 + $0x4a4] ss:$16 sps:$4 sm:$0xff]  }
 0x119   :  { %3100 = vmatpush1.bf16.msra.mxu0 %v9336_v6  ;;  %3273 = vmatpush1.bf16.msra.mxu1 %v9339_v7  ;;  %v9434_v6 = vld [vmem:[%s11155_s1 + $0x4ac] ss:$16 sps:$4 sm:$0xff]   ;;  %v9429_v7 = vld [vmem:[%s11155_s1 + $0x4a0] ss:$16 sps:$4 sm:$0xff]  }
 0x11a   :  { %3101 = vmatprep.subr.bf16.mxu0 %v9346_v8  ;;  %3274 = vmatprep.subr.bf16.mxu1 %v9349_v9  ;;  %v9432_v8 = vld [vmem:[%s11155_s1 + $0x4a8] ss:$16 sps:$4 sm:$0xff]   ;;  %v9439_v9 = vld [vmem:[%s11155_s1 + $0x4c4] ss:$16 sps:$4 sm:$0xff]  }
 0x11c   :  { %2152 = vmatmul.mubr.bf16.gmra.mrb[4].mxu0 %v9335_v10  ;;  %2325 = vmatmul.mubr.bf16.gmra.mrb[4].mxu1 %v9335_v10  ;;  %v9442_v10 = vld [vmem:[%s11155_s1 + $0x4cc] ss:$16 sps:$4 sm:$0xff]  }
 0x11d   :  { %2161 = vmatprep.mubr.bf16.mxu0 %v9789_v0  ;;  %2334 = vmatprep.mubr.bf16.mxu1 %v9789_v0 }
 0x11e   :  { %3102 = vmatpush1.bf16.msra.mxu0 %v9344_v11  ;;  %3275 = vmatpush1.bf16.msra.mxu1 %v9347_v12  ;;  %v9405_v11 = vld [vmem:[%s11154_s0 + $0x24] sm:$0xff]   ;;  %v9437_v12 = vld [vmem:[%s11155_s1 + $0x4c0] ss:$16 sps:$4 sm:$0xff]  }
 0x11f   :  { %3103 = vmatprep.subr.bf16.mxu0 %v9354_v13  ;;  %3276 = vmatprep.subr.bf16.mxu1 %v9357_v14  ;;  %v9440_v13 = vld [vmem:[%s11155_s1 + $0x4c8] ss:$16 sps:$4 sm:$0xff]   ;;  %v9447_v14 = vld [vmem:[%s11155_s1 + $0x4e4] ss:$16 sps:$4 sm:$0xff]  }
 0x122   :  { %3104 = vmatpush1.bf16.msra.mxu0 %v9352_v15  ;;  %3277 = vmatpush1.bf16.msra.mxu1 %v9355_v16  ;;  %v9450_v15 = vld [vmem:[%s11155_s1 + $0x4ec] ss:$16 sps:$4 sm:$0xff]   ;;  %v9445_v16 = vld [vmem:[%s11155_s1 + $0x4e0] ss:$16 sps:$4 sm:$0xff]  }
 0x123   :  { %3105 = vmatprep.subr.bf16.mxu0 %v9362_v17  ;;  %3278 = vmatprep.subr.bf16.mxu1 %v9365_v18  ;;  %v9448_v17 = vld [vmem:[%s11155_s1 + $0x4e8] ss:$16 sps:$4 sm:$0xff]   ;;  %v9412_v18 = vld [vmem:[%s11154_s0 + $0x2c] sm:$0xff]  }
 0x124   :  { %2162 = vmatmul.mubr.bf16.gmra.mrb[8].mxu0 %v9342_v19  ;;  %2335 = vmatmul.mubr.bf16.gmra.mrb[8].mxu1 %v9342_v19  ;;  %v9413_v19 = vld [vmem:[%s11154_s0 + $0x34] sm:$0xff]  }
 0x125   :  { %2171 = vmatprep.mubr.bf16.mxu0 %v9789_v0  ;;  %2344 = vmatprep.mubr.bf16.mxu1 %v9789_v0 }
 0x126   :  { %3106 = vmatpush1.bf16.msra.mxu0 %v9360_v20  ;;  %3279 = vmatpush1.bf16.msra.mxu1 %v9363_v21  ;;  %v9420_v20 = vld [vmem:[%s11154_s0 + $0x3c] sm:$0xff]   ;;  %v9421_v21 = vld [vmem:[%s11154_s0 + $0x44] sm:$0xff]  }
 0x127   :  { %3107 = vmatprep.subr.bf16.mxu0 %v9369_v22  ;;  %3280 = vmatprep.subr.bf16.mxu1 %v9372_v23  ;;  %v9428_v22 = vld [vmem:[%s11154_s0 + $0x4c] sm:$0xff]   ;;  %v9435_v23 = vld [vmem:[%s11154_s0 + $0x54] sm:$0xff]  }
 0x12a   :  { %3108 = vmatpush1.bf16.msra.mxu0 %v9367_v24  ;;  %3281 = vmatpush1.bf16.msra.mxu1 %v9370_v25  ;;  %v9436_v24 = vld [vmem:[%s11154_s0 + $0x5c] sm:$0xff]   ;;  %v9443_v25 = vld [vmem:[%s11154_s0 + $0x64] sm:$0xff]  }
 0x12b   :  { %3109 = vmatprep.subr.bf16.mxu0 %v9377_v26  ;;  %3282 = vmatprep.subr.bf16.mxu1 %v9380_v27  ;;  %v9468_v26 = vld [vmem:[#allocation5 + $0x104] ss:$8 sps:$4 sm:$0xff]  }
 0x12c   :  { %2172 = vmatmul.mubr.bf16.gmra.mrb[12].mxu0 %v9343_v28  ;;  %2345 = vmatmul.mubr.bf16.gmra.mrb[12].mxu1 %v9343_v28  ;;  %v9477_v27 = vld [vmem:[#allocation5 + $0x4] ss:$8 sps:$4 sm:$0xff]   ;;  %v9444_v28 = vld [vmem:[%s11154_s0 + $0x6c] sm:$0xff]  }
 0x12d   :  { %2181 = vmatprep.mubr.bf16.mxu0 %v9789_v0  ;;  %2354 = vmatprep.mubr.bf16.mxu1 %v9789_v0 }
 0x12e   :  { %3110 = vmatpush1.bf16.msra.mxu0 %v9375_v29  ;;  %3283 = vmatpush1.bf16.msra.mxu1 %v9378_v30  ;;  %v9451_v29 = vld [vmem:[%s11154_s0 + $0x74] sm:$0xff]  }
 0x12f   :  { %3111 = vmatprep.subr.bf16.mxu0 %v9385_v31  ;;  %3284 = vmatprep.subr.bf16.mxu1 %v9388_v32  ;;  %v9452_v30 = vld [vmem:[%s11154_s0 + $0x10] sm:$0xff]  }
 0x130   :  { %v9466_v31 = vld [vmem:[#allocation5 + $0x100] ss:$8 sps:$4 sm:$0xff]  }
 0x131   :  { %v9475_v32 = vld [vmem:[#allocation5] ss:$8 sps:$4 sm:$0xff]  }
 0x132   :  { %3112 = vmatpush1.bf16.msra.mxu0 %v9383_v33  ;;  %3285 = vmatpush1.bf16.msra.mxu1 %v9386_v34  ;;  %v9471_v33 = vld [vmem:[#allocation5 + $0x114] ss:$8 sps:$4 sm:$0xff]  }
 0x133   :  { %4085 = vmatprep.subr.bf16.mxu0 %v9393_v35  ;;  %4258 = vmatprep.subr.bf16.mxu1 %v9396_v36  ;;  %v9483_v34 = vld [vmem:[#allocation5 + $0x14] ss:$8 sps:$4 sm:$0xff]   ;;  %v9469_v35 = vld [vmem:[#allocation5 + $0x110] ss:$8 sps:$4 sm:$0xff]  }
 0x134   :  { %2182 = vmatmul.mubr.bf16.gmra.mrb[16].mxu0 %v9350_v37  ;;  %2355 = vmatmul.mubr.bf16.gmra.mrb[16].mxu1 %v9350_v37  ;;  %v9481_v36 = vld [vmem:[#allocation5 + $0x10] ss:$8 sps:$4 sm:$0xff]   ;;  %v9474_v37 = vld [vmem:[#allocation5 + $0x124] ss:$8 sps:$4 sm:$0xff]  }
 0x135   :  { %2191 = vmatprep.mubr.bf16.mxu0 %v9789_v0  ;;  %2364 = vmatprep.mubr.bf16.mxu1 %v9789_v0 }
 0x13c   :  { %2192 = vmatmul.mubr.bf16.gmra.mrb[20].mxu0 %v9351_v38  ;;  %2365 = vmatmul.mubr.bf16.gmra.mrb[20].mxu1 %v9351_v38  ;;  %v9489_v38 = vld [vmem:[#allocation5 + $0x24] ss:$8 sps:$4 sm:$0xff]  }
 0x13d   :  { %2201 = vmatprep.mubr.bf16.mxu0 %v9789_v0  ;;  %2374 = vmatprep.mubr.bf16.mxu1 %v9789_v0 }
 0x144   :  { %2202 = vmatmul.mubr.bf16.gmra.mrb[24].mxu0 %v9358_v39  ;;  %2375 = vmatmul.mubr.bf16.gmra.mrb[24].mxu1 %v9358_v39  ;;  %v9453_v39 = vld [vmem:[%s11154_s0 + $0x18] sm:$0xff]  }
 0x145   :  { %2211 = vmatprep.mubr.bf16.mxu0 %v9789_v0  ;;  %2384 = vmatprep.mubr.bf16.mxu1 %v9789_v0 }
 0x14c   :  { %2212 = vmatmul.mubr.bf16.gmra.mrb[28].mxu0 %v9359_v40  ;;  %2385 = vmatmul.mubr.bf16.gmra.mrb[28].mxu1 %v9359_v40  ;;  %v9472_v40 = vld [vmem:[#allocation5 + $0x120] ss:$8 sps:$4 sm:$0xff]  }
 0x14d   :  { %2221 = vmatprep.mubr.bf16.mxu0 %v9789_v0  ;;  %2394 = vmatprep.mubr.bf16.mxu1 %v9789_v0 }
 0x154   :  { %2222 = vmatmul.mubr.bf16.gmra.mrb[32].mxu0 %v9366_v41  ;;  %2395 = vmatmul.mubr.bf16.gmra.mrb[32].mxu1 %v9366_v41  ;;  %v9487_v41 = vld [vmem:[#allocation5 + $0x20] ss:$8 sps:$4 sm:$0xff]  }
 0x155   :  { %2231 = vmatprep.mubr.bf16.mxu0 %v9789_v0  ;;  %2404 = vmatprep.mubr.bf16.mxu1 %v9789_v0 }
 0x15c   :  { %2232 = vmatmul.mubr.bf16.gmra.mrb[36].mxu0 %v9373_v42  ;;  %2405 = vmatmul.mubr.bf16.gmra.mrb[36].mxu1 %v9373_v42  ;;  %v9480_v42 = vld [vmem:[#allocation5 + $0x134] ss:$8 sps:$4 sm:$0xff]  }
 0x15d   :  { %2241 = vmatprep.mubr.bf16.mxu0 %v9789_v0  ;;  %2414 = vmatprep.mubr.bf16.mxu1 %v9789_v0 }
 0x164   :  { %2242 = vmatmul.mubr.bf16.gmra.mrb[40].mxu0 %v9374_v43  ;;  %2415 = vmatmul.mubr.bf16.gmra.mrb[40].mxu1 %v9374_v43  ;;  %v9492_v43 = vld [vmem:[#allocation5 + $0x34] ss:$8 sps:$4 sm:$0xff]  }
 0x165   :  { %2251 = vmatprep.mubr.bf16.mxu0 %v9789_v0  ;;  %2424 = vmatprep.mubr.bf16.mxu1 %v9789_v0 }
 0x16c   :  { %2252 = vmatmul.mubr.bf16.gmra.mrb[44].mxu0 %v9381_v44  ;;  %2425 = vmatmul.mubr.bf16.gmra.mrb[44].mxu1 %v9381_v44  ;;  %v9478_v44 = vld [vmem:[#allocation5 + $0x130] ss:$8 sps:$4 sm:$0xff]  }
 0x16d   :  { %2261 = vmatprep.mubr.bf16.mxu0 %v9789_v0  ;;  %2434 = vmatprep.mubr.bf16.mxu1 %v9789_v0 }
 0x174   :  { %2262 = vmatmul.mubr.bf16.gmra.mrb[48].mxu0 %v9382_v45  ;;  %2435 = vmatmul.mubr.bf16.gmra.mrb[48].mxu1 %v9382_v45  ;;  %v9490_v45 = vld [vmem:[#allocation5 + $0x30] ss:$8 sps:$4 sm:$0xff]  }
 0x175   :  { %2271 = vmatprep.mubr.bf16.mxu0 %v9789_v0  ;;  %2444 = vmatprep.mubr.bf16.mxu1 %v9789_v0 }
 0x17c   :  { %2272 = vmatmul.mubr.bf16.gmra.mrb[52].mxu0 %v9389_v46  ;;  %2445 = vmatmul.mubr.bf16.gmra.mrb[52].mxu1 %v9389_v46  ;;  %v9486_v46 = vld [vmem:[#allocation5 + $0x144] ss:$8 sps:$4 sm:$0xff]  }
 0x17d   :  { %3129 = vmatprep.mubr.bf16.mxu0 %v9789_v0  ;;  %3302 = vmatprep.mubr.bf16.mxu1 %v9789_v0 }
 0x184   :  { %3130 = vmatmul.mubr.bf16.vlgmr.msra.gmra.mrb[0].mxu0 %v9390_v47  ;;  %3303 = vmatmul.mubr.bf16.vlgmr.msra.gmra.mrb[0].mxu1 %v9390_v47  ;;  %v9498_v47 = vld [vmem:[#allocation5 + $0x44] ss:$8 sps:$4 sm:$0xff]  }
 0x185   :  { %4086 = vmatpush1.bf16.msra.mxu0 %v9391_v48  ;;  %4259 = vmatpush1.bf16.msra.mxu1 %v9394_v49  ;;  %v9454_v48 = vld [vmem:[%s11154_s0 + $0x20] sm:$0xff]   ;;  %v9484_v49 = vld [vmem:[#allocation5 + $0x140] ss:$8 sps:$4 sm:$0xff]  }
 0x186   :  { %3139 = vmatprep.mubr.bf16.mxu0 %v9789_v0  ;;  %3312 = vmatprep.mubr.bf16.mxu1 %v9789_v0 }
 0x187   :  { %4087 = vmatprep.subr.bf16.mxu0 %v9400_v50  ;;  %4260 = vmatprep.subr.bf16.mxu1 %v9403_v51  ;;  %v9496_v50 = vld [vmem:[#allocation5 + $0x40] ss:$8 sps:$4 sm:$0xff]   ;;  %v9495_v51 = vld [vmem:[#allocation5 + $0x154] ss:$8 sps:$4 sm:$0xff]  }
 0x189   :  { %4088 = vmatpush1.bf16.msra.mxu0 %v9398_v52  ;;  %4261 = vmatpush1.bf16.msra.mxu1 %v9401_v53  ;;  %v9501_v52 = vld [vmem:[#allocation5 + $0x54] ss:$8 sps:$4 sm:$0xff]   ;;  %v9493_v53 = vld [vmem:[#allocation5 + $0x150] ss:$8 sps:$4 sm:$0xff]  }
 0x18a   :  { %4089 = vmatprep.subr.bf16.mxu0 %v9408_v54  ;;  %4262 = vmatprep.subr.bf16.mxu1 %v9411_v55  ;;  %v9499_v54 = vld [vmem:[#allocation5 + $0x50] ss:$8 sps:$4 sm:$0xff]   ;;  %v9504_v55 = vld [vmem:[#allocation5 + $0x164] ss:$8 sps:$4 sm:$0xff]  }
 0x18c   :  { %3140 = vmatmul.mubr.bf16.gmra.mrb[4].mxu0 %v9397_v56  ;;  %3313 = vmatmul.mubr.bf16.gmra.mrb[4].mxu1 %v9397_v56  ;;  %v9507_v56 = vld [vmem:[#allocation5 + $0x64] ss:$8 sps:$4 sm:$0xff]  }
 0x18d   :  { %3149 = vmatprep.mubr.bf16.mxu0 %v9789_v0  ;;  %3322 = vmatprep.mubr.bf16.mxu1 %v9789_v0 }
 0x18e   :  { %4090 = vmatpush1.bf16.msra.mxu0 %v9406_v57  ;;  %4263 = vmatpush1.bf16.msra.mxu1 %v9409_v58  ;;  %v9455_v57 = vld [vmem:[%s11154_s0 + $0x28] sm:$0xff]   ;;  %v9502_v58 = vld [vmem:[#allocation5 + $0x160] ss:$8 sps:$4 sm:$0xff]  }
 0x18f   :  { %4091 = vmatprep.subr.bf16.mxu0 %v9416_v59  ;;  %4264 = vmatprep.subr.bf16.mxu1 %v9419_v60  ;;  %v9505_v59 = vld [vmem:[#allocation5 + $0x60] ss:$8 sps:$4 sm:$0xff]   ;;  %v9510_v60 = vld [vmem:[#allocation5 + $0x74] ss:$8 sps:$4 sm:$0xff]  }
 0x192   :  { %4092 = vmatpush1.bf16.msra.mxu0 %v9414_v61  ;;  %4265 = vmatpush1.bf16.msra.mxu1 %v9417_v62  ;;  %v9513_v61 = vld [vmem:[#allocation5 + $0x174] ss:$8 sps:$4 sm:$0xff]   ;;  %v9508_v62 = vld [vmem:[#allocation5 + $0x70] ss:$8 sps:$4 sm:$0xff]  }
 0x193   :  { %4093 = vmatprep.subr.bf16.mxu0 %v9424_v63  ;;  %4266 = vmatprep.subr.bf16.mxu1 %v9427_v1  ;;  %v9511_v63 = vld [vmem:[#allocation5 + $0x170] ss:$8 sps:$4 sm:$0xff]   ;;  %v9516_v1 = vld [vmem:[#allocation5 + $0x84] ss:$8 sps:$4 sm:$0xff]  }
 0x194   :  { %3150 = vmatmul.mubr.bf16.gmra.mrb[8].mxu0 %v9404_v2  ;;  %3323 = vmatmul.mubr.bf16.gmra.mrb[8].mxu1 %v9404_v2  ;;  %v9456_v2 = vld [vmem:[%s11154_s0 + $0x30] sm:$0xff]  }
 0x195   :  { %3159 = vmatprep.mubr.bf16.mxu0 %v9789_v0  ;;  %3332 = vmatprep.mubr.bf16.mxu1 %v9789_v0 }
 0x196   :  { %4094 = vmatpush1.bf16.msra.mxu0 %v9422_v3  ;;  %4267 = vmatpush1.bf16.msra.mxu1 %v9425_v4  ;;  %v9514_v3 = vld [vmem:[#allocation5 + $0x80] ss:$8 sps:$4 sm:$0xff]  }
 0x197   :  { %4095 = vmatprep.subr.bf16.mxu0 %v9431_v5  ;;  %4268 = vmatprep.subr.bf16.mxu1 %v9434_v6  ;;  %v9457_v4 = vld [vmem:[%s11154_s0 + $0x38] sm:$0xff]   ;;  %v9458_v5 = vld [vmem:[%s11154_s0 + $0x40] sm:$0xff]   ;;  %v9459_v6 = vld [vmem:[%s11154_s0 + $0x48] sm:$0xff]  }
 0x19a   :  { %4096 = vmatpush1.bf16.msra.mxu0 %v9429_v7  ;;  %4269 = vmatpush1.bf16.msra.mxu1 %v9432_v8  ;;  %v9460_v7 = vld [vmem:[%s11154_s0 + $0x50] sm:$0xff]   ;;  %v9461_v8 = vld [vmem:[%s11154_s0 + $0x58] sm:$0xff]  }
 0x19b   :  { %4097 = vmatprep.subr.bf16.mxu0 %v9439_v9  ;;  %4270 = vmatprep.subr.bf16.mxu1 %v9442_v10  ;;  %v9462_v9 = vld [vmem:[%s11154_s0 + $0x60] sm:$0xff]  }
 0x19c   :  { %3160 = vmatmul.mubr.bf16.gmra.mrb[12].mxu0 %v9405_v11  ;;  %3333 = vmatmul.mubr.bf16.gmra.mrb[12].mxu1 %v9405_v11  ;;  %v9522_v10 = vld [vmem:[#allocation5 + $0x94] ss:$8 sps:$4 sm:$0xff]   ;;  %v9520_v11 = vld [vmem:[#allocation5 + $0x90] ss:$8 sps:$4 sm:$0xff]  }
 0x19d   :  { %3169 = vmatprep.mubr.bf16.mxu0 %v9789_v0  ;;  %3342 = vmatprep.mubr.bf16.mxu1 %v9789_v0 }
 0x19e   :  { %4098 = vmatpush1.bf16.msra.mxu0 %v9437_v12  ;;  %4271 = vmatpush1.bf16.msra.mxu1 %v9440_v13  ;;  %v9525_v12 = vld [vmem:[#allocation5 + $0xa4] ss:$8 sps:$4 sm:$0xff]   ;;  %v9523_v13 = vld [vmem:[#allocation5 + $0xa0] ss:$8 sps:$4 sm:$0xff]  }
 0x19f   :  { %4099 = vmatprep.subr.bf16.mxu0 %v9447_v14  ;;  %4272 = vmatprep.subr.bf16.mxu1 %v9450_v15  ;;  %v9463_v14 = vld [vmem:[%s11154_s0 + $0x68] sm:$0xff]  }
 0x1a0   :  { %v9531_v15 = vld [vmem:[#allocation5 + $0xb4] ss:$8 sps:$4 sm:$0xff]  }
 0x1a2   :  { %4100 = vmatpush1.bf16.msra.mxu0 %v9445_v16  ;;  %4273 = vmatpush1.bf16.msra.mxu1 %v9448_v17  ;;  %v9529_v16 = vld [vmem:[#allocation5 + $0xb0] ss:$8 sps:$4 sm:$0xff]   ;;  %v9534_v17 = vld [vmem:[#allocation5 + $0xc4] ss:$8 sps:$4 sm:$0xff]  }
 0x1a3   :  { %5614 = vmatprep.subr.bf16.mxu0 %v9468_v26  ;;  %5261 = vmatprep.subr.bf16.mxu1 %v9477_v27  ;;  %v9543_v26 = vld [vmem:[#allocation5 + $0xe4] ss:$8 sps:$4 sm:$0xff]   ;;  %v9541_v27 = vld [vmem:[#allocation5 + $0xe0] ss:$8 sps:$4 sm:$0xff]  }
 0x1a4   :  { %3170 = vmatmul.mubr.bf16.gmra.mrb[16].mxu0 %v9412_v18  ;;  %3343 = vmatmul.mubr.bf16.gmra.mrb[16].mxu1 %v9412_v18  ;;  %v9532_v18 = vld [vmem:[#allocation5 + $0xc0] ss:$8 sps:$4 sm:$0xff]  }
 0x1a5   :  { %3179 = vmatprep.mubr.bf16.mxu0 %v9789_v0  ;;  %3352 = vmatprep.mubr.bf16.mxu1 %v9789_v0 }
 0x1ac   :  { %3180 = vmatmul.mubr.bf16.gmra.mrb[20].mxu0 %v9413_v19  ;;  %3353 = vmatmul.mubr.bf16.gmra.mrb[20].mxu1 %v9413_v19  ;;  %v9519_v19 = vld [vmem:[#allocation5 + $0x184] ss:$8 sps:$4 sm:$0xff]  }
 0x1ad   :  { %3189 = vmatprep.mubr.bf16.mxu0 %v9789_v0  ;;  %3362 = vmatprep.mubr.bf16.mxu1 %v9789_v0 }
 0x1b4   :  { %3190 = vmatmul.mubr.bf16.gmra.mrb[24].mxu0 %v9420_v20  ;;  %3363 = vmatmul.mubr.bf16.gmra.mrb[24].mxu1 %v9420_v20  ;;  %v9464_v20 = vld [vmem:[%s11154_s0 + $0x70] sm:$0xff]  }
 0x1b5   :  { %3199 = vmatprep.mubr.bf16.mxu0 %v9789_v0  ;;  %3372 = vmatprep.mubr.bf16.mxu1 %v9789_v0 }
 0x1bc   :  { %3200 = vmatmul.mubr.bf16.gmra.mrb[28].mxu0 %v9421_v21  ;;  %3373 = vmatmul.mubr.bf16.gmra.mrb[28].mxu1 %v9421_v21  ;;  %v9517_v21 = vld [vmem:[#allocation5 + $0x180] ss:$8 sps:$4 sm:$0xff]  }
 0x1bd   :  { %3209 = vmatprep.mubr.bf16.mxu0 %v9789_v0  ;;  %3382 = vmatprep.mubr.bf16.mxu1 %v9789_v0 }
 0x1c4   :  { %3210 = vmatmul.mubr.bf16.gmra.mrb[32].mxu0 %v9428_v22  ;;  %3383 = vmatmul.mubr.bf16.gmra.mrb[32].mxu1 %v9428_v22  ;;  %v9540_v22 = vld [vmem:[#allocation5 + $0xd4] ss:$8 sps:$4 sm:$0xff]  }
 0x1c5   :  { %3219 = vmatprep.mubr.bf16.mxu0 %v9789_v0  ;;  %3392 = vmatprep.mubr.bf16.mxu1 %v9789_v0 }
 0x1cc   :  { %3220 = vmatmul.mubr.bf16.gmra.mrb[36].mxu0 %v9435_v23  ;;  %3393 = vmatmul.mubr.bf16.gmra.mrb[36].mxu1 %v9435_v23  ;;  %v9528_v23 = vld [vmem:[#allocation5 + $0x194] ss:$8 sps:$4 sm:$0xff]  }
 0x1cd   :  { %3229 = vmatprep.mubr.bf16.mxu0 %v9789_v0  ;;  %3402 = vmatprep.mubr.bf16.mxu1 %v9789_v0 }
 0x1d4   :  { %3230 = vmatmul.mubr.bf16.gmra.mrb[40].mxu0 %v9436_v24  ;;  %3403 = vmatmul.mubr.bf16.gmra.mrb[40].mxu1 %v9436_v24  ;;  %v9538_v24 = vld [vmem:[#allocation5 + $0xd0] ss:$8 sps:$4 sm:$0xff]  }
 0x1d5   :  { %3239 = vmatprep.mubr.bf16.mxu0 %v9789_v0  ;;  %3412 = vmatprep.mubr.bf16.mxu1 %v9789_v0 }
 0x1dc   :  { %3240 = vmatmul.mubr.bf16.gmra.mrb[44].mxu0 %v9443_v25  ;;  %3413 = vmatmul.mubr.bf16.gmra.mrb[44].mxu1 %v9443_v25  ;;  %v9526_v25 = vld [vmem:[#allocation5 + $0x190] ss:$8 sps:$4 sm:$0xff]  }
 0x1dd   :  { %3249 = vmatprep.mubr.bf16.mxu0 %v9789_v0  ;;  %3422 = vmatprep.mubr.bf16.mxu1 %v9789_v0 }
 0x1e4   :  { %3250 = vmatmul.mubr.bf16.gmra.mrb[48].mxu0 %v9444_v28  ;;  %3423 = vmatmul.mubr.bf16.gmra.mrb[48].mxu1 %v9444_v28  ;;  %v9537_v28 = vld [vmem:[#allocation5 + $0x1a4] ss:$8 sps:$4 sm:$0xff]  }
 0x1e5   :  { %3259 = vmatprep.mubr.bf16.mxu0 %v9789_v0  ;;  %3432 = vmatprep.mubr.bf16.mxu1 %v9789_v0 }
 0x1ec   :  { %3260 = vmatmul.mubr.bf16.gmra.mrb[52].mxu0 %v9451_v29  ;;  %3433 = vmatmul.mubr.bf16.gmra.mrb[52].mxu1 %v9451_v29  ;;  %v9465_v29 = vld [vmem:[%s11154_s0 + $0x78] sm:$0xff]  }
 0x1ed   :  { %4117 = vmatprep.mubr.bf16.mxu0 %v9789_v0  ;;  %4290 = vmatprep.mubr.bf16.mxu1 %v9789_v0 }
 0x1f4   :  { %4118 = vmatmul.mubr.bf16.vlgmr.msra.gmra.mrb[0].mxu0 %v9452_v30  ;;  %4291 = vmatmul.mubr.bf16.vlgmr.msra.gmra.mrb[0].mxu1 %v9452_v30  ;;  %v9535_v30 = vld [vmem:[#allocation5 + $0x1a0] ss:$8 sps:$4 sm:$0xff]  }
 0x1f5   :  { %4127 = vmatprep.mubr.bf16.mxu0 %v9789_v0  ;;  %4300 = vmatprep.mubr.bf16.mxu1 %v9789_v0 }
 0x1f6   :  { %5615 = vmatpush1.bf16.msra.mxu0 %v9466_v31  ;;  %5262 = vmatpush1.bf16.msra.mxu1 %v9475_v32  ;;  %v9549_v31 = vld [vmem:[#allocation5 + $0xf4] ss:$8 sps:$4 sm:$0xff]   ;;  %v9547_v32 = vld [vmem:[#allocation5 + $0xf0] ss:$8 sps:$4 sm:$0xff]  }
 0x1f7   :  { %5616 = vmatprep.subr.bf16.mxu0 %v9471_v33  ;;  %5263 = vmatprep.subr.bf16.mxu1 %v9483_v34  ;;  %v9546_v33 = vld [vmem:[#allocation5 + $0x1b4] ss:$8 sps:$4 sm:$0xff]   ;;  %v9552_v34 = vld [vmem:[#allocation5 + $0x1c4] ss:$8 sps:$4 sm:$0xff]  }
 0x1fa   :  { %5617 = vmatpush1.bf16.msra.mxu0 %v9469_v35  ;;  %5264 = vmatpush1.bf16.msra.mxu1 %v9481_v36  ;;  %v9550_v35 = vld [vmem:[#allocation5 + $0x1c0] ss:$8 sps:$4 sm:$0xff]   ;;  %v9555_v36 = vld [vmem:[#allocation5 + $0x1d4] ss:$8 sps:$4 sm:$0xff]  }
 0x1fb   :  { %5618 = vmatprep.subr.bf16.mxu0 %v9474_v37  ;;  %5265 = vmatprep.subr.bf16.mxu1 %v9489_v38  ;;  %v9553_v37 = vld [vmem:[#allocation5 + $0x1d0] ss:$8 sps:$4 sm:$0xff]   ;;  %v9558_v38 = vld [vmem:[#allocation5 + $0x1e4] ss:$8 sps:$4 sm:$0xff]  }
 0x1fc   :  { %4128 = vmatmul.mubr.bf16.gmra.mrb[4].mxu0 %v9453_v39  ;;  %4301 = vmatmul.mubr.bf16.gmra.mrb[4].mxu1 %v9453_v39  ;;  %v9556_v39 = vld [vmem:[#allocation5 + $0x1e0] ss:$8 sps:$4 sm:$0xff]  }
 0x1fd   :  { %4137 = vmatprep.mubr.bf16.mxu0 %v9789_v0  ;;  %4310 = vmatprep.mubr.bf16.mxu1 %v9789_v0 }
 0x1fe   :  { %5619 = vmatpush1.bf16.msra.mxu0 %v9472_v40  ;;  %5266 = vmatpush1.bf16.msra.mxu1 %v9487_v41  ;;  %v9561_v40 = vld [vmem:[#allocation5 + $0x1f4] ss:$8 sps:$4 sm:$0xff]   ;;  %v9559_v41 = vld [vmem:[#allocation5 + $0x1f0] ss:$8 sps:$4 sm:$0xff]  }
 0x1ff   :  { %5620 = vmatprep.subr.bf16.mxu0 %v9480_v42  ;;  %5267 = vmatprep.subr.bf16.mxu1 %v9492_v43  ;;  %v9564_v42 = vld [vmem:[#allocation5 + $0x204] ss:$8 sps:$4 sm:$0xff]   ;;  %v4965_v43 = vlaneseq }
 0x202   :  { %5621 = vmatpush1.bf16.msra.mxu0 %v9478_v44  ;;  %5268 = vmatpush1.bf16.msra.mxu1 %v9490_v45 }
 0x203   :  { %5622 = vmatprep.subr.bf16.mxu0 %v9486_v46  ;;  %5269 = vmatprep.subr.bf16.mxu1 %v9498_v47 }
 0x204   :  { %4138 = vmatmul.mubr.bf16.gmra.mrb[8].mxu0 %v9454_v48  ;;  %4311 = vmatmul.mubr.bf16.gmra.mrb[8].mxu1 %v9454_v48  ;;  %v4966_v48 = vshrl.u32 %v4965_v43, 7 }
 0x205   :  { %4147 = vmatprep.mubr.bf16.mxu0 %v9789_v0  ;;  %4320 = vmatprep.mubr.bf16.mxu1 %v9789_v0 }
 0x206   :  { %5623 = vmatpush1.bf16.msra.mxu0 %v9484_v49  ;;  %5270 = vmatpush1.bf16.msra.mxu1 %v9496_v50 }
 0x207   :  { %5624 = vmatprep.subr.bf16.mxu0 %v9495_v51  ;;  %5271 = vmatprep.subr.bf16.mxu1 %v9501_v52 }
 0x20a   :  { %5625 = vmatpush1.bf16.msra.mxu0 %v9493_v53  ;;  %5272 = vmatpush1.bf16.msra.mxu1 %v9499_v54 }
 0x20b   :  { %5626 = vmatprep.subr.bf16.mxu0 %v9504_v55  ;;  %5273 = vmatprep.subr.bf16.mxu1 %v9507_v56 }
 0x20c   :  { %4148 = vmatmul.mubr.bf16.gmra.mrb[12].mxu0 %v9455_v57  ;;  %4321 = vmatmul.mubr.bf16.gmra.mrb[12].mxu1 %v9455_v57 }
 0x20d   :  { %4157 = vmatprep.mubr.bf16.mxu0 %v9789_v0  ;;  %4330 = vmatprep.mubr.bf16.mxu1 %v9789_v0 }
 0x20e   :  { %5627 = vmatpush1.bf16.msra.mxu0 %v9502_v58  ;;  %5274 = vmatpush1.bf16.msra.mxu1 %v9505_v59  ;;  %v4967_v58 = vsub.s32 0, %v4966_v48  ;;  %v4963_v59 = vld [vmem:[%s11156_s2] sm:$0x3] }
 0x20f   :  { %5275 = vmatprep.subr.bf16.mxu1 %v9510_v60  ;;  %5628 = vmatprep.subr.bf16.mxu0 %v9513_v61  ;;  %v4971_v61 = vsub.s32 1, %v4966_v48 }
 0x212   :  { %5276 = vmatpush1.bf16.msra.mxu1 %v9508_v62  ;;  %5629 = vmatpush1.bf16.msra.mxu0 %v9511_v63 }
 0x213   :  { %5277 = vmatprep.subr.bf16.mxu1 %v9516_v1  ;;  %5630 = vmatprep.subr.bf16.mxu0 %v9519_v19  ;;  %v10697_v1 = vrot.slane %v4963_v59, %v4967_v58 }
 0x214   :  { %4158 = vmatmul.mubr.bf16.gmra.mrb[16].mxu0 %v9456_v2  ;;  %4331 = vmatmul.mubr.bf16.gmra.mrb[16].mxu1 %v9456_v2 }
 0x215   :  { %4167 = vmatprep.mubr.bf16.mxu0 %v9789_v0  ;;  %4340 = vmatprep.mubr.bf16.mxu1 %v9789_v0 }
 0x216   :  { %5278 = vmatpush1.bf16.msra.mxu1 %v9514_v3  ;;  %5631 = vmatpush1.bf16.msra.mxu0 %v9517_v21 }
 0x217   :  { %5279 = vmatprep.subr.bf16.mxu1 %v9522_v10  ;;  %5632 = vmatprep.subr.bf16.mxu0 %v9528_v23 }
 0x21a   :  { %5280 = vmatpush1.bf16.msra.mxu1 %v9520_v11  ;;  %5633 = vmatpush1.bf16.msra.mxu0 %v9526_v25 }
 0x21b   :  { %5281 = vmatprep.subr.bf16.mxu1 %v9525_v12  ;;  %5634 = vmatprep.subr.bf16.mxu0 %v9537_v28 }
 0x21c   :  { %4168 = vmatmul.mubr.bf16.gmra.mrb[20].mxu0 %v9457_v4  ;;  %4341 = vmatmul.mubr.bf16.gmra.mrb[20].mxu1 %v9457_v4  ;;  %v10699_v4 = vrot.slane %v4963_v59, %v4971_v61 }
 0x21d   :  { %4177 = vmatprep.mubr.bf16.mxu0 %v9789_v0  ;;  %4350 = vmatprep.mubr.bf16.mxu1 %v9789_v0 }
 0x21e   :  { %5282 = vmatpush1.bf16.msra.mxu1 %v9523_v13  ;;  %5635 = vmatpush1.bf16.msra.mxu0 %v9535_v30 }
 0x21f   :  { %5283 = vmatprep.subr.bf16.mxu1 %v9531_v15  ;;  %5636 = vmatprep.subr.bf16.mxu0 %v9546_v33 }
 0x222   :  { %5284 = vmatpush1.bf16.msra.mxu1 %v9529_v16 }
 0x223   :  { %5285 = vmatprep.subr.bf16.mxu1 %v9534_v17 }
 0x224   :  { %4178 = vmatmul.mubr.bf16.gmra.mrb[24].mxu0 %v9458_v5  ;;  %4351 = vmatmul.mubr.bf16.gmra.mrb[24].mxu1 %v9458_v5 }
 0x225   :  { %4187 = vmatprep.mubr.bf16.mxu0 %v9789_v0  ;;  %4360 = vmatprep.mubr.bf16.mxu1 %v9789_v0 }
 0x226   :  { %5286 = vmatpush1.bf16.msra.mxu1 %v9532_v18 }
 0x227   :  { %5287 = vmatprep.subr.bf16.mxu1 %v9540_v22 }
 0x22a   :  { %5288 = vmatpush1.bf16.msra.mxu1 %v9538_v24 }
 0x22b   :  { %5289 = vmatprep.subr.bf16.mxu1 %v9543_v26 }
 0x22c   :  { %4188 = vmatmul.mubr.bf16.gmra.mrb[28].mxu0 %v9459_v6  ;;  %4361 = vmatmul.mubr.bf16.gmra.mrb[28].mxu1 %v9459_v6 }
 0x22d   :  { %4197 = vmatprep.mubr.bf16.mxu0 %v9789_v0  ;;  %4370 = vmatprep.mubr.bf16.mxu1 %v9789_v0 }
 0x22e   :  { %5290 = vmatpush1.bf16.msra.mxu1 %v9541_v27 }
 0x22f   :  { %5291 = vmatprep.subr.bf16.mxu1 %v9549_v31 }
 0x232   :  { %5292 = vmatpush1.bf16.msra.mxu1 %v9547_v32 }
 0x234   :  { %4198 = vmatmul.mubr.bf16.gmra.mrb[32].mxu0 %v9460_v7  ;;  %4371 = vmatmul.mubr.bf16.gmra.mrb[32].mxu1 %v9460_v7 }
 0x235   :  { %4207 = vmatprep.mubr.bf16.mxu0 %v9789_v0  ;;  %4380 = vmatprep.mubr.bf16.mxu1 %v9789_v0 }
 0x23c   :  { %4208 = vmatmul.mubr.bf16.gmra.mrb[36].mxu0 %v9461_v8  ;;  %4381 = vmatmul.mubr.bf16.gmra.mrb[36].mxu1 %v9461_v8 }
 0x23d   :  { %4217 = vmatprep.mubr.bf16.mxu0 %v9789_v0  ;;  %4390 = vmatprep.mubr.bf16.mxu1 %v9789_v0 }
 0x244   :  { %4218 = vmatmul.mubr.bf16.gmra.mrb[40].mxu0 %v9462_v9  ;;  %4391 = vmatmul.mubr.bf16.gmra.mrb[40].mxu1 %v9462_v9 }
 0x245   :  { %4227 = vmatprep.mubr.bf16.mxu0 %v9789_v0  ;;  %4400 = vmatprep.mubr.bf16.mxu1 %v9789_v0 }
 0x24c   :  { %4228 = vmatmul.mubr.bf16.gmra.mrb[44].mxu0 %v9463_v14  ;;  %4401 = vmatmul.mubr.bf16.gmra.mrb[44].mxu1 %v9463_v14 }
 0x24d   :  { %4237 = vmatprep.mubr.bf16.mxu0 %v9789_v0  ;;  %4410 = vmatprep.mubr.bf16.mxu1 %v9789_v0 }
 0x254   :  { %4238 = vmatmul.mubr.bf16.gmra.mrb[48].mxu0 %v9464_v20  ;;  %4411 = vmatmul.mubr.bf16.gmra.mrb[48].mxu1 %v9464_v20 }
 0x255   :  { %4247 = vmatprep.mubr.bf16.mxu0 %v9789_v0  ;;  %4420 = vmatprep.mubr.bf16.mxu1 %v9789_v0  ;;  %v9544_v0 = vld [vmem:[#allocation5 + $0x1b0] ss:$8 sps:$4 sm:$0xff]  }
 0x256   :  { %5637 = vmatpush1.bf16.msra.mxu0 %v9544_v0 }
 0x257   :  { %5638 = vmatprep.subr.bf16.mxu0 %v9552_v34 }
 0x25a   :  { %5639 = vmatpush1.bf16.msra.mxu0 %v9550_v35 }
 0x25b   :  { %5640 = vmatprep.subr.bf16.mxu0 %v9555_v36 }
 0x25c   :  { %4248 = vmatmul.mubr.bf16.gmra.mrb[52].mxu0 %v9465_v29  ;;  %4421 = vmatmul.mubr.bf16.gmra.mrb[52].mxu1 %v9465_v29 }
 0x25e   :  { %5641 = vmatpush1.bf16.msra.mxu0 %v9553_v37 }
 0x25f   :  { %5642 = vmatprep.subr.bf16.mxu0 %v9558_v38 }
 0x262   :  { %5643 = vmatpush1.bf16.msra.mxu0 %v9556_v39 }
 0x263   :  { %5644 = vmatprep.subr.bf16.mxu0 %v9561_v40 }
 0x266   :  { %5645 = vmatpush1.bf16.msra.mxu0 %v9559_v41 }
 0x267   :  { %5960 = vmatprep.subr.bf16.mxu0 %v9564_v42 }
 0x2c7   :  { %v4119_v44 = vpop.f32.mrb[0].mxu0  ;;  %v4292_v45 = vpop.f32.mrb[0].mxu1 }
 0x2c8   :  { %v4121_v46 = vpop.f32.mrb[1].mxu0  ;;  %v4294_v47 = vpop.f32.mrb[1].mxu1 }
 0x2c9   :  { %v4123_v49 = vpop.f32.mrb[2].mxu0  ;;  %v4296_v50 = vpop.f32.mrb[2].mxu1 }
 0x2ca   :  { %v4879_v51 = vmax.f32 %v4119_v44, %v4123_v49  ;;  %v4881_v52 = vmax.f32 %v4292_v45, %v4296_v50  ;;  %v4125_v53 = vpop.f32.mrb[3].mxu0  ;;  %v4298_v54 = vpop.f32.mrb[3].mxu1 }
 0x2cb   :  { %v4880_v55 = vmax.f32 %v4121_v46, %v4125_v53  ;;  %v4882_v56 = vmax.f32 %v4294_v47, %v4298_v54 }
 0x2cc   :  { %v4935_v57 = vmax.f32 %v4879_v51, %v4881_v52 }
 0x2cd   :  { %v4936_v60 = vmax.f32 %v4880_v55, %v4882_v56 }
 0x2ce   :  { %v4975_v13 = vadd.f32 %v10697_v1, %v4935_v57 }
 0x2cf   :  { %v4129_v62 = vpop.f32.mrb[4].mxu0  ;;  %v4302_v63 = vpop.f32.mrb[4].mxu1  ;;  %v4976_v15 = vadd.f32 %v10699_v4, %v4936_v60 }
 0x2d0   :  { %v4131_v2 = vpop.f32.mrb[5].mxu0  ;;  %v4304_v3 = vpop.f32.mrb[5].mxu1  ;;  %v5003_v21 = vmax.f32 %v4975_v13, 0.0 }
 0x2d1   :  { %v4133_v5 = vpop.f32.mrb[6].mxu0  ;;  %v4306_v6 = vpop.f32.mrb[6].mxu1  ;;  %v5004_v25 = vmax.f32 %v4976_v15, 0.0 }
 0x2d2   :  { %v4883_v7 = vmax.f32 %v4129_v62, %v4133_v5  ;;  %v4885_v8 = vmax.f32 %v4302_v63, %v4306_v6  ;;  %v4135_v9 = vpop.f32.mrb[7].mxu0  ;;  %v4308_v10 = vpop.f32.mrb[7].mxu1 }
 0x2d3   :  { %v4884_v11 = vmax.f32 %v4131_v2, %v4135_v9  ;;  %v4886_v12 = vmax.f32 %v4304_v3, %v4308_v10 }
 0x2d4   :  { %v4937_v14 = vmax.f32 %v4883_v7, %v4885_v8 }
 0x2d5   :  { %v4938_v16 = vmax.f32 %v4884_v11, %v4886_v12 }
 0x2d6   :  { %v4977_v17 = vadd.f32 %v10697_v1, %v4937_v14 }
 0x2d7   :  { %v4978_v18 = vadd.f32 %v10699_v4, %v4938_v16  ;;  %v4139_v19 = vpop.f32.mrb[8].mxu0  ;;  %v4312_v20 = vpop.f32.mrb[8].mxu1 }
 0x2d8   :  { %v5005_v22 = vmax.f32 %v4977_v17, 0.0  ;;  %v4141_v23 = vpop.f32.mrb[9].mxu0  ;;  %v4314_v24 = vpop.f32.mrb[9].mxu1 }
 0x2d9   :  { %v5006_v26 = vmax.f32 %v4978_v18, 0.0  ;;  %v4143_v27 = vpop.f32.mrb[10].mxu0  ;;  %v4316_v28 = vpop.f32.mrb[10].mxu1 }
 0x2da   :  { %v5031_v29 = vpack.c.bf16 %v5005_v22, %v5003_v21  ;;  %v4887_v30 = vmax.f32 %v4139_v19, %v4143_v27  ;;  %v4889_v31 = vmax.f32 %v4312_v20, %v4316_v28  ;;  %v4145_v32 = vpop.f32.mrb[11].mxu0  ;;  %v4318_v33 = vpop.f32.mrb[11].mxu1  ;;  %v9562_v21 = vld [vmem:[#allocation5 + $0x200] ss:$8 sps:$4 sm:$0xff]  }
 0x2db   :  { %v5032_v0 = vpack.c.bf16 %v5006_v26, %v5004_v25  ;;  %v4888_v34 = vmax.f32 %v4141_v23, %v4145_v32  ;;  %v4890_v35 = vmax.f32 %v4314_v24, %v4318_v33  ;;  %v9567_v25 = vld [vmem:[#allocation5 + $0x214] ss:$8 sps:$4 sm:$0xff]  }
 0x2dc   :  { %5045 = vst [vmem:[#allocation3] sm:$0xff] %v5031_v29  ;;  %v4939_v36 = vmax.f32 %v4887_v30, %v4889_v31 }
 0x2dd   :  { %5046 = vst [vmem:[#allocation3 + $0x8] sm:$0xff] %v5032_v0  ;;  %v4940_v37 = vmax.f32 %v4888_v34, %v4890_v35  ;;  %5293 = vmatprep.mubr.bf16.mxu1 %v5032_v0  ;;  %v9565_v34 = vld [vmem:[#allocation5 + $0x210] ss:$8 sps:$4 sm:$0xff]  }
 0x2de   :  { %5294 = vmatmul.mubr.bf16.vlgmr.msra.gmra.mrb[56].mxu1 %v5031_v29  ;;  %v4979_v50 = vadd.f32 %v10697_v1, %v4939_v36 }
 0x2df   :  { %v4149_v38 = vpop.f32.mrb[12].mxu0  ;;  %v4322_v39 = vpop.f32.mrb[12].mxu1  ;;  %v4980_v52 = vadd.f32 %v10699_v4, %v4940_v37  ;;  %v9570_v37 = vld [vmem:[#allocation5 + $0x224] ss:$8 sps:$4 sm:$0xff]  }
 0x2e0   :  { %v4151_v40 = vpop.f32.mrb[13].mxu0  ;;  %v4324_v41 = vpop.f32.mrb[13].mxu1  ;;  %v5007_v58 = vmax.f32 %v4979_v50, 0.0 }
 0x2e1   :  { %v4153_v42 = vpop.f32.mrb[14].mxu0  ;;  %v4326_v43 = vpop.f32.mrb[14].mxu1  ;;  %v5008_v62 = vmax.f32 %v4980_v52, 0.0 }
 0x2e2   :  { %v4891_v44 = vmax.f32 %v4149_v38, %v4153_v42  ;;  %v4893_v45 = vmax.f32 %v4322_v39, %v4326_v43  ;;  %v4155_v46 = vpop.f32.mrb[15].mxu0  ;;  %v4328_v47 = vpop.f32.mrb[15].mxu1  ;;  %v9568_v43 = vld [vmem:[#allocation5 + $0x220] ss:$8 sps:$4 sm:$0xff]  }
 0x2e3   :  { %v4892_v48 = vmax.f32 %v4151_v40, %v4155_v46  ;;  %v4894_v49 = vmax.f32 %v4324_v41, %v4328_v47  ;;  %v5364_v14 = vld [vmem:[#allocation3] sm:$0xf0] }
 0x2e4   :  { %v4941_v51 = vmax.f32 %v4891_v44, %v4893_v45  ;;  %v5365_v10 = vld [vmem:[#allocation3 + $0x8] sm:$0xf0]  ;;  %v5422_v20 = vrot.slane %v5364_v14, 4 }
 0x2e5   :  { %v4942_v53 = vmax.f32 %v4892_v48, %v4894_v49  ;;  %v5425_v18 = vrot.slane %v5365_v10, 4  ;;  %v9573_v47 = vld [vmem:[#allocation5 + $0x234] ss:$8 sps:$4 sm:$0xff]   ;;  %v9574_v10 = vld [vmem:[#allocation5 + $0x240] ss:$8 sps:$4 sm:$0xff]  }
 0x2e6   :  { %v4981_v54 = vadd.f32 %v10697_v1, %v4941_v51 }
 0x2e7   :  { %v4982_v55 = vadd.f32 %v10699_v4, %v4942_v53  ;;  %v4159_v56 = vpop.f32.mrb[16].mxu0  ;;  %v4332_v57 = vpop.f32.mrb[16].mxu1 }
 0x2e8   :  { %v5009_v59 = vmax.f32 %v4981_v54, 0.0  ;;  %v4161_v60 = vpop.f32.mrb[17].mxu0  ;;  %v4334_v61 = vpop.f32.mrb[17].mxu1 }
 0x2e9   :  { %v5010_v63 = vmax.f32 %v4982_v55, 0.0  ;;  %v4163_v2 = vpop.f32.mrb[18].mxu0  ;;  %v4336_v3 = vpop.f32.mrb[18].mxu1 }
 0x2ea   :  { %v10709_v5 = vpack.c.bf16 %v5009_v59, %v5007_v58  ;;  %v4895_v6 = vmax.f32 %v4159_v56, %v4163_v2  ;;  %v4897_v7 = vmax.f32 %v4332_v57, %v4336_v3  ;;  %v4165_v8 = vpop.f32.mrb[19].mxu0  ;;  %v4338_v9 = vpop.f32.mrb[19].mxu1  ;;  %v9576_v3 = vld [vmem:[#allocation5 + $0x244] ss:$8 sps:$4 sm:$0xff]  }
 0x2eb   :  { %v10711_v11 = vpack.c.bf16 %v5010_v63, %v5008_v62  ;;  %v4896_v12 = vmax.f32 %v4161_v60, %v4165_v8  ;;  %v4898_v13 = vmax.f32 %v4334_v61, %v4338_v9  ;;  %v9571_v61 = vld [vmem:[#allocation5 + $0x230] ss:$8 sps:$4 sm:$0xff]  }
 0x2ec   :  { %5047 = vst [vmem:[#allocation3 + $0x10] sm:$0xff] %v10709_v5  ;;  %v4943_v15 = vmax.f32 %v4895_v6, %v4897_v7  ;;  %v5423_v16 = vrot.slane %v10709_v5, 4 }
 0x2ed   :  { %5048 = vst [vmem:[#allocation3 + $0x18] sm:$0xff] %v10711_v11  ;;  %v4944_v17 = vmax.f32 %v4896_v12, %v4898_v13  ;;  %5303 = vmatprep.mubr.bf16.mxu1 %v10711_v11  ;;  %v5426_v19 = vrot.slane %v10711_v11, 4 }
 0x2ee   :  { %5304 = vmatmul.mubr.bf16.gmra.mrb[60].mxu1 %v10709_v5  ;;  %v5424_v28 = vsel %vm5421_vm0, %v5422_v20, %v5423_v16  ;;  %v4983_v38 = vadd.f32 %v10697_v1, %v4943_v15  ;;  %v9579_v15 = vld [vmem:[#allocation5 + $0x254] ss:$8 sps:$4 sm:$0xff]  }
 0x2ef   :  { %v4169_v22 = vpop.f32.mrb[20].mxu0  ;;  %v4342_v23 = vpop.f32.mrb[20].mxu1  ;;  %v5427_v24 = vsel %vm5421_vm0, %v5425_v18, %v5426_v19  ;;  %v4984_v40 = vadd.f32 %v10699_v4, %v4944_v17 }
 0x2f0   :  { %v4171_v26 = vpop.f32.mrb[21].mxu0  ;;  %v4344_v27 = vpop.f32.mrb[21].mxu1  ;;  %5646 = vmatprep.mubr.bf16.mxu0 %v5427_v24  ;;  %v5011_v48 = vmax.f32 %v4983_v38, 0.0 }
 0x2f1   :  { %v4173_v29 = vpop.f32.mrb[22].mxu0  ;;  %v4346_v30 = vpop.f32.mrb[22].mxu1  ;;  %5647 = vmatmul.mubr.bf16.vlgmr.msra.gmra.mrb[56].mxu0 %v5424_v28  ;;  %v5012_v52 = vmax.f32 %v4984_v40, 0.0 }
 0x2f2   :  { %v4899_v31 = vmax.f32 %v4169_v22, %v4173_v29  ;;  %v4901_v32 = vmax.f32 %v4342_v23, %v4346_v30  ;;  %v4175_v33 = vpop.f32.mrb[23].mxu0  ;;  %v4348_v0 = vpop.f32.mrb[23].mxu1  ;;  %5961 = vmatpush1.bf16.msra.mxu0 %v9562_v21  ;;  %v9582_v29 = vld [vmem:[#allocation5 + $0x264] ss:$8 sps:$4 sm:$0xff]  }
 0x2f3   :  { %v4900_v35 = vmax.f32 %v4171_v26, %v4175_v33  ;;  %v4902_v36 = vmax.f32 %v4344_v27, %v4348_v0  ;;  %5962 = vmatprep.subr.bf16.mxu0 %v9567_v25  ;;  %v9577_v27 = vld [vmem:[#allocation5 + $0x250] ss:$8 sps:$4 sm:$0xff]   ;;  %v9580_v0 = vld [vmem:[#allocation5 + $0x260] ss:$8 sps:$4 sm:$0xff]  }
 0x2f4   :  { %v4945_v39 = vmax.f32 %v4899_v31, %v4901_v32 }
 0x2f5   :  { %v4946_v41 = vmax.f32 %v4900_v35, %v4902_v36 }
 0x2f6   :  { %v4985_v42 = vadd.f32 %v10697_v1, %v4945_v39  ;;  %5963 = vmatpush1.bf16.msra.mxu0 %v9565_v34 }
 0x2f7   :  { %v4986_v44 = vadd.f32 %v10699_v4, %v4946_v41  ;;  %v4179_v45 = vpop.f32.mrb[24].mxu0  ;;  %v4352_v46 = vpop.f32.mrb[24].mxu1  ;;  %5964 = vmatprep.subr.bf16.mxu0 %v9570_v37  ;;  %v9585_v37 = vld [vmem:[#allocation5 + $0x274] ss:$8 sps:$4 sm:$0xff]  }
 0x2f8   :  { %v5013_v49 = vmax.f32 %v4985_v42, 0.0  ;;  %v4181_v50 = vpop.f32.mrb[25].mxu0  ;;  %v4354_v51 = vpop.f32.mrb[25].mxu1 }
 0x2f9   :  { %v5014_v53 = vmax.f32 %v4986_v44, 0.0  ;;  %v4183_v54 = vpop.f32.mrb[26].mxu0  ;;  %v4356_v55 = vpop.f32.mrb[26].mxu1 }
 0x2fa   :  { %v10729_v56 = vpack.c.bf16 %v5013_v49, %v5011_v48  ;;  %v4903_v57 = vmax.f32 %v4179_v45, %v4183_v54  ;;  %v4905_v58 = vmax.f32 %v4352_v46, %v4356_v55  ;;  %v4185_v59 = vpop.f32.mrb[27].mxu0  ;;  %v4358_v60 = vpop.f32.mrb[27].mxu1  ;;  %5965 = vmatpush1.bf16.msra.mxu0 %v9568_v43  ;;  %v9588_v55 = vld [vmem:[#allocation5 + $0x284] ss:$8 sps:$4 sm:$0xff]  }
 0x2fb   :  { %v10731_v62 = vpack.c.bf16 %v5014_v53, %v5012_v52  ;;  %v4904_v63 = vmax.f32 %v4181_v50, %v4185_v59  ;;  %v4906_v2 = vmax.f32 %v4354_v51, %v4358_v60  ;;  %5966 = vmatprep.subr.bf16.mxu0 %v9573_v47  ;;  %v9583_v51 = vld [vmem:[#allocation5 + $0x270] ss:$8 sps:$4 sm:$0xff]  }
 0x2fc   :  { %5049 = vst [vmem:[#allocation3 + $0x20] sm:$0xff] %v10729_v56  ;;  %v4947_v6 = vmax.f32 %v4903_v57, %v4905_v58  ;;  %v10735_v7 = vrot.slane %v10729_v56, 4 }
 0x2fd   :  { %5050 = vst [vmem:[#allocation3 + $0x28] sm:$0xff] %v10731_v62  ;;  %v4948_v8 = vmax.f32 %v4904_v63, %v4906_v2  ;;  %5313 = vmatprep.mubr.bf16.mxu1 %v10731_v62  ;;  %v10740_v9 = vrot.slane %v10731_v62, 4 }
 0x2fe   :  { %5314 = vmatmul.mubr.bf16.gmra.mrb[64].mxu1 %v10729_v56  ;;  %5967 = vmatpush1.bf16.msra.mxu0 %v9571_v61  ;;  %v5429_v20 = vsel %vm5421_vm0, %v5423_v16, %v10735_v7  ;;  %v4987_v30 = vadd.f32 %v10697_v1, %v4947_v6  ;;  %v9586_v61 = vld [vmem:[#allocation5 + $0x280] ss:$8 sps:$4 sm:$0xff]   ;;  %v9591_v6 = vld [vmem:[#allocation5 + $0x294] ss:$8 sps:$4 sm:$0xff]  }
 0x2ff   :  { %v4189_v12 = vpop.f32.mrb[28].mxu0  ;;  %v4362_v13 = vpop.f32.mrb[28].mxu1  ;;  %v5431_v14 = vsel %vm5421_vm0, %v5426_v19, %v10740_v9  ;;  %5968 = vmatprep.subr.bf16.mxu0 %v9576_v3  ;;  %v4988_v32 = vadd.f32 %v10699_v4, %v4948_v8 }
 0x300   :  { %v4191_v17 = vpop.f32.mrb[29].mxu0  ;;  %v4364_v18 = vpop.f32.mrb[29].mxu1  ;;  %5656 = vmatprep.mubr.bf16.mxu0 %v5431_v14  ;;  %v5015_v38 = vmax.f32 %v4987_v30, 0.0 }
 0x301   :  { %v4193_v21 = vpop.f32.mrb[30].mxu0  ;;  %v4366_v22 = vpop.f32.mrb[30].mxu1  ;;  %5657 = vmatmul.mubr.bf16.gmra.mrb[60].mxu0 %v5429_v20  ;;  %v5016_v42 = vmax.f32 %v4988_v32, 0.0 }
 0x302   :  { %v4907_v23 = vmax.f32 %v4189_v12, %v4193_v21  ;;  %v4909_v24 = vmax.f32 %v4362_v13, %v4366_v22  ;;  %v4195_v25 = vpop.f32.mrb[31].mxu0  ;;  %v4368_v26 = vpop.f32.mrb[31].mxu1  ;;  %5969 = vmatpush1.bf16.msra.mxu0 %v9574_v10  ;;  %v9589_v21 = vld [vmem:[#allocation5 + $0x290] ss:$8 sps:$4 sm:$0xff]  }
 0x303   :  { %v4908_v19 = vmax.f32 %v4191_v17, %v4195_v25  ;;  %v4910_v28 = vmax.f32 %v4364_v18, %v4368_v26  ;;  %5970 = vmatprep.subr.bf16.mxu0 %v9579_v15 }
 0x304   :  { %v4949_v31 = vmax.f32 %v4907_v23, %v4909_v24  ;;  %v9594_v24 = vld [vmem:[#allocation5 + $0x2a4] ss:$8 sps:$4 sm:$0xff]  }
 0x305   :  { %v4950_v33 = vmax.f32 %v4908_v19, %v4910_v28 }
 0x306   :  { %v4989_v16 = vadd.f32 %v10697_v1, %v4949_v31  ;;  %5971 = vmatpush1.bf16.msra.mxu0 %v9577_v27 }
 0x307   :  { %v4990_v34 = vadd.f32 %v10699_v4, %v4950_v33  ;;  %v4199_v35 = vpop.f32.mrb[32].mxu0  ;;  %v4372_v36 = vpop.f32.mrb[32].mxu1  ;;  %5972 = vmatprep.subr.bf16.mxu0 %v9582_v29  ;;  %v9592_v29 = vld [vmem:[#allocation5 + $0x2a0] ss:$8 sps:$4 sm:$0xff]   ;;  %v9597_v33 = vld [vmem:[#allocation5 + $0x2b4] ss:$8 sps:$4 sm:$0xff]  }
 0x308   :  { %v5017_v39 = vmax.f32 %v4989_v16, 0.0  ;;  %v4201_v40 = vpop.f32.mrb[33].mxu0  ;;  %v4374_v41 = vpop.f32.mrb[33].mxu1 }
 0x309   :  { %v5018_v43 = vmax.f32 %v4990_v34, 0.0  ;;  %v4203_v44 = vpop.f32.mrb[34].mxu0  ;;  %v4376_v45 = vpop.f32.mrb[34].mxu1 }
 0x30a   :  { %v10755_v46 = vpack.c.bf16 %v5017_v39, %v5015_v38  ;;  %v4911_v47 = vmax.f32 %v4199_v35, %v4203_v44  ;;  %v4913_v48 = vmax.f32 %v4372_v36, %v4376_v45  ;;  %v4205_v49 = vpop.f32.mrb[35].mxu0  ;;  %v4378_v50 = vpop.f32.mrb[35].mxu1  ;;  %5973 = vmatpush1.bf16.msra.mxu0 %v9580_v0  ;;  %v9595_v45 = vld [vmem:[#allocation5 + $0x2b0] ss:$8 sps:$4 sm:$0xff]  }
 0x30b   :  { %v10757_v52 = vpack.c.bf16 %v5018_v43, %v5016_v42  ;;  %v4912_v53 = vmax.f32 %v4201_v40, %v4205_v49  ;;  %v4914_v54 = vmax.f32 %v4374_v41, %v4378_v50  ;;  %5974 = vmatprep.subr.bf16.mxu0 %v9585_v37  ;;  %v9600_v50 = vld [vmem:[#allocation5 + $0x2c4] ss:$8 sps:$4 sm:$0xff]  }
 0x30c   :  { %5051 = vst [vmem:[#allocation3 + $0x30] sm:$0xff] %v10755_v46  ;;  %v4951_v57 = vmax.f32 %v4911_v47, %v4913_v48  ;;  %v5432_v58 = vrot.slane %v10755_v46, 4 }
 0x30d   :  { %5052 = vst [vmem:[#allocation3 + $0x38] sm:$0xff] %v10757_v52  ;;  %v4952_v59 = vmax.f32 %v4912_v53, %v4914_v54  ;;  %5323 = vmatprep.mubr.bf16.mxu1 %v10757_v52  ;;  %v5434_v60 = vrot.slane %v10757_v52, 4 }
 0x30e   :  { %5324 = vmatmul.mubr.bf16.gmra.mrb[68].mxu1 %v10755_v46  ;;  %5975 = vmatpush1.bf16.msra.mxu0 %v9583_v51  ;;  %v10776_v12 = vsel %vm5421_vm0, %v10735_v7, %v5432_v58  ;;  %v4991_v25 = vadd.f32 %v10697_v1, %v4951_v57  ;;  %v9598_v57 = vld [vmem:[#allocation5 + $0x2c0] ss:$8 sps:$4 sm:$0xff]  }
 0x30f   :  { %v4209_v63 = vpop.f32.mrb[36].mxu0  ;;  %v4382_v2 = vpop.f32.mrb[36].mxu1  ;;  %v10769_v3 = vsel %vm5421_vm0, %v10740_v9, %v5434_v60  ;;  %5976 = vmatprep.subr.bf16.mxu0 %v9588_v55  ;;  %v4992_v27 = vadd.f32 %v10699_v4, %v4952_v59 }
 0x310   :  { %v4211_v8 = vpop.f32.mrb[37].mxu0  ;;  %v4384_v10 = vpop.f32.mrb[37].mxu1  ;;  %5666 = vmatprep.mubr.bf16.mxu0 %v10769_v3  ;;  %v5019_v16 = vmax.f32 %v4991_v25, 0.0 }
 0x311   :  { %v4213_v13 = vpop.f32.mrb[38].mxu0  ;;  %v4386_v14 = vpop.f32.mrb[38].mxu1  ;;  %5667 = vmatmul.mubr.bf16.gmra.mrb[64].mxu0 %v10776_v12  ;;  %v5020_v36 = vmax.f32 %v4992_v27, 0.0 }
 0x312   :  { %v4915_v15 = vmax.f32 %v4209_v63, %v4213_v13  ;;  %v4917_v17 = vmax.f32 %v4382_v2, %v4386_v14  ;;  %v4215_v18 = vpop.f32.mrb[39].mxu0  ;;  %v4388_v20 = vpop.f32.mrb[39].mxu1  ;;  %5977 = vmatpush1.bf16.msra.mxu0 %v9586_v61  ;;  %v9603_v2 = vld [vmem:[#allocation5 + $0x2d4] ss:$8 sps:$4 sm:$0xff]  }
 0x313   :  { %v4916_v22 = vmax.f32 %v4211_v8, %v4215_v18  ;;  %v4918_v23 = vmax.f32 %v4384_v10, %v4388_v20  ;;  %5978 = vmatprep.subr.bf16.mxu0 %v9591_v6  ;;  %v9601_v20 = vld [vmem:[#allocation5 + $0x2d0] ss:$8 sps:$4 sm:$0xff]  }
 0x314   :  { %v4953_v26 = vmax.f32 %v4915_v15, %v4917_v17 }
 0x315   :  { %v4954_v19 = vmax.f32 %v4916_v22, %v4918_v23  ;;  %v9606_v23 = vld [vmem:[#allocation5 + $0x2e4] ss:$8 sps:$4 sm:$0xff]  }
 0x316   :  { %v4993_v28 = vadd.f32 %v10697_v1, %v4953_v26  ;;  %5979 = vmatpush1.bf16.msra.mxu0 %v9589_v21 }
 0x317   :  { %v4994_v30 = vadd.f32 %v10699_v4, %v4954_v19  ;;  %v4219_v31 = vpop.f32.mrb[40].mxu0  ;;  %v4392_v32 = vpop.f32.mrb[40].mxu1  ;;  %5980 = vmatprep.subr.bf16.mxu0 %v9594_v24  ;;  %v9604_v19 = vld [vmem:[#allocation5 + $0x2e0] ss:$8 sps:$4 sm:$0xff]  }
 0x318   :  { %v5021_v0 = vmax.f32 %v4993_v28, 0.0  ;;  %v4221_v34 = vpop.f32.mrb[41].mxu0  ;;  %v4394_v35 = vpop.f32.mrb[41].mxu1 }
 0x319   :  { %v5022_v37 = vmax.f32 %v4994_v30, 0.0  ;;  %v4223_v38 = vpop.f32.mrb[42].mxu0  ;;  %v4396_v39 = vpop.f32.mrb[42].mxu1 }
 0x31a   :  { %v10783_v40 = vpack.c.bf16 %v5021_v0, %v5019_v16  ;;  %v4919_v41 = vmax.f32 %v4219_v31, %v4223_v38  ;;  %v4921_v42 = vmax.f32 %v4392_v32, %v4396_v39  ;;  %v4225_v43 = vpop.f32.mrb[43].mxu0  ;;  %v4398_v44 = vpop.f32.mrb[43].mxu1  ;;  %5981 = vmatpush1.bf16.msra.mxu0 %v9592_v29  ;;  %v9609_v31 = vld [vmem:[#allocation5 + $0x2f4] ss:$8 sps:$4 sm:$0xff]  }
 0x31b   :  { %v10785_v47 = vpack.c.bf16 %v5022_v37, %v5020_v36  ;;  %v4920_v48 = vmax.f32 %v4221_v34, %v4225_v43  ;;  %v4922_v49 = vmax.f32 %v4394_v35, %v4398_v44  ;;  %5982 = vmatprep.subr.bf16.mxu0 %v9597_v33  ;;  %v9607_v44 = vld [vmem:[#allocation5 + $0x2f0] ss:$8 sps:$4 sm:$0xff]  }
 0x31c   :  { %v4955_v51 = vmax.f32 %v4919_v41, %v4921_v42  ;;  %v10788_v53 = vrot.slane %v10783_v40, 4 }
 0x31d   :  { %v4956_v54 = vmax.f32 %v4920_v48, %v4922_v49  ;;  %5333 = vmatprep.mubr.bf16.mxu1 %v10785_v47  ;;  %v10792_v55 = vrot.slane %v10785_v47, 4 }
 0x31e   :  { %5334 = vmatmul.mubr.bf16.gmra.mrb[72].mxu1 %v10783_v40  ;;  %5983 = vmatpush1.bf16.msra.mxu0 %v9595_v45  ;;  %v10806_v10 = vsel %vm5421_vm0, %v5432_v58, %v10788_v53  ;;  %v4995_v24 = vadd.f32 %v10697_v1, %v4955_v51 }
 0x31f   :  { %v4229_v59 = vpop.f32.mrb[44].mxu0  ;;  %v4402_v61 = vpop.f32.mrb[44].mxu1  ;;  %v10799_v63 = vsel %vm5421_vm0, %v5434_v60, %v10792_v55  ;;  %5984 = vmatprep.subr.bf16.mxu0 %v9600_v50  ;;  %v4996_v58 = vadd.f32 %v10699_v4, %v4956_v54  ;;  %v9612_v50 = vld [vmem:[#allocation5 + $0x304] ss:$8 sps:$4 sm:$0xff]  }
 0x320   :  { %v4231_v6 = vpop.f32.mrb[45].mxu0  ;;  %v4404_v8 = vpop.f32.mrb[45].mxu1  ;;  %5676 = vmatprep.mubr.bf16.mxu0 %v10799_v63  ;;  %v5023_v32 = vmax.f32 %v4995_v24, 0.0 }
 0x321   :  { %v4233_v13 = vpop.f32.mrb[46].mxu0  ;;  %v4406_v14 = vpop.f32.mrb[46].mxu1  ;;  %5677 = vmatmul.mubr.bf16.gmra.mrb[68].mxu0 %v10806_v10  ;;  %v5024_v34 = vmax.f32 %v4996_v58, 0.0 }
 0x322   :  { %v4923_v15 = vmax.f32 %v4229_v59, %v4233_v13  ;;  %v4925_v17 = vmax.f32 %v4402_v61, %v4406_v14  ;;  %v4235_v60 = vpop.f32.mrb[47].mxu0  ;;  %v4408_v18 = vpop.f32.mrb[47].mxu1  ;;  %5985 = vmatpush1.bf16.msra.mxu0 %v9598_v57 }
 0x323   :  { %v4924_v21 = vmax.f32 %v4231_v6, %v4235_v60  ;;  %v4926_v22 = vmax.f32 %v4404_v8, %v4408_v18  ;;  %5986 = vmatprep.subr.bf16.mxu0 %v9603_v2 }
 0x324   :  { %v4957_v25 = vmax.f32 %v4923_v15, %v4925_v17 }
 0x325   :  { %v4958_v26 = vmax.f32 %v4924_v21, %v4926_v22 }
 0x326   :  { %v4997_v27 = vadd.f32 %v10697_v1, %v4957_v25  ;;  %5987 = vmatpush1.bf16.msra.mxu0 %v9601_v20 }
 0x327   :  { %v4998_v28 = vadd.f32 %v10699_v4, %v4958_v26  ;;  %v4239_v29 = vpop.f32.mrb[48].mxu0  ;;  %v4412_v30 = vpop.f32.mrb[48].mxu1  ;;  %5988 = vmatprep.subr.bf16.mxu0 %v9606_v23 }
 0x328   :  { %v5025_v33 = vmax.f32 %v4997_v27, 0.0  ;;  %v4241_v16 = vpop.f32.mrb[49].mxu0  ;;  %v4414_v0 = vpop.f32.mrb[49].mxu1 }
 0x329   :  { %v5026_v35 = vmax.f32 %v4998_v28, 0.0  ;;  %v4243_v36 = vpop.f32.mrb[50].mxu0  ;;  %v4416_v37 = vpop.f32.mrb[50].mxu1 }
 0x32a   :  { %v10813_v38 = vpack.c.bf16 %v5025_v33, %v5023_v32  ;;  %v4927_v39 = vmax.f32 %v4239_v29, %v4243_v36  ;;  %v4929_v41 = vmax.f32 %v4412_v30, %v4416_v37  ;;  %v4245_v42 = vpop.f32.mrb[51].mxu0  ;;  %v4418_v43 = vpop.f32.mrb[51].mxu1  ;;  %5989 = vmatpush1.bf16.msra.mxu0 %v9604_v19  ;;  %v9616_v36 = vld [vmem:[#allocation5 + $0x320] ss:$8 sps:$4 sm:$0xff]   ;;  %v9619_v37 = vld [vmem:[#allocation5 + $0x330] ss:$8 sps:$4 sm:$0xff]  }
 0x32b   :  { %v10815_v45 = vpack.c.bf16 %v5026_v35, %v5024_v34  ;;  %v4928_v48 = vmax.f32 %v4241_v16, %v4245_v42  ;;  %v4930_v49 = vmax.f32 %v4414_v0, %v4418_v43  ;;  %5990 = vmatprep.subr.bf16.mxu0 %v9609_v31  ;;  %v9613_v34 = vld [vmem:[#allocation5 + $0x310] ss:$8 sps:$4 sm:$0xff]   ;;  %v9618_v35 = vld [vmem:[#allocation5 + $0x324] ss:$8 sps:$4 sm:$0xff]   ;;  %v9633_v43 = vld [vmem:[#allocation5 + $0x374] ss:$8 sps:$4 sm:$0xff]  }
 0x32c   :  { %5055 = vst [vmem:[#allocation3 + $0x50] sm:$0xff] %v10813_v38  ;;  %v4959_v51 = vmax.f32 %v4927_v39, %v4929_v41  ;;  %v9624_v39 = vld [vmem:[#allocation5 + $0x344] ss:$8 sps:$4 sm:$0xff]   ;;  %v9627_v41 = vld [vmem:[#allocation5 + $0x354] ss:$8 sps:$4 sm:$0xff]  }
 0x32d   :  { %5056 = vst [vmem:[#allocation3 + $0x58] sm:$0xff] %v10815_v45  ;;  %v4960_v54 = vmax.f32 %v4928_v48, %v4930_v49  ;;  %v9630_v42 = vld [vmem:[#allocation5 + $0x364] ss:$8 sps:$4 sm:$0xff]  }
 0x32e   :  { %5991 = vmatpush1.bf16.msra.mxu0 %v9607_v44  ;;  %v4999_v21 = vadd.f32 %v10697_v1, %v4959_v51  ;;  %v9636_v44 = vld [vmem:[#allocation5 + $0x384] ss:$8 sps:$4 sm:$0xff]  }
 0x32f   :  { %v4249_v57 = vpop.f32.mrb[52].mxu0  ;;  %v4422_v59 = vpop.f32.mrb[52].mxu1  ;;  %6352 = vmatprep.subr.bf16.mxu0 %v9612_v50  ;;  %v5000_v25 = vadd.f32 %v10699_v4, %v4960_v54  ;;  %v6104_v48 = vld [vmem:[#allocation3 + $0x18] sm:$0xf0]  ;;  %v9639_v50 = vld [vmem:[#allocation5 + $0x394] ss:$8 sps:$4 sm:$0xff]  }
 0x330   :  { %v4251_v61 = vpop.f32.mrb[53].mxu0  ;;  %v4424_v2 = vpop.f32.mrb[53].mxu1  ;;  %v5027_v29 = vmax.f32 %v4999_v21, 0.0  ;;  %v6163_v49 = vrot.slane %v6104_v48, 4  ;;  %v9637_v54 = vld [vmem:[#allocation5 + $0x390] ss:$8 sps:$4 sm:$0xff]  }
 0x331   :  { %v4253_v6 = vpop.f32.mrb[54].mxu0  ;;  %v4426_v8 = vpop.f32.mrb[54].mxu1  ;;  %v5028_v32 = vmax.f32 %v5000_v25, 0.0  ;;  %v9655_v21 = vld [vmem:[#allocation5 + $0x3f0] ss:$8 sps:$4 sm:$0xff]  }
 0x332   :  { %v4931_v13 = vmax.f32 %v4249_v57, %v4253_v6  ;;  %v4933_v14 = vmax.f32 %v4422_v59, %v4426_v8  ;;  %v4255_v15 = vpop.f32.mrb[55].mxu0  ;;  %v4428_v17 = vpop.f32.mrb[55].mxu1  ;;  %v6165_v51 = vsel %vm5421_vm0, %v6163_v49, %v10740_v9  ;;  %v9642_v57 = vld [vmem:[#allocation5 + $0x3a4] ss:$8 sps:$4 sm:$0xff]   ;;  %v9640_v59 = vld [vmem:[#allocation5 + $0x3a0] ss:$8 sps:$4 sm:$0xff]  }
 0x333   :  { %v4932_v60 = vmax.f32 %v4251_v61, %v4255_v15  ;;  %v4934_v18 = vmax.f32 %v4424_v2, %v4428_v17  ;;  %v5374_v20 = vld [vmem:[#allocation3 + $0x50] sm:$0xf]  ;;  %v9645_v61 = vld [vmem:[#allocation5 + $0x3b4] ss:$8 sps:$4 sm:$0xff]   ;;  %v9643_v2 = vld [vmem:[#allocation5 + $0x3b0] ss:$8 sps:$4 sm:$0xff]  }
 0x334   :  { %v4961_v22 = vmax.f32 %v4931_v13, %v4933_v14  ;;  %v5375_v23 = vld [vmem:[#allocation3 + $0x58] sm:$0xf]  ;;  %v5440_v24 = vrot.slane %v5374_v20, 4  ;;  %v9648_v6 = vld [vmem:[#allocation5 + $0x3c4] ss:$8 sps:$4 sm:$0xff]   ;;  %v9706_v15 = vld [vmem:[%s11159_s5 + $0x40] sm:$0xff]  }
 0x335   :  { %v4962_v58 = vmax.f32 %v4932_v60, %v4934_v18  ;;  %v5442_v26 = vrot.slane %v5375_v23, 4  ;;  %v9646_v8 = vld [vmem:[#allocation5 + $0x3c0] ss:$8 sps:$4 sm:$0xff]   ;;  %v9651_v13 = vld [vmem:[#allocation5 + $0x3d4] ss:$8 sps:$4 sm:$0xff]   ;;  %v9790_v17 = vmov 0.0  }
 0x336   :  { %v5001_v27 = vadd.f32 %v10697_v1, %v4961_v22  ;;  %v5441_v31 = vsel %vm5421_vm0, %v10788_v53, %v5440_v24  ;;  %v9610_v1 = vld [vmem:[#allocation5 + $0x300] ss:$8 sps:$4 sm:$0xff]   ;;  %v9649_v14 = vld [vmem:[#allocation5 + $0x3d0] ss:$8 sps:$4 sm:$0xff]   ;;  %v9654_v9 = vld [vmem:[#allocation5 + $0x3e4] ss:$8 sps:$4 sm:$0xff]   ;;  %8482 = vmatprep.subr.bf16.mxu1 %v9790_v17  ;;  %8498 = vmatprep.mubr.msk.bf16.mxu1 %vm9791_vm1, %v9790_v17 }
 0x337   :  { %v5002_v19 = vadd.f32 %v10699_v4, %v4962_v58  ;;  %v5443_v28 = vsel %vm5421_vm0, %v10792_v55, %v5442_v26  ;;  %v9615_v4 = vld [vmem:[#allocation5 + $0x314] ss:$8 sps:$4 sm:$0xff]   ;;  %v9652_v60 = vld [vmem:[#allocation5 + $0x3e0] ss:$8 sps:$4 sm:$0xff]   ;;  %8483 = vmatpush3.bf16.msra.mxu1 %v9706_v15  ;;  %v6103_v23 = vld [vmem:[#allocation3 + $0x10] sm:$0xf0] }
 0x338   :  { %v5029_v30 = vmax.f32 %v5001_v27, 0.0  ;;  %5686 = vmatprep.mubr.bf16.mxu0 %v5443_v28  ;;  %v9707_v18 = vld [vmem:[%s11159_s5 + $0x48] sm:$0xff]   ;;  %8484 = vmatprep.subr.bf16.mxu1 %v9790_v17  ;;  %v9708_v22 = vld [vmem:[%s11159_s5 + $0x50] sm:$0xff]   ;;  %v6160_v25 = vrot.slane %v6103_v23, 4  ;;  %v6498_v15 = vld [vmem:[#allocation3 + $0x38] sm:$0xff] }
 0x339   :  { %v5030_v33 = vmax.f32 %v5002_v19, 0.0  ;;  %5687 = vmatmul.mubr.bf16.gmra.mrb[72].mxu0 %v5441_v31  ;;  %v9657_v20 = vld [vmem:[#allocation5 + $0x3f4] ss:$8 sps:$4 sm:$0xff]   ;;  %v9660_v24 = vld [vmem:[#allocation5 + $0x404] ss:$8 sps:$4 sm:$0xff]  }
 0x33a   :  { %v10827_v16 = vpack.c.bf16 %v5029_v30, %v5027_v29  ;;  %5992 = vmatprep.mubr.bf16.mxu0 %v10711_v11  ;;  %v9621_v11 = vld [vmem:[#allocation5 + $0x334] ss:$8 sps:$4 sm:$0xff]   ;;  %v9658_v58 = vld [vmem:[#allocation5 + $0x400] ss:$8 sps:$4 sm:$0xff]   ;;  %v6162_v27 = vsel %vm5421_vm0, %v6160_v25, %v10735_v7  ;;  %v9661_v19 = vld [vmem:[#allocation5 + $0x410] ss:$8 sps:$4 sm:$0xff]  }
 0x33b   :  { %v10830_v0 = vpack.c.bf16 %v5030_v33, %v5028_v32  ;;  %8485 = vmatpush3.bf16.msra.mxu1 %v9707_v18  ;;  %v9663_v26 = vld [vmem:[#allocation5 + $0x414] ss:$8 sps:$4 sm:$0xff]   ;;  %v9666_v28 = vld [vmem:[#allocation5 + $0x424] ss:$8 sps:$4 sm:$0xff]   ;;  %v9664_v29 = vld [vmem:[#allocation5 + $0x420] ss:$8 sps:$4 sm:$0xff]  }
 0x33c   :  { %5057 = vst [vmem:[#allocation3 + $0x60] sm:$0xff] %v10827_v16  ;;  %8486 = vmatprep.subr.bf16.mxu1 %v9790_v17  ;;  %v9669_v30 = vld [vmem:[#allocation5 + $0x434] ss:$8 sps:$4 sm:$0xff]   ;;  %v9667_v31 = vld [vmem:[#allocation5 + $0x430] ss:$8 sps:$4 sm:$0xff]   ;;  %v6176_v7 = vrot.slane %v10815_v45, 4 }
 0x33d   :  { %5058 = vst [vmem:[#allocation3 + $0x68] sm:$0xff] %v10830_v0  ;;  %v9672_v32 = vld [vmem:[#allocation5 + $0x444] ss:$8 sps:$4 sm:$0xff]   ;;  %v9675_v33 = vld [vmem:[#allocation5 + $0x454] ss:$8 sps:$4 sm:$0xff]  }
 0x33e   :  { %v9693_v48 = vld [vmem:[#allocation5 + $0x4b4] ss:$8 sps:$4 sm:$0xff]   ;;  %v9696_v49 = vld [vmem:[#allocation5 + $0x4c4] ss:$8 sps:$4 sm:$0xff]  }
 0x33f   :  { %8487 = vmatpush3.bf16.msra.mxu1 %v9708_v22  ;;  %v6497_v22 = vld [vmem:[#allocation3 + $0x30] sm:$0xff] }
 0x340   :  { %8488 = vmatprep.subr.bf16.mxu1 %v9790_v17 }
 0x341   :  { %5993 = vmatmul.mubr.bf16.vlgmr.msra.gmra.mrb[56].mxu0 %v10709_v5  ;;  %v9622_v5 = vld [vmem:[#allocation5 + $0x340] ss:$8 sps:$4 sm:$0xff]  }
 0x342   :  { %6353 = vmatpush1.bf16.msra.mxu0 %v9610_v1  ;;  %6002 = vmatprep.mubr.bf16.mxu0 %v10731_v62  ;;  %v9625_v62 = vld [vmem:[#allocation5 + $0x350] ss:$8 sps:$4 sm:$0xff]   ;;  %v6177_v1 = vsel %vm5421_vm0, %v10792_v55, %v6176_v7 }
 0x343   :  { %6354 = vmatprep.subr.bf16.mxu0 %v9615_v4  ;;  %v6113_v55 = vld [vmem:[#allocation3 + $0x60] sm:$0xf] }
 0x344   :  { %v6114_v4 = vld [vmem:[#allocation3 + $0x68] sm:$0xf] }
 0x346   :  { %6355 = vmatpush1.bf16.msra.mxu0 %v9613_v34  ;;  %v6174_v34 = vrot.slane %v10813_v38, 4 }
 0x347   :  { %6356 = vmatprep.subr.bf16.mxu0 %v9618_v35  ;;  %v6180_v35 = vrot.slane %v6114_v4, 4 }
 0x349   :  { %6003 = vmatmul.mubr.bf16.gmra.mrb[60].mxu0 %v10729_v56  ;;  %v9628_v56 = vld [vmem:[#allocation5 + $0x360] ss:$8 sps:$4 sm:$0xff]  }
 0x34a   :  { %6357 = vmatpush1.bf16.msra.mxu0 %v9616_v36  ;;  %6012 = vmatprep.mubr.bf16.mxu0 %v10757_v52  ;;  %v9631_v52 = vld [vmem:[#allocation5 + $0x370] ss:$8 sps:$4 sm:$0xff]   ;;  %v9676_v36 = vld [vmem:[#allocation5 + $0x460] ss:$8 sps:$4 sm:$0xff]  }
 0x34b   :  { %6358 = vmatprep.subr.bf16.mxu0 %v9621_v11  ;;  %v9681_v11 = vld [vmem:[#allocation5 + $0x474] ss:$8 sps:$4 sm:$0xff]  }
 0x34e   :  { %6359 = vmatpush1.bf16.msra.mxu0 %v9619_v37  ;;  %v6175_v37 = vsel %vm5421_vm0, %v10788_v53, %v6174_v34  ;;  %v9685_v53 = vld [vmem:[#allocation5 + $0x490] ss:$8 sps:$4 sm:$0xff]  }
 0x34f   :  { %6360 = vmatprep.subr.bf16.mxu0 %v9624_v39  ;;  %v9679_v39 = vld [vmem:[#allocation5 + $0x470] ss:$8 sps:$4 sm:$0xff]  }
 0x351   :  { %6013 = vmatmul.mubr.bf16.gmra.mrb[64].mxu0 %v10755_v46  ;;  %v9634_v46 = vld [vmem:[#allocation5 + $0x380] ss:$8 sps:$4 sm:$0xff]  }
 0x352   :  { %6361 = vmatpush1.bf16.msra.mxu0 %v9622_v5  ;;  %6022 = vmatprep.mubr.bf16.mxu0 %v10785_v47  ;;  %v9684_v5 = vld [vmem:[#allocation5 + $0x484] ss:$8 sps:$4 sm:$0xff]  }
 0x353   :  { %6362 = vmatprep.subr.bf16.mxu0 %v9627_v41  ;;  %v6178_v41 = vrot.slane %v6113_v55, 4 }
 0x356   :  { %6363 = vmatpush1.bf16.msra.mxu0 %v9625_v62  ;;  %v9682_v62 = vld [vmem:[#allocation5 + $0x480] ss:$8 sps:$4 sm:$0xff]  }
 0x357   :  { %6364 = vmatprep.subr.bf16.mxu0 %v9630_v42  ;;  %v9687_v42 = vld [vmem:[#allocation5 + $0x494] ss:$8 sps:$4 sm:$0xff]  }
 0x359   :  { %6023 = vmatmul.mubr.bf16.gmra.mrb[68].mxu0 %v10783_v40 }
 0x35a   :  { %6365 = vmatpush1.bf16.msra.mxu0 %v9628_v56  ;;  %6032 = vmatprep.mubr.bf16.mxu0 %v10815_v45  ;;  %v6179_v56 = vsel %vm5421_vm0, %v6174_v34, %v6178_v41 }
 0x35b   :  { %6366 = vmatprep.subr.bf16.mxu0 %v9633_v43  ;;  %v6496_v43 = vld [vmem:[#allocation3 + $0x28] sm:$0xff] }
 0x35e   :  { %6367 = vmatpush1.bf16.msra.mxu0 %v9631_v52  ;;  %v9690_v52 = vld [vmem:[#allocation5 + $0x4a4] ss:$8 sps:$4 sm:$0xff]  }
 0x35f   :  { %6368 = vmatprep.subr.bf16.mxu0 %v9636_v44  ;;  %v9688_v44 = vld [vmem:[#allocation5 + $0x4a0] ss:$8 sps:$4 sm:$0xff]  }
 0x361   :  { %6033 = vmatmul.mubr.bf16.gmra.mrb[72].mxu0 %v10813_v38 }
 0x362   :  { %6369 = vmatpush1.bf16.msra.mxu0 %v9634_v46  ;;  %6384 = vmatprep.mubr.bf16.mxu0 %v6165_v51  ;;  %v9691_v46 = vld [vmem:[#allocation5 + $0x4b0] ss:$8 sps:$4 sm:$0xff]   ;;  %v9699_v51 = vld [vmem:[#allocation5 + $0x4d4] ss:$8 sps:$4 sm:$0xff]  }
 0x363   :  { %6370 = vmatprep.subr.bf16.mxu0 %v9639_v50  ;;  %v9694_v50 = vld [vmem:[#allocation5 + $0x4c0] ss:$8 sps:$4 sm:$0xff]  }
 0x366   :  { %6371 = vmatpush1.bf16.msra.mxu0 %v9637_v54 }
 0x367   :  { %6372 = vmatprep.subr.bf16.mxu0 %v9642_v57  ;;  %v9697_v57 = vld [vmem:[#allocation5 + $0x4d0] ss:$8 sps:$4 sm:$0xff]  }
 0x36a   :  { %6373 = vmatpush1.bf16.msra.mxu0 %v9640_v59 }
 0x36b   :  { %6374 = vmatprep.subr.bf16.mxu0 %v9645_v61  ;;  %v9702_v61 = vld [vmem:[#allocation5 + $0x4e4] ss:$8 sps:$4 sm:$0xff]  }
 0x36e   :  { %6375 = vmatpush1.bf16.msra.mxu0 %v9643_v2 }
 0x36f   :  { %6376 = vmatprep.subr.bf16.mxu0 %v9648_v6 }
 0x372   :  { %6377 = vmatpush1.bf16.msra.mxu0 %v9646_v8  ;;  %v9700_v8 = vld [vmem:[#allocation5 + $0x4e0] ss:$8 sps:$4 sm:$0xff]  }
 0x373   :  { %6378 = vmatprep.subr.bf16.mxu0 %v9651_v13  ;;  %v9705_v13 = vld [vmem:[#allocation5 + $0x4f4] ss:$8 sps:$4 sm:$0xff]  }
 0x376   :  { %6379 = vmatpush1.bf16.msra.mxu0 %v9649_v14  ;;  %v9703_v14 = vld [vmem:[#allocation5 + $0x4f0] ss:$8 sps:$4 sm:$0xff]  }
 0x377   :  { %6380 = vmatprep.subr.bf16.mxu0 %v9654_v9  ;;  %v6495_v9 = vld [vmem:[#allocation3 + $0x20] sm:$0xff] }
 0x37a   :  { %6381 = vmatpush1.bf16.msra.mxu0 %v9652_v60 }
 0x37b   :  { %6382 = vmatprep.subr.bf16.mxu0 %v9657_v20 }
 0x37e   :  { %6383 = vmatpush1.bf16.msra.mxu0 %v9655_v21 }
 0x37f   :  { %6698 = vmatprep.subr.bf16.mxu0 %v9660_v24 }
 0x381   :  { %6385 = vmatmul.mubr.bf16.vlgmr.msra.gmra.mrb[56].mxu0 %v6162_v27 }
 0x382   :  { %6394 = vmatprep.mubr.bf16.mxu0 %v10769_v3  ;;  %6699 = vmatpush1.bf16.msra.mxu0 %v9658_v58  ;;  %v9670_v3 = vld [vmem:[#allocation5 + $0x440] ss:$8 sps:$4 sm:$0xff]  }
 0x383   :  { %6700 = vmatprep.subr.bf16.mxu0 %v9663_v26 }
 0x386   :  { %6701 = vmatpush1.bf16.msra.mxu0 %v9661_v19 }
 0x387   :  { %6702 = vmatprep.subr.bf16.mxu0 %v9666_v28 }
 0x389   :  { %6395 = vmatmul.mubr.bf16.gmra.mrb[60].mxu0 %v10776_v12  ;;  %v9673_v12 = vld [vmem:[#allocation5 + $0x450] ss:$8 sps:$4 sm:$0xff]  }
 0x38a   :  { %6404 = vmatprep.mubr.bf16.mxu0 %v10799_v63  ;;  %6703 = vmatpush1.bf16.msra.mxu0 %v9664_v29  ;;  %v9678_v63 = vld [vmem:[#allocation5 + $0x464] ss:$8 sps:$4 sm:$0xff]  }
 0x38b   :  { %6704 = vmatprep.subr.bf16.mxu0 %v9669_v30  ;;  %v9712_v30 = vld [vmem:[%s11159_s5 + $0x70] sm:$0xff]  }
 0x38e   :  { %6705 = vmatpush1.bf16.msra.mxu0 %v9667_v31  ;;  %v9713_v31 = vld [vmem:[%s11159_s5 + $0x78] sm:$0xff]  }
 0x38f   :  { %6706 = vmatprep.subr.bf16.mxu0 %v9672_v32 }
 0x391   :  { %6405 = vmatmul.mubr.bf16.gmra.mrb[64].mxu0 %v10806_v10  ;;  %v6181_v10 = vsel %vm5421_vm0, %v6176_v7, %v6180_v35 }
 0x392   :  { %6414 = vmatprep.mubr.bf16.mxu0 %v6177_v1  ;;  %6707 = vmatpush1.bf16.msra.mxu0 %v9670_v3 }
 0x393   :  { %6708 = vmatprep.subr.bf16.mxu0 %v9675_v33 }
 0x396   :  { %6709 = vmatpush1.bf16.msra.mxu0 %v9673_v12 }
 0x397   :  { %6710 = vmatprep.subr.bf16.mxu0 %v9678_v63 }
 0x399   :  { %6415 = vmatmul.mubr.bf16.gmra.mrb[68].mxu0 %v6175_v37 }
 0x39a   :  { %6424 = vmatprep.mubr.bf16.mxu0 %v6181_v10  ;;  %6711 = vmatpush1.bf16.msra.mxu0 %v9676_v36 }
 0x39b   :  { %6712 = vmatprep.subr.bf16.mxu0 %v9681_v11 }
 0x39e   :  { %6713 = vmatpush1.bf16.msra.mxu0 %v9679_v39 }
 0x39f   :  { %6714 = vmatprep.subr.bf16.mxu0 %v9684_v5 }
 0x3a1   :  { %6425 = vmatmul.mubr.bf16.gmra.mrb[72].mxu0 %v6179_v56 }
 0x3a2   :  { %6715 = vmatpush1.bf16.msra.mxu0 %v9682_v62  ;;  %6730 = vmatprep.mubr.bf16.mxu0 %v6496_v43 }
 0x3a3   :  { %6716 = vmatprep.subr.bf16.mxu0 %v9687_v42 }
 0x3a6   :  { %6717 = vmatpush1.bf16.msra.mxu0 %v9685_v53 }
 0x3a7   :  { %6718 = vmatprep.subr.bf16.mxu0 %v9690_v52  ;;  %v8295_v52 = vld [vmem:[%s11158_s4] ss:$0 sm:$0xff] }
 0x3aa   :  { %6719 = vmatpush1.bf16.msra.mxu0 %v9688_v44 }
 0x3ab   :  { %6720 = vmatprep.subr.bf16.mxu0 %v9693_v48 }
 0x3ae   :  { %6721 = vmatpush1.bf16.msra.mxu0 %v9691_v46 }
 0x3af   :  { %6722 = vmatprep.subr.bf16.mxu0 %v9696_v49 }
 0x3b1   :  { %v5295_v54 = vpop.f32.mrb[56].mxu1 }
 0x3b2   :  { %6723 = vmatpush1.bf16.msra.mxu0 %v9694_v50  ;;  %v5297_v59 = vpop.f32.mrb[57].mxu1 }
 0x3b3   :  { %6724 = vmatprep.subr.bf16.mxu0 %v9699_v51  ;;  %v5299_v2 = vpop.f32.mrb[58].mxu1 }
 0x3b4   :  { %v5301_v6 = vpop.f32.mrb[59].mxu1 }
 0x3b6   :  { %6725 = vmatpush1.bf16.msra.mxu0 %v9697_v57 }
 0x3b7   :  { %6726 = vmatprep.subr.bf16.mxu0 %v9702_v61 }
 0x3ba   :  { %6727 = vmatpush1.bf16.msra.mxu0 %v9700_v8 }
 0x3bb   :  { %6728 = vmatprep.subr.bf16.mxu0 %v9705_v13 }
 0x3be   :  { %6729 = vmatpush1.bf16.msra.mxu0 %v9703_v14 }
 0x3c1   :  { %6731 = vmatmul.mubr.bf16.vlgmr.msra.gmra.mrb[56].mxu0 %v6495_v9  ;;  %v5305_v60 = vpop.f32.mrb[60].mxu1 }
 0x3c2   :  { %6740 = vmatprep.mubr.bf16.mxu0 %v6498_v15  ;;  %v5307_v18 = vpop.f32.mrb[61].mxu1 }
 0x3c3   :  { %v5309_v20 = vpop.f32.mrb[62].mxu1 }
 0x3c4   :  { %v5311_v21 = vpop.f32.mrb[63].mxu1 }
 0x3c9   :  { %6741 = vmatmul.mubr.bf16.gmra.mrb[60].mxu0 %v6497_v22 }
 0x3ca   :  { %6750 = vmatprep.mubr.bf16.mxu0 %v10785_v47 }
 0x3d1   :  { %6751 = vmatmul.mubr.bf16.gmra.mrb[64].mxu0 %v10783_v40  ;;  %v5315_v23 = vpop.f32.mrb[64].mxu1 }
 0x3d2   :  { %6760 = vmatprep.mubr.bf16.mxu0 %v10815_v45  ;;  %v5317_v24 = vpop.f32.mrb[65].mxu1 }
 0x3d3   :  { %v5319_v25 = vpop.f32.mrb[66].mxu1 }
 0x3d4   :  { %v5321_v58 = vpop.f32.mrb[67].mxu1 }
 0x3d9   :  { %6761 = vmatmul.mubr.bf16.gmra.mrb[68].mxu0 %v10813_v38  ;;  %v9709_v38 = vld [vmem:[%s11159_s5 + $0x58] sm:$0xff]  }
 0x3da   :  { %6770 = vmatprep.mubr.bf16.mxu0 %v10830_v0  ;;  %8489 = vmatpush3.bf16.msra.mxu1 %v9709_v38  ;;  %v9711_v0 = vld [vmem:[%s11159_s5 + $0x68] sm:$0xff]  }
 0x3db   :  { %8490 = vmatprep.subr.bf16.mxu1 %v9790_v17 }
 0x3e1   :  { %6771 = vmatmul.mubr.bf16.gmra.mrb[72].mxu0 %v10827_v16  ;;  %v10878_v26 = vpop.f32.mrb[68].mxu1  ;;  %v9710_v16 = vld [vmem:[%s11159_s5 + $0x60] sm:$0xff]  }
 0x3e2   :  { %v10880_v27 = vpop.f32.mrb[69].mxu1  ;;  %8491 = vmatpush3.bf16.msra.mxu1 %v9710_v16 }
 0x3e3   :  { %v10882_v19 = vpop.f32.mrb[70].mxu1  ;;  %8492 = vmatprep.subr.bf16.mxu1 %v9790_v17 }
 0x3e4   :  { %v10884_v47 = vpop.f32.mrb[71].mxu1 }
 0x3e6   :  { %8493 = vmatpush3.bf16.msra.mxu1 %v9711_v0 }
 0x3e7   :  { %8494 = vmatprep.subr.bf16.mxu1 %v9790_v17 }
 0x3ea   :  { %8495 = vmatpush3.bf16.msra.mxu1 %v9712_v30 }
 0x3eb   :  { %8496 = vmatprep.subr.bf16.mxu1 %v9790_v17 }
 0x3ee   :  { %8497 = vmatpush3.bf16.msra.mxu1 %v9713_v31 }
 0x3ef   :  { %8502 = vmatprep.subr.bf16.mxu1 %v9790_v17 }
 0x3f1   :  { %v10886_v40 = vpop.f32.mrb[72].mxu1 }
 0x3f2   :  { %v10888_v45 = vpop.f32.mrb[73].mxu1 }
 0x3f3   :  { %v10890_v28 = vpop.f32.mrb[74].mxu1 }
 0x3f4   :  { %v10892_v29 = vpop.f32.mrb[75].mxu1 }
 0x494   :  { %v6732_v32 = vpop.f32.mrb[56].mxu0 }
 0x495   :  { %v8622_v7 = vadd.f32 %v6732_v32, %v5295_v54  ;;  %v6734_v3 = vpop.f32.mrb[57].mxu0 }
 0x496   :  { %v8623_v33 = vadd.f32 %v6734_v3, %v5297_v59  ;;  %v6736_v1 = vpop.f32.mrb[58].mxu0 }
 0x497   :  { %v8624_v12 = vadd.f32 %v6736_v1, %v5299_v2  ;;  %v6738_v4 = vpop.f32.mrb[59].mxu0  ;;  %v9714_v2 = vld [vmem:[%s11159_s5] sm:$0xff]  }
 0x498   :  { %v8625_v63 = vadd.f32 %v6738_v4, %v5301_v6 }
 0x499   :  { %v6861_v34 = vmax.f32 %v8622_v7, %v8624_v12 }
 0x49a   :  { %v6862_v35 = vmax.f32 %v8623_v33, %v8625_v63  ;;  %v9721_v63 = vld [vmem:[%s11159_s5 + $0x38] sm:$0xff]  }
 0x49c   :  { %v10916_v36 = vmax.f32 %v6861_v34, %v6862_v35  ;;  %v6742_v11 = vpop.f32.mrb[60].mxu0  ;;  %v9722_v35 = vld [vmem:[%s11159_s5 + $0x80] sm:$0xff]  }
 0x49d   :  { %v8626_v37 = vadd.f32 %v6742_v11, %v5305_v60  ;;  %v6744_v10 = vpop.f32.mrb[61].mxu0  ;;  %v9715_v60 = vld [vmem:[%s11159_s5 + $0x8] sm:$0xff]  }
 0x49e   :  { %v8627_v55 = vadd.f32 %v6744_v10, %v5307_v18  ;;  %v6746_v39 = vpop.f32.mrb[62].mxu0  ;;  %v9725_v10 = vld [vmem:[%s11159_s5 + $0x98] sm:$0xff]  }
 0x49f   :  { %v8628_v5 = vadd.f32 %v6746_v39, %v5309_v20  ;;  %v6748_v41 = vpop.f32.mrb[63].mxu0  ;;  %v9727_v39 = vld [vmem:[%s11159_s5 + $0xa8] sm:$0xff]  }
 0x4a0   :  { %v8629_v62 = vadd.f32 %v6748_v41, %v5311_v21  ;;  %v9729_v41 = vld [vmem:[%s11159_s5 + $0xb8] sm:$0xff]  }
 0x4a1   :  { %v6863_v42 = vmax.f32 %v8626_v37, %v8628_v5  ;;  %v9724_v37 = vld [vmem:[%s11159_s5 + $0x90] sm:$0xff]  }
 0x4a2   :  { %v6864_v56 = vmax.f32 %v8627_v55, %v8629_v62  ;;  %v9726_v55 = vld [vmem:[%s11159_s5 + $0xa0] sm:$0xff]   ;;  %v9728_v5 = vld [vmem:[%s11159_s5 + $0xb0] sm:$0xff]  }
 0x4a4   :  { %v6872_v43 = vmax.f32 %v6863_v42, %v6864_v56  ;;  %v6752_v53 = vpop.f32.mrb[64].mxu0  ;;  %v9730_v42 = vld [vmem:[%s11159_s5 + $0xc0] sm:$0xff]  }
 0x4a5   :  { %v8630_v44 = vadd.f32 %v6752_v53, %v5315_v23  ;;  %v6754_v48 = vpop.f32.mrb[65].mxu0  ;;  %v9732_v53 = vld [vmem:[%s11159_s5 + $0xd0] sm:$0xff]  }
 0x4a6   :  { %v6884_v46 = vadd.f32 %v8295_v52, %v6872_v43  ;;  %v8631_v49 = vadd.f32 %v6754_v48, %v5317_v24  ;;  %v6756_v50 = vpop.f32.mrb[66].mxu0  ;;  %v9731_v43 = vld [vmem:[%s11159_s5 + $0xc8] sm:$0xff]  }
 0x4a7   :  { %v8632_v51 = vadd.f32 %v6756_v50, %v5319_v25  ;;  %v6758_v54 = vpop.f32.mrb[67].mxu0  ;;  %v9735_v48 = vld [vmem:[%s11159_s5 + $0xe8] sm:$0xff]  }
 0x4a8   :  { %v6889_v57 = vmax.f32 %v6884_v46, 0.0  ;;  %v8633_v59 = vadd.f32 %v6758_v54, %v5321_v58  ;;  %v9716_v58 = vld [vmem:[%s11159_s5 + $0x10] sm:$0xff]  }
 0x4a9   :  { %v6865_v61 = vmax.f32 %v8630_v44, %v8632_v51  ;;  %v9734_v44 = vld [vmem:[%s11159_s5 + $0xe0] sm:$0xff]   ;;  %v9736_v46 = vld [vmem:[%s11159_s5 + $0xf0] sm:$0xff]  }
 0x4aa   :  { %v6894_v6 = vpack.c.bf16 %v6889_v57, %v6889_v57  ;;  %v6866_v8 = vmax.f32 %v8631_v49, %v8633_v59  ;;  %v9737_v49 = vld [vmem:[%s11159_s5 + $0xf8] sm:$0xff]   ;;  %v9738_v51 = vld [vmem:[%s11159_s5 + $0x100] sm:$0xff]   ;;  %v9739_v57 = vld [vmem:[%s11159_s5 + $0x108] sm:$0xff]  }
 0x4ab   :  { %v9740_v59 = vld [vmem:[%s11159_s5 + $0x110] sm:$0xff]  }
 0x4ac   :  { %v6873_v13 = vmax.f32 %v6865_v61, %v6866_v8  ;;  %v6762_v14 = vpop.f32.mrb[68].mxu0  ;;  %8499 = vmatmul.mubr.bf16.vlgmr.msra.gmra.mrb[76].mxu1 %v6894_v6  ;;  %v9741_v61 = vld [vmem:[%s11159_s5 + $0x118] sm:$0xff]   ;;  %v9743_v6 = vld [vmem:[%s11159_s5 + $0x128] sm:$0xff]   ;;  %v9744_v8 = vld [vmem:[%s11159_s5 + $0x130] sm:$0xff]  }
 0x4ad   :  { %v8634_v9 = vadd.f32 %v6762_v14, %v10878_v26  ;;  %8503 = vmatpush3.bf16.msra.mxu1 %v9714_v2  ;;  %v6764_v15 = vpop.f32.mrb[69].mxu0  ;;  %8518 = vmatprep.mubr.msk.bf16.mxu1 %vm9791_vm1, %v9790_v17  ;;  %v9742_v2 = vld [vmem:[%s11159_s5 + $0x120] sm:$0xff]  }
 0x4ae   :  { %v10930_v18 = vadd.f32 %v8295_v52, %v6873_v13  ;;  %v8635_v20 = vadd.f32 %v6764_v15, %v10880_v27  ;;  %v6766_v21 = vpop.f32.mrb[70].mxu0  ;;  %8504 = vmatprep.subr.bf16.mxu1 %v9790_v17  ;;  %v9745_v13 = vld [vmem:[%s11159_s5 + $0x138] sm:$0xff]   ;;  %v9746_v15 = vld [vmem:[%s11161_s7] sm:$0xff]  }
 0x4af   :  { %v8636_v22 = vadd.f32 %v6766_v21, %v10882_v19  ;;  %v6768_v23 = vpop.f32.mrb[71].mxu0  ;;  %v9717_v19 = vld [vmem:[%s11159_s5 + $0x18] sm:$0xff]   ;;  %v9750_v21 = vld [vmem:[%s11161_s7 + $0x20] sm:$0xff]  }
 0x4b0   :  { %v8637_v24 = vadd.f32 %v6768_v23, %v10884_v47  ;;  %v6890_v62 = vmax.f32 %v10930_v18, 0.0  ;;  %v9748_v18 = vld [vmem:[%s11161_s7 + $0x10] sm:$0xff]  }
 0x4b1   :  { %v6867_v25 = vmax.f32 %v8634_v9, %v8636_v22  ;;  %8505 = vmatpush3.bf16.msra.mxu1 %v9715_v60  ;;  %v9747_v60 = vld [vmem:[%s11161_s7 + $0x8] sm:$0xff]  }
 0x4b2   :  { %v6868_v26 = vmax.f32 %v8635_v20, %v8637_v24  ;;  %8506 = vmatprep.subr.bf16.mxu1 %v9790_v17  ;;  %v6895_v56 = vpack.c.bf16 %v6890_v62, %v6890_v62  ;;  %v9749_v20 = vld [vmem:[%s11161_s7 + $0x18] sm:$0xff]   ;;  %v9751_v22 = vld [vmem:[%s11161_s7 + $0x28] sm:$0xff]   ;;  %v9752_v24 = vld [vmem:[%s11161_s7 + $0x30] sm:$0xff]  }
 0x4b3   :  { %v9759_v62 = vld [vmem:[%s11163_s9 + $0x28] sm:$0xff]  }
 0x4b4   :  { %v6874_v38 = vmax.f32 %v6867_v25, %v6868_v26  ;;  %v6772_v16 = vpop.f32.mrb[72].mxu0 }
 0x4b5   :  { %v8638_v27 = vadd.f32 %v6772_v16, %v10886_v40  ;;  %8507 = vmatpush3.bf16.msra.mxu1 %v9716_v58  ;;  %v6774_v0 = vpop.f32.mrb[73].mxu0  ;;  %v9718_v40 = vld [vmem:[%s11159_s5 + $0x20] sm:$0xff]  }
 0x4b6   :  { %v10944_v47 = vadd.f32 %v8295_v52, %v6874_v38  ;;  %v8639_v30 = vadd.f32 %v6774_v0, %v10888_v45  ;;  %v6776_v31 = vpop.f32.mrb[74].mxu0  ;;  %8508 = vmatprep.subr.bf16.mxu1 %v9790_v17  ;;  %v9719_v45 = vld [vmem:[%s11159_s5 + $0x28] sm:$0xff]   ;;  %v9753_v38 = vld [vmem:[%s11161_s7 + $0x38] sm:$0xff]  }
 0x4b7   :  { %v8640_v32 = vadd.f32 %v6776_v31, %v10890_v28  ;;  %v6778_v7 = vpop.f32.mrb[75].mxu0  ;;  %v9720_v28 = vld [vmem:[%s11159_s5 + $0x30] sm:$0xff]  }
 0x4b8   :  { %v8641_v3 = vadd.f32 %v6778_v7, %v10892_v29  ;;  %v6883_v29 = vadd.f32 %v8295_v52, %v10916_v36  ;;  %v9723_v36 = vld [vmem:[%s11159_s5 + $0x88] sm:$0xff]   ;;  %v6891_v50 = vmax.f32 %v10944_v47, 0.0 }
 0x4b9   :  { %v6869_v33 = vmax.f32 %v8638_v27, %v8640_v32  ;;  %8509 = vmatpush3.bf16.msra.mxu1 %v9717_v19 }
 0x4ba   :  { %v6870_v1 = vmax.f32 %v8639_v30, %v8641_v3  ;;  %8510 = vmatprep.subr.bf16.mxu1 %v9790_v17  ;;  %v6888_v34 = vmax.f32 %v6883_v29, 0.0  ;;  %v6896_v54 = vpack.c.bf16 %v6891_v50, %v6891_v50 }
 0x4bc   :  { %v6875_v12 = vmax.f32 %v6869_v33, %v6870_v1  ;;  %v6893_v11 = vpack.c.bf16 %v6888_v34, %v6888_v34 }
 0x4bd   :  { %8511 = vmatpush3.bf16.msra.mxu1 %v9718_v40 }
 0x4be   :  { %v10957_v4 = vadd.f32 %v8295_v52, %v6875_v12  ;;  %8512 = vmatprep.subr.bf16.mxu1 %v9790_v17  ;;  %v9733_v52 = vld [vmem:[%s11159_s5 + $0xd8] sm:$0xff]  }
 0x4c0   :  { %v6892_v14 = vmax.f32 %v10957_v4, 0.0 }
 0x4c1   :  { %8513 = vmatpush3.bf16.msra.mxu1 %v9719_v45 }
 0x4c2   :  { %8514 = vmatprep.subr.bf16.mxu1 %v9790_v17  ;;  %v6897_v9 = vpack.c.bf16 %v6892_v14, %v6892_v14 }
 0x4c5   :  { %8515 = vmatpush3.bf16.msra.mxu1 %v9720_v28  ;;  %v8400_v28 = vld [vmem:[%s11160_s6] ss:$0 sm:$0xff] }
 0x4c6   :  { %8516 = vmatprep.subr.bf16.mxu1 %v9790_v17 }
 0x4c9   :  { %8517 = vmatpush3.bf16.msra.mxu1 %v9721_v63 }
 0x4ca   :  { %8522 = vmatprep.subr.bf16.mxu1 %v9790_v17 }
 0x4cc   :  { %8519 = vmatmul.mubr.bf16.vlgmr.msra.gmra.mrb[80].mxu1 %v6893_v11 }
 0x4cd   :  { %8523 = vmatpush3.bf16.msra.mxu1 %v9722_v35  ;;  %8538 = vmatprep.mubr.msk.bf16.mxu1 %vm9791_vm1, %v9790_v17 }
 0x4ce   :  { %8524 = vmatprep.subr.bf16.mxu1 %v9790_v17 }
 0x4d1   :  { %8525 = vmatpush3.bf16.msra.mxu1 %v9723_v36 }
 0x4d2   :  { %8526 = vmatprep.subr.bf16.mxu1 %v9790_v17 }
 0x4d5   :  { %8527 = vmatpush3.bf16.msra.mxu1 %v9724_v37  ;;  %v9754_v37 = vld [vmem:[%s11163_s9] sm:$0xff]  }
 0x4d6   :  { %8528 = vmatprep.subr.bf16.mxu1 %v9790_v17 }
 0x4d9   :  { %8529 = vmatpush3.bf16.msra.mxu1 %v9725_v10 }
 0x4da   :  { %8530 = vmatprep.subr.bf16.mxu1 %v9790_v17 }
 0x4dd   :  { %8531 = vmatpush3.bf16.msra.mxu1 %v9726_v55  ;;  %v9755_v55 = vld [vmem:[%s11163_s9 + $0x8] sm:$0xff]  }
 0x4de   :  { %8532 = vmatprep.subr.bf16.mxu1 %v9790_v17 }
 0x4e1   :  { %8533 = vmatpush3.bf16.msra.mxu1 %v9727_v39  ;;  %v9756_v39 = vld [vmem:[%s11163_s9 + $0x10] sm:$0xff]  }
 0x4e2   :  { %8534 = vmatprep.subr.bf16.mxu1 %v9790_v17 }
 0x4e5   :  { %8535 = vmatpush3.bf16.msra.mxu1 %v9728_v5  ;;  %v9757_v5 = vld [vmem:[%s11163_s9 + $0x18] sm:$0xff]  }
 0x4e6   :  { %8536 = vmatprep.subr.bf16.mxu1 %v9790_v17 }
 0x4e9   :  { %8537 = vmatpush3.bf16.msra.mxu1 %v9729_v41  ;;  %v9758_v41 = vld [vmem:[%s11163_s9 + $0x20] sm:$0xff]  }
 0x4ea   :  { %8542 = vmatprep.subr.bf16.mxu1 %v9790_v17 }
 0x4ec   :  { %8539 = vmatmul.mubr.bf16.vlgmr.msra.gmra.mrb[84].mxu1 %v6895_v56  ;;  %v9761_v56 = vld [vmem:[%s11163_s9 + $0x38] sm:$0xff]  }
 0x4ed   :  { %8543 = vmatpush3.bf16.msra.mxu1 %v9730_v42  ;;  %8558 = vmatprep.mubr.msk.bf16.mxu1 %vm9791_vm1, %v9790_v17  ;;  %v9760_v42 = vld [vmem:[%s11163_s9 + $0x30] sm:$0xff]  }
 0x4ee   :  { %8544 = vmatprep.subr.bf16.mxu1 %v9790_v17 }
 0x4f1   :  { %8545 = vmatpush3.bf16.msra.mxu1 %v9731_v43  ;;  %v8401_v43 = vld [vmem:[%s11162_s8] ss:$0 sm:$0xff] }
 0x4f2   :  { %8546 = vmatprep.subr.bf16.mxu1 %v9790_v17 }
 0x4f5   :  { %8547 = vmatpush3.bf16.msra.mxu1 %v9732_v53 }
 0x4f6   :  { %8548 = vmatprep.subr.bf16.mxu1 %v9790_v17 }
 0x4f9   :  { %8549 = vmatpush3.bf16.msra.mxu1 %v9733_v52 }
 0x4fa   :  { %8550 = vmatprep.subr.bf16.mxu1 %v9790_v17 }
 0x4fd   :  { %8551 = vmatpush3.bf16.msra.mxu1 %v9734_v44 }
 0x4fe   :  { %8552 = vmatprep.subr.bf16.mxu1 %v9790_v17 }
 0x501   :  { %8553 = vmatpush3.bf16.msra.mxu1 %v9735_v48 }
 0x502   :  { %8554 = vmatprep.subr.bf16.mxu1 %v9790_v17 }
 0x505   :  { %8555 = vmatpush3.bf16.msra.mxu1 %v9736_v46 }
 0x506   :  { %8556 = vmatprep.subr.bf16.mxu1 %v9790_v17 }
 0x509   :  { %8557 = vmatpush3.bf16.msra.mxu1 %v9737_v49 }
 0x50a   :  { %8562 = vmatprep.subr.bf16.mxu1 %v9790_v17 }
 0x50c   :  { %8559 = vmatmul.mubr.bf16.vlgmr.msra.gmra.mrb[88].mxu1 %v6896_v54 }
 0x50d   :  { %8563 = vmatpush3.bf16.msra.mxu1 %v9738_v51  ;;  %8578 = vmatprep.mubr.msk.bf16.mxu1 %vm9791_vm1, %v9790_v17 }
 0x50e   :  { %8564 = vmatprep.subr.bf16.mxu1 %v9790_v17 }
 0x511   :  { %8565 = vmatpush3.bf16.msra.mxu1 %v9739_v57 }
 0x512   :  { %8566 = vmatprep.subr.bf16.mxu1 %v9790_v17 }
 0x515   :  { %8567 = vmatpush3.bf16.msra.mxu1 %v9740_v59 }
 0x516   :  { %8568 = vmatprep.subr.bf16.mxu1 %v9790_v17 }
 0x519   :  { %8569 = vmatpush3.bf16.msra.mxu1 %v9741_v61 }
 0x51a   :  { %8570 = vmatprep.subr.bf16.mxu1 %v9790_v17 }
 0x51d   :  { %8571 = vmatpush3.bf16.msra.mxu1 %v9742_v2 }
 0x51e   :  { %8572 = vmatprep.subr.bf16.mxu1 %v9790_v17 }
 0x521   :  { %8573 = vmatpush3.bf16.msra.mxu1 %v9743_v6 }
 0x522   :  { %8574 = vmatprep.subr.bf16.mxu1 %v9790_v17 }
 0x525   :  { %8575 = vmatpush3.bf16.msra.mxu1 %v9744_v8 }
 0x526   :  { %8576 = vmatprep.subr.bf16.mxu1 %v9790_v17 }
 0x529   :  { %8577 = vmatpush3.bf16.msra.mxu1 %v9745_v13 }
 0x52a   :  { %8582 = vmatprep.subr.bf16.mxu1 %v9790_v17 }
 0x52c   :  { %8579 = vmatmul.mubr.bf16.vlgmr.msra.gmra.mrb[92].mxu1 %v6897_v9 }
 0x52d   :  { %8598 = vmatprep.mubr.msk.bf16.mxu1 %vm9791_vm1, %v9790_v17  ;;  %8583 = vmatpush3.bf16.msra.mxu1 %v9746_v15 }
 0x52e   :  { %8584 = vmatprep.subr.bf16.mxu1 %v9790_v17 }
 0x531   :  { %8585 = vmatpush3.bf16.msra.mxu1 %v9747_v60 }
 0x532   :  { %8586 = vmatprep.subr.bf16.mxu1 %v9790_v17 }
 0x535   :  { %8587 = vmatpush3.bf16.msra.mxu1 %v9748_v18 }
 0x536   :  { %8588 = vmatprep.subr.bf16.mxu1 %v9790_v17 }
 0x539   :  { %8589 = vmatpush3.bf16.msra.mxu1 %v9749_v20 }
 0x53a   :  { %8590 = vmatprep.subr.bf16.mxu1 %v9790_v17 }
 0x53d   :  { %8591 = vmatpush3.bf16.msra.mxu1 %v9750_v21 }
 0x53e   :  { %8592 = vmatprep.subr.bf16.mxu1 %v9790_v17 }
 0x541   :  { %8593 = vmatpush3.bf16.msra.mxu1 %v9751_v22 }
 0x542   :  { %8594 = vmatprep.subr.bf16.mxu1 %v9790_v17 }
 0x545   :  { %8595 = vmatpush3.bf16.msra.mxu1 %v9752_v24 }
 0x546   :  { %8596 = vmatprep.subr.bf16.mxu1 %v9790_v17 }
 0x549   :  { %8597 = vmatpush3.bf16.msra.mxu1 %v9753_v38 }
 0x54a   :  { %8602 = vmatprep.subr.bf16.mxu1 %v9790_v17 }
 0x57f   :  { %v7013_v23 = vpop.f32.mrb[76].mxu1 }
 0x580   :  { %v8500_v25 = vpop.f32.mrb[77].mxu1 }
 0x581   :  { %v7016_v58 = vpop.f32.mrb[78].mxu1 }
 0x582   :  { %v8501_v26 = vpop.f32.mrb[79].mxu1 }
 0x59f   :  { %v7101_v16 = vpop.f32.mrb[80].mxu1 }
 0x5a0   :  { %v7102_v27 = vadd.f32 %v7101_v16, %v7013_v23  ;;  %v8520_v0 = vpop.f32.mrb[81].mxu1 }
 0x5a1   :  { %v7104_v19 = vpop.f32.mrb[82].mxu1 }
 0x5a2   :  { %v8521_v47 = vpop.f32.mrb[83].mxu1 }
 0x5bf   :  { %v7206_v30 = vpop.f32.mrb[84].mxu1 }
 0x5c0   :  { %v7212_v31 = vadd.f32 %v7206_v30, %v7102_v27  ;;  %v8540_v32 = vpop.f32.mrb[85].mxu1 }
 0x5c1   :  { %v7209_v7 = vpop.f32.mrb[86].mxu1 }
 0x5c2   :  { %v8541_v3 = vpop.f32.mrb[87].mxu1 }
 0x5df   :  { %v7312_v33 = vpop.f32.mrb[88].mxu1 }
 0x5e0   :  { %v7318_v40 = vadd.f32 %v7312_v33, %v7212_v31  ;;  %v8560_v1 = vpop.f32.mrb[89].mxu1 }
 0x5e1   :  { %v7315_v12 = vpop.f32.mrb[90].mxu1 }
 0x5e2   :  { %v8561_v45 = vpop.f32.mrb[91].mxu1 }
 0x5ff   :  { %v7418_v4 = vpop.f32.mrb[92].mxu1 }
 0x600   :  { %v7424_v29 = vadd.f32 %v7418_v4, %v7318_v40  ;;  %v8580_v63 = vpop.f32.mrb[93].mxu1 }
 0x601   :  { %v7421_v34 = vpop.f32.mrb[94].mxu1 }
 0x602   :  { %v7432_v35 = vadd.f32 %v8400_v28, %v7424_v29  ;;  %v8581_v11 = vpop.f32.mrb[95].mxu1 }
 0x604   :  { %v7433_v36 = vmax.f32 %v7432_v35, 0.0 }
 0x606   :  { %v7434_v10 = vpack.c.bf16 %v7433_v36, %v7433_v36 }
 0x608   :  { %8599 = vmatmul.mubr.bf16.vlgmr.msra.gmra.mrb[96].mxu1 %v7434_v10 }
 0x609   :  { %8603 = vmatpush3.bf16.msra.mxu1 %v9754_v37  ;;  %8618 = vmatprep.mubr.msk.bf16.mxu1 %vm9791_vm1, %v9790_v17 }
 0x60a   :  { %8604 = vmatprep.subr.bf16.mxu1 %v9790_v17 }
 0x60d   :  { %8605 = vmatpush3.bf16.msra.mxu1 %v9755_v55 }
 0x60e   :  { %8606 = vmatprep.subr.bf16.mxu1 %v9790_v17 }
 0x611   :  { %8607 = vmatpush3.bf16.msra.mxu1 %v9756_v39 }
 0x612   :  { %8608 = vmatprep.subr.bf16.mxu1 %v9790_v17 }
 0x615   :  { %8609 = vmatpush3.bf16.msra.mxu1 %v9757_v5 }
 0x616   :  { %8610 = vmatprep.subr.bf16.mxu1 %v9790_v17 }
 0x619   :  { %8611 = vmatpush3.bf16.msra.mxu1 %v9758_v41 }
 0x61a   :  { %8612 = vmatprep.subr.bf16.mxu1 %v9790_v17 }
 0x61d   :  { %8613 = vmatpush3.bf16.msra.mxu1 %v9759_v62 }
 0x61e   :  { %8614 = vmatprep.subr.bf16.mxu1 %v9790_v17 }
 0x621   :  { %8615 = vmatpush3.bf16.msra.mxu1 %v9760_v42 }
 0x622   :  { %8616 = vmatprep.subr.bf16.mxu1 %v9790_v17  ;;  %v8410_v17 = vld [vmem:[%s11164_s10] ss:$0 sm:$0xff] }
 0x625   :  { %8617 = vmatpush3.bf16.msra.mxu1 %v9761_v56 }
 0x6db   :  { %v7540_v53 = vpop.f32.mrb[96].mxu1 }
 0x6dc   :  { %v7541_v52 = vadd.f32 %v8401_v43, %v7540_v53  ;;  %v8600_v44 = vpop.f32.mrb[97].mxu1 }
 0x6dd   :  { %v7543_v48 = vpop.f32.mrb[98].mxu1 }
 0x6de   :  { %v7546_v46 = vmax.f32 %v7541_v52, 0.0  ;;  %v8601_v49 = vpop.f32.mrb[99].mxu1 }
 0x6e0   :  { %v7547_v50 = vpack.c.bf16 %v7546_v46, %v7546_v46 }
 0x6e2   :  { %8619 = vmatmul.mubr.bf16.vlgmr.msra.gmra.mrb[100].mxu1 %v7547_v50 }
 0x7b5   :  { %v7653_v51 = vpop.f32.mrb[100].mxu1 }
 0x7b6   :  { %v7654_v54 = vadd.f32 %v8410_v17, %v7653_v51  ;;  %v8620_v57 = vpop.f32.mrb[101].mxu1 }
 0x7b7   :  { %v7656_v59 = vpop.f32.mrb[102].mxu1 }
 0x7b8   :  { %7659 = vst [vmem:[%s11165_s11] sm:$0xff] %v7654_v54  ;;  %v8621_v61 = vpop.f32.mrb[103].mxu1 }
 0x7b9   :  { %7664 = vsyncpa [#allocation6], 1 }

</bundles_post_ra>
